<compile_context>
chip_gen: v6e
topology: v6e:2x2x1
jax: 0.10.0
libtpu: 0.0.40
codegen_flags: <defaults>
</compile_context>

<pallas_src>
import functools
import math

import jax
import jax.numpy as jnp
from jax import lax
from jax.experimental import pallas as pl
from jax.experimental.pallas import tpu as pltpu

_LANE = 128
_BLOCK_ELEMS = 512 * 512            # ~1 MiB of f32 per block (per buffer)
_LANE_WIDTHS = (4096, 2048, 1024, 512, 256, 128)   # widest lane-dense view first

# murmur3 / splitmix style 32-bit constants, expressed as int32.
_MUL1 = -2048144789                 # 0x85EBCA6B
_MUL2 = -1028477387                 # 0xC2B2AE35
_GOLD = -1640531527                 # 0x9E3779B9
_STREAM1 = 0x3C6EF372
_STREAM2 = 0x1B873593


def _shr(x, n):
    """Logical (unsigned) right shift on int32 bit patterns."""
    return lax.shift_right_logical(x, jnp.full(x.shape, n, jnp.int32))


def _mix32(x):
    """murmur3 finalizer: bijective avalanche mixer on 32-bit patterns (int32)."""
    x = x ^ _shr(x, 16)
    x = x * jnp.int32(_MUL1)
    x = x ^ _shr(x, 13)
    x = x * jnp.int32(_MUL2)
    x = x ^ _shr(x, 16)
    return x


def _gaussian_noise_kernel(seed_ref, x_ref, o_ref, *, std):
    """o = x + std * N(0, 1); noise from a stateless counter hash + Box-Muller."""
    br, w = x_ref.shape                     # static block shape
    half = (br + 1) // 2                    # Box-Muller yields 2 normals per pair

    # Globally unique per-element counters for the half-block of (u1, u2) pairs.
    row = lax.broadcasted_iota(jnp.int32, (half, w), 0)
    col = lax.broadcasted_iota(jnp.int32, (half, w), 1)
    base = pl.program_id(0) * (half * w)    # per-block offset -> no repeated noise
    ctr = base + row * w + col

    seed_g = seed_ref[0] * jnp.int32(_GOLD)
    h = _mix32(ctr + seed_g)
    b1 = _mix32(h ^ jnp.int32(_STREAM1))
    b2 = _mix32(h ^ jnp.int32(_STREAM2))

    # Top 23 bits -> uniform in [0, 1).
    inv = jnp.float32(1.0 / (1 << 23))
    u1 = _shr(b1, 9).astype(jnp.float32) * inv
    u2 = _shr(b2, 9).astype(jnp.float32) * inv

    # Box-Muller, both branches; std folded into the radius.  1 - u1 in (0, 1].
    r = jnp.float32(std) * jnp.sqrt(-2.0 * jnp.log(1.0 - u1))
    theta = jnp.float32(2.0 * math.pi) * u2
    z = jnp.concatenate([r * jnp.cos(theta), r * jnp.sin(theta)], axis=0)
    if z.shape[0] != br:                    # static: only when br is odd
        z = z[:br]

    o_ref[...] = (x_ref[...].astype(jnp.float32) + z).astype(o_ref.dtype)


def _choose_layout(n):
    """Pick the widest lane width that divides n (avoids any padding pass)."""
    for w in _LANE_WIDTHS:
        if n % w == 0:
            return w, False
    return _LANE, True


def gaussian_noise(x, *, std=0.1, seed=0, training=True):
    """JAX/Pallas equivalent of GaussianNoise.forward."""
    if not training or std == 0.0:
        return x

    orig_shape = x.shape
    flat = x.reshape(-1)
    n = flat.shape[0]

    w, needs_pad = _choose_layout(n)
    if needs_pad:
        n_pad = pl.cdiv(n, w) * w
        flat = jnp.pad(flat, (0, n_pad - n))
    else:
        n_pad = n
    rows = n_pad // w

    # Block rows: multiple of 8 when tiling, or the full (small) row extent.
    block_rows = max(1, min(rows, _BLOCK_ELEMS // w))
    grid = (pl.cdiv(rows, block_rows),)

    x2d = flat.reshape(rows, w)
    seed_arr = jnp.asarray([seed], dtype=jnp.int32)

    out2d = pl.pallas_call(
        functools.partial(_gaussian_noise_kernel, std=float(std)),
        out_shape=jax.ShapeDtypeStruct((rows, w), x.dtype),
        grid=grid,
        in_specs=[
            pl.BlockSpec(memory_space=pltpu.SMEM),               # seed scalar
            pl.BlockSpec((block_rows, w), lambda i: (i, 0)),     # x tile
        ],
        out_specs=pl.BlockSpec((block_rows, w), lambda i: (i, 0)),
        compiler_params=pltpu.CompilerParams(
            dimension_semantics=("parallel",),
            vmem_limit_bytes=32 * 1024 * 1024,
        ),
    )(seed_arr, x2d)

    out = out2d.reshape(-1)
    if needs_pad:
        out = out[:n]
    return out.reshape(orig_shape)


if __name__ == "__main__":
    key = jax.random.PRNGKey(0)
    # NCHW input, like the PyTorch module would receive.
    x = jax.random.normal(key, (2, 4, 16, 16), dtype=jnp.float32)

    std = 0.1
    y = jax.block_until_ready(gaussian_noise(x, std=std, seed=0, training=True))

    # Basic sanity checks on the noise statistics / shape.
    assert y.shape == x.shape and y.dtype == x.dtype
    noise = y - x
    mean = float(jnp.mean(noise))
    sd = float(jnp.std(noise))
    assert abs(mean) < 5e-2, f"noise mean too large: {mean}"
    assert abs(sd - std) < 5e-2, f"noise std off: {sd}"

    # A different seed produces different noise.
    y2 = jax.block_until_ready(gaussian_noise(x, std=std, seed=1, training=True))
    assert not bool(jnp.all(y2 == y))

    # Eval mode is the identity.
    y_eval = jax.block_until_ready(gaussian_noise(x, std=std, training=False))
    assert bool(jnp.all(y_eval == x))

    print("KERNEL_OK")
</pallas_src>

<mosaic_0001>
module attributes {stable_mosaic.version = 11 : i64} {
  func.func @_gaussian_noise_kernel(%arg0: i32, %arg1: memref<1xi32, #tpu.memory_space<smem>>, %arg2: memref<1x2048xf32, #tpu.memory_space<vmem>>, %arg3: memref<1x2048xf32, #tpu.memory_space<vmem>>) attributes {dimension_semantics = [#tpu.dimension_semantics<parallel>], iteration_bounds = array<i64: 1>, scalar_prefetch = 0 : i64, scratch_operands = 0 : i64, tpu.core_type = #tpu.core_type<tc>, window_params = [{transform_indices = @transform_0, window_bounds = array<i64: 1>}, {transform_indices = @transform_1, window_bounds = array<i64: 1, 2048>}, {transform_indices = @transform_2, window_bounds = array<i64: 1, 2048>}]} {
    %0 = tpu.iota {dimensions = array<i32: 0>} : vector<1x2048xi32>
    %1 = tpu.iota {dimensions = array<i32: 1>} : vector<1x2048xi32>
    %c2048_i32 = arith.constant 2048 : i32
    %2 = arith.muli %arg0, %c2048_i32 : i32
    %c2048_i32_0 = arith.constant 2048 : i32
    %3 = vector.broadcast %c2048_i32_0 : i32 to vector<1x2048xi32>
    %4 = arith.muli %0, %3 : vector<1x2048xi32>
    %5 = vector.broadcast %2 : i32 to vector<1x2048xi32>
    %6 = arith.addi %5, %4 : vector<1x2048xi32>
    %7 = arith.addi %6, %1 : vector<1x2048xi32>
    %c0 = arith.constant 0 : index
    %8 = memref.load %arg1[%c0] : memref<1xi32, #tpu.memory_space<smem>>
    %c-1640531527_i32 = arith.constant -1640531527 : i32
    %9 = arith.muli %8, %c-1640531527_i32 : i32
    %10 = vector.broadcast %9 : i32 to vector<1x2048xi32>
    %11 = arith.addi %7, %10 : vector<1x2048xi32>
    %c16_i32 = arith.constant 16 : i32
    %12 = vector.broadcast %c16_i32 : i32 to vector<1x2048xi32>
    %13 = arith.shrui %11, %12 : vector<1x2048xi32>
    %14 = arith.xori %11, %13 : vector<1x2048xi32>
    %c-2048144789_i32 = arith.constant -2048144789 : i32
    %15 = vector.broadcast %c-2048144789_i32 : i32 to vector<1x2048xi32>
    %16 = arith.muli %14, %15 : vector<1x2048xi32>
    %c13_i32 = arith.constant 13 : i32
    %17 = vector.broadcast %c13_i32 : i32 to vector<1x2048xi32>
    %18 = arith.shrui %16, %17 : vector<1x2048xi32>
    %19 = arith.xori %16, %18 : vector<1x2048xi32>
    %c-1028477387_i32 = arith.constant -1028477387 : i32
    %20 = vector.broadcast %c-1028477387_i32 : i32 to vector<1x2048xi32>
    %21 = arith.muli %19, %20 : vector<1x2048xi32>
    %c16_i32_1 = arith.constant 16 : i32
    %22 = vector.broadcast %c16_i32_1 : i32 to vector<1x2048xi32>
    %23 = arith.shrui %21, %22 : vector<1x2048xi32>
    %24 = arith.xori %21, %23 : vector<1x2048xi32>
    %c1013904242_i32 = arith.constant 1013904242 : i32
    %25 = vector.broadcast %c1013904242_i32 : i32 to vector<1x2048xi32>
    %26 = arith.xori %24, %25 : vector<1x2048xi32>
    %c16_i32_2 = arith.constant 16 : i32
    %27 = vector.broadcast %c16_i32_2 : i32 to vector<1x2048xi32>
    %28 = arith.shrui %26, %27 : vector<1x2048xi32>
    %29 = arith.xori %26, %28 : vector<1x2048xi32>
    %c-2048144789_i32_3 = arith.constant -2048144789 : i32
    %30 = vector.broadcast %c-2048144789_i32_3 : i32 to vector<1x2048xi32>
    %31 = arith.muli %29, %30 : vector<1x2048xi32>
    %c13_i32_4 = arith.constant 13 : i32
    %32 = vector.broadcast %c13_i32_4 : i32 to vector<1x2048xi32>
    %33 = arith.shrui %31, %32 : vector<1x2048xi32>
    %34 = arith.xori %31, %33 : vector<1x2048xi32>
    %c-1028477387_i32_5 = arith.constant -1028477387 : i32
    %35 = vector.broadcast %c-1028477387_i32_5 : i32 to vector<1x2048xi32>
    %36 = arith.muli %34, %35 : vector<1x2048xi32>
    %c16_i32_6 = arith.constant 16 : i32
    %37 = vector.broadcast %c16_i32_6 : i32 to vector<1x2048xi32>
    %38 = arith.shrui %36, %37 : vector<1x2048xi32>
    %39 = arith.xori %36, %38 : vector<1x2048xi32>
    %c461845907_i32 = arith.constant 461845907 : i32
    %40 = vector.broadcast %c461845907_i32 : i32 to vector<1x2048xi32>
    %41 = arith.xori %24, %40 : vector<1x2048xi32>
    %c16_i32_7 = arith.constant 16 : i32
    %42 = vector.broadcast %c16_i32_7 : i32 to vector<1x2048xi32>
    %43 = arith.shrui %41, %42 : vector<1x2048xi32>
    %44 = arith.xori %41, %43 : vector<1x2048xi32>
    %c-2048144789_i32_8 = arith.constant -2048144789 : i32
    %45 = vector.broadcast %c-2048144789_i32_8 : i32 to vector<1x2048xi32>
    %46 = arith.muli %44, %45 : vector<1x2048xi32>
    %c13_i32_9 = arith.constant 13 : i32
    %47 = vector.broadcast %c13_i32_9 : i32 to vector<1x2048xi32>
    %48 = arith.shrui %46, %47 : vector<1x2048xi32>
    %49 = arith.xori %46, %48 : vector<1x2048xi32>
    %c-1028477387_i32_10 = arith.constant -1028477387 : i32
    %50 = vector.broadcast %c-1028477387_i32_10 : i32 to vector<1x2048xi32>
    %51 = arith.muli %49, %50 : vector<1x2048xi32>
    %c16_i32_11 = arith.constant 16 : i32
    %52 = vector.broadcast %c16_i32_11 : i32 to vector<1x2048xi32>
    %53 = arith.shrui %51, %52 : vector<1x2048xi32>
    %54 = arith.xori %51, %53 : vector<1x2048xi32>
    %c9_i32 = arith.constant 9 : i32
    %55 = vector.broadcast %c9_i32 : i32 to vector<1x2048xi32>
    %56 = arith.shrui %39, %55 : vector<1x2048xi32>
    %57 = arith.sitofp %56 : vector<1x2048xi32> to vector<1x2048xf32>
    %cst = arith.constant 1.1920929E-7 : f32
    %58 = vector.broadcast %cst : f32 to vector<1x2048xf32>
    %59 = arith.mulf %57, %58 : vector<1x2048xf32>
    %c9_i32_12 = arith.constant 9 : i32
    %60 = vector.broadcast %c9_i32_12 : i32 to vector<1x2048xi32>
    %61 = arith.shrui %54, %60 : vector<1x2048xi32>
    %62 = arith.sitofp %61 : vector<1x2048xi32> to vector<1x2048xf32>
    %cst_13 = arith.constant 1.1920929E-7 : f32
    %63 = vector.broadcast %cst_13 : f32 to vector<1x2048xf32>
    %64 = arith.mulf %62, %63 : vector<1x2048xf32>
    %cst_14 = arith.constant 1.000000e+00 : f32
    %65 = vector.broadcast %cst_14 : f32 to vector<1x2048xf32>
    %66 = arith.subf %65, %59 : vector<1x2048xf32>
    %67 = math.log %66 : vector<1x2048xf32>
    %cst_15 = arith.constant -2.000000e+00 : f32
    %68 = vector.broadcast %cst_15 : f32 to vector<1x2048xf32>
    %69 = arith.mulf %68, %67 : vector<1x2048xf32>
    %70 = math.sqrt %69 : vector<1x2048xf32>
    %cst_16 = arith.constant 1.000000e-01 : f32
    %71 = vector.broadcast %cst_16 : f32 to vector<1x2048xf32>
    %72 = arith.mulf %71, %70 : vector<1x2048xf32>
    %cst_17 = arith.constant 6.28318548 : f32
    %73 = vector.broadcast %cst_17 : f32 to vector<1x2048xf32>
    %74 = arith.mulf %73, %64 : vector<1x2048xf32>
    %75 = math.cos %74 : vector<1x2048xf32>
    %76 = arith.mulf %72, %75 : vector<1x2048xf32>
    %77 = math.sin %74 : vector<1x2048xf32>
    %78 = arith.mulf %72, %77 : vector<1x2048xf32>
    %79 = tpu.concatenate %76, %78 in 0 : vector<1x2048xf32>, vector<1x2048xf32> -> vector<2x2048xf32>
    %80 = vector.extract_strided_slice %79 {offsets = [0, 0], sizes = [1, 2048], strides = [1, 1]} : vector<2x2048xf32> to vector<1x2048xf32>
    %c0_18 = arith.constant 0 : index
    %c0_19 = arith.constant 0 : index
    %81 = vector.load %arg2[%c0_18, %c0_19] : memref<1x2048xf32, #tpu.memory_space<vmem>>, vector<1x2048xf32>
    %82 = arith.addf %81, %80 : vector<1x2048xf32>
    %c0_20 = arith.constant 0 : index
    %c0_21 = arith.constant 0 : index
    %83 = vector.load %arg3[%c0_20, %c0_21] : memref<1x2048xf32, #tpu.memory_space<vmem>>, vector<1x2048xf32>
    tpu.vector_store %arg3[%c0_20, %c0_21], %82 {strides = array<i32>} : memref<1x2048xf32, #tpu.memory_space<vmem>>, vector<1x2048xf32>,
    return
  }
  func.func @transform_0(%arg0: i32) -> i32 {
    %c0_i32 = arith.constant 0 : i32
    %c0_i32_0 = arith.constant 0 : i32
    return %c0_i32 : i32
  }
  func.func @transform_1(%arg0: i32) -> (i32, i32) {
    %c0_i32 = arith.constant 0 : i32
    %c0_i32_0 = arith.constant 0 : i32
    return %arg0, %c0_i32 : i32, i32
  }
  func.func @transform_2(%arg0: i32) -> (i32, i32) {
    %c0_i32 = arith.constant 0 : i32
    %c0_i32_0 = arith.constant 0 : i32
    return %arg0, %c0_i32 : i32, i32
  }
}

</mosaic_0001>

<bundles_post_ra>
// kernel: tpu_custom_call.1
= control target key start
LH: loop header
LB: loop body
LE: loop exit
PB: predicated region body
PF: predicated region fallthrough
CT: control target
= control target key end

     0   :  { %8 = vsyncpa [#allocation4], 0  ;;  %s7344_s0 = inlined_call_operand.<no memory space> [shape: s32[1], index: 0, kind: input, shape index: {}]   ;;  %s7345_s1 = inlined_call_operand.hbm [shape: f32[1,2048], index: 1, kind: input, shape index: {}]   ;;  %s7346_s2 = inlined_call_operand.hbm [shape: f32[1,2048], index: 2, kind: output, shape index: {}]  }
   0x1   :  { %9 = vsyncpa [#allocation5], 0  ;;  %s4722_s9 = smov [#allocation3]  }
   0x2   :  { %s18_s10 = sshll.u32 %s4722_s9, 4  ;;  %s19_s10 = int_to_ptr.vmem [resolvable:$true] %s18_s10 }
   0x3   :  { %s4686_s11 = scalar_lea.vmem %s19_s10, 256  ;;  %p4691_p1 = scmp.lt.s32.totalorder %s19_s10, %s19_s10 }
   0x4   :  { %p4687_p0 = scmp.ne.s32.totalorder %s19_s10, %s4686_s11  ;;  %p4692_p2 = scmp.lt.s32.totalorder %s4686_s11, %s4686_s11 }
   0x6   :  { %p4693_p3 = por %p4692_p2, %p4691_p1 }
   0x8   :  { %p4694_p4 = pnand %p4693_p3, %p4687_p0 }
   0xa   :  { %4697 = shalt.err (!%p4694_p4)
}
   0xb   :  { %21 = dma.hbm_to_vmem [thread:$0]  %s7345_s1, 256, %s19_s10, [#allocation4]  }
   0xc   :  { %4718 = dma.done.wait [#allocation4], 256  }
   0xd   :  { %4719 = vsyncadd [#allocation4], 4294967040  ;;  %v25_v0 = vlaneseq  ;;  %s65_s16 = smul.u32 2654435769, %s7344_s0  ;;  %s4730_s0 = smov [#allocation6]  }
   0xe   :  { %s4340_s1 = sshll.u32 %s4730_s0, 4  ;;  %s4341_s1 = int_to_ptr.vmem [resolvable:$true] %s4340_s1 }
   0xf   :  { %v4749_v1 = vshrl.u32 %v25_v0, 7  ;;  %v28_v2 = vand.u32 127, %v25_v0  ;;  %v66_v11 = vstv %s65_s16  ;;  %s4698_s17 = scalar_lea.vmem %s4341_s1, 256  ;;  %p4703_p6 = scmp.lt.s32.totalorder %s4341_s1, %s4341_s1 }
  0x10   :  { %p4699_p5 = scmp.ne.s32.totalorder %s4341_s1, %s4698_s17  ;;  %p4704_p7 = scmp.lt.s32.totalorder %s4698_s17, %s4698_s17 }
  0x11   :  { %7496 = vst [vmem:[#allocation9_spill] sm:$0xff] %v4749_v1  ;;  %v29_v3 = vadd.s32 128, %v28_v2  ;;  %v45_v4 = vmul.u32 2048, %v4749_v1  ;;  %v30_v5 = vadd.s32 256, %v28_v2  ;;  %v31_v6 = vadd.s32 384, %v28_v2 }
  0x12   :  { %v32_v7 = vadd.s32 512, %v28_v2  ;;  %v33_v8 = vadd.s32 640, %v28_v2  ;;  %v34_v9 = vadd.s32 768, %v28_v2  ;;  %v35_v10 = vadd.s32 896, %v28_v2  ;;  %p4705_p8 = por %p4704_p7, %p4703_p6 }
  0x13   :  { %v36_v12 = vadd.s32 1024, %v28_v2  ;;  %v37_v13 = vadd.s32 1152, %v28_v2  ;;  %v48_v14 = vadd.s32 %v45_v4, %v28_v2  ;;  %v49_v15 = vadd.s32 %v45_v4, %v29_v3 }
  0x14   :  { %v38_v16 = vadd.s32 1280, %v28_v2  ;;  %v39_v17 = vadd.s32 1408, %v28_v2  ;;  %v50_v18 = vadd.s32 %v45_v4, %v30_v5  ;;  %v51_v19 = vadd.s32 %v45_v4, %v31_v6  ;;  %p4706_p9 = pnand %p4705_p8, %p4699_p5 }
  0x15   :  { %v40_v20 = vadd.s32 1536, %v28_v2  ;;  %v41_v21 = vadd.s32 1664, %v28_v2  ;;  %v52_v22 = vadd.s32 %v45_v4, %v32_v7  ;;  %v53_v23 = vadd.s32 %v45_v4, %v33_v8 }
  0x16   :  { %v42_v24 = vadd.s32 1792, %v28_v2  ;;  %v43_v25 = vadd.s32 1920, %v28_v2  ;;  %v54_v26 = vadd.s32 %v45_v4, %v34_v9  ;;  %v55_v27 = vadd.s32 %v45_v4, %v35_v10 }
  0x17   :  { %v56_v28 = vadd.s32 %v45_v4, %v36_v12  ;;  %v57_v29 = vadd.s32 %v45_v4, %v37_v13  ;;  %v67_v30 = vadd.s32 %v66_v11, %v48_v14  ;;  %v68_v31 = vadd.s32 %v66_v11, %v49_v15 }
  0x18   :  { %v58_v32 = vadd.s32 %v45_v4, %v38_v16  ;;  %v59_v33 = vadd.s32 %v45_v4, %v39_v17  ;;  %v69_v34 = vadd.s32 %v66_v11, %v50_v18  ;;  %v70_v35 = vadd.s32 %v66_v11, %v51_v19 }
  0x19   :  { %v60_v36 = vadd.s32 %v45_v4, %v40_v20  ;;  %v61_v37 = vadd.s32 %v45_v4, %v41_v21  ;;  %v71_v38 = vadd.s32 %v66_v11, %v52_v22  ;;  %v72_v39 = vadd.s32 %v66_v11, %v53_v23 }
  0x1a   :  { %v62_v40 = vadd.s32 %v45_v4, %v42_v24  ;;  %v63_v41 = vadd.s32 %v45_v4, %v43_v25  ;;  %v73_v42 = vadd.s32 %v66_v11, %v54_v26  ;;  %v74_v43 = vadd.s32 %v66_v11, %v55_v27 }
  0x1b   :  { %v75_v44 = vadd.s32 %v66_v11, %v56_v28  ;;  %v76_v45 = vadd.s32 %v66_v11, %v57_v29  ;;  %v83_v46 = vshrl.u32 %v67_v30, 16  ;;  %v84_v47 = vshrl.u32 %v68_v31, 16 }
  0x1c   :  { %v77_v48 = vadd.s32 %v66_v11, %v58_v32  ;;  %v78_v49 = vadd.s32 %v66_v11, %v59_v33  ;;  %v85_v50 = vshrl.u32 %v69_v34, 16  ;;  %v86_v51 = vshrl.u32 %v70_v35, 16 }
  0x1d   :  { %v79_v52 = vadd.s32 %v66_v11, %v60_v36  ;;  %v80_v53 = vadd.s32 %v66_v11, %v61_v37  ;;  %v87_v54 = vshrl.u32 %v71_v38, 16  ;;  %v88_v55 = vshrl.u32 %v72_v39, 16 }
  0x1e   :  { %v81_v56 = vadd.s32 %v66_v11, %v62_v40  ;;  %v82_v57 = vadd.s32 %v66_v11, %v63_v41  ;;  %v89_v58 = vshrl.u32 %v73_v42, 16  ;;  %v90_v59 = vshrl.u32 %v74_v43, 16 }
  0x1f   :  { %v91_v60 = vshrl.u32 %v75_v44, 16  ;;  %v92_v61 = vshrl.u32 %v76_v45, 16  ;;  %v99_v62 = vxor.u32 %v83_v46, %v67_v30  ;;  %v100_v63 = vxor.u32 %v84_v47, %v68_v31 }
  0x20   :  { %v93_v0 = vshrl.u32 %v77_v48, 16  ;;  %v94_v2 = vshrl.u32 %v78_v49, 16  ;;  %v101_v3 = vxor.u32 %v85_v50, %v69_v34  ;;  %v102_v4 = vxor.u32 %v86_v51, %v70_v35 }
  0x21   :  { %v95_v5 = vshrl.u32 %v79_v52, 16  ;;  %v96_v6 = vshrl.u32 %v80_v53, 16  ;;  %v103_v7 = vxor.u32 %v87_v54, %v71_v38  ;;  %v104_v8 = vxor.u32 %v88_v55, %v72_v39 }
  0x22   :  { %v97_v9 = vshrl.u32 %v81_v56, 16  ;;  %v98_v10 = vshrl.u32 %v82_v57, 16  ;;  %v105_v12 = vxor.u32 %v89_v58, %v73_v42  ;;  %v106_v13 = vxor.u32 %v90_v59, %v74_v43 }
  0x23   :  { %v107_v14 = vxor.u32 %v91_v60, %v75_v44  ;;  %v108_v11 = vxor.u32 %v92_v61, %v76_v45  ;;  %v115_v15 = vmul.u32 2246822507, %v99_v62  ;;  %v116_v16 = vmul.u32 2246822507, %v100_v63 }
  0x24   :  { %v109_v17 = vxor.u32 %v93_v0, %v77_v48  ;;  %v110_v18 = vxor.u32 %v94_v2, %v78_v49  ;;  %v117_v19 = vmul.u32 2246822507, %v101_v3  ;;  %v118_v20 = vmul.u32 2246822507, %v102_v4 }
  0x25   :  { %v111_v21 = vxor.u32 %v95_v5, %v79_v52  ;;  %v112_v22 = vxor.u32 %v96_v6, %v80_v53  ;;  %v119_v23 = vmul.u32 2246822507, %v103_v7  ;;  %v120_v24 = vmul.u32 2246822507, %v104_v8 }
  0x26   :  { %v113_v25 = vxor.u32 %v97_v9, %v81_v56  ;;  %v114_v26 = vxor.u32 %v98_v10, %v82_v57  ;;  %v121_v27 = vmul.u32 2246822507, %v105_v12  ;;  %v122_v28 = vmul.u32 2246822507, %v106_v13 }
  0x27   :  { %v123_v29 = vmul.u32 2246822507, %v107_v14  ;;  %v124_v30 = vmul.u32 2246822507, %v108_v11  ;;  %v131_v31 = vshrl.u32 %v115_v15, 13  ;;  %v132_v32 = vshrl.u32 %v116_v16, 13 }
  0x28   :  { %v125_v33 = vmul.u32 2246822507, %v109_v17  ;;  %v126_v34 = vmul.u32 2246822507, %v110_v18  ;;  %v133_v35 = vshrl.u32 %v117_v19, 13  ;;  %v134_v36 = vshrl.u32 %v118_v20, 13 }
  0x29   :  { %v127_v37 = vmul.u32 2246822507, %v111_v21  ;;  %v128_v38 = vmul.u32 2246822507, %v112_v22  ;;  %v135_v39 = vshrl.u32 %v119_v23, 13  ;;  %v136_v40 = vshrl.u32 %v120_v24, 13 }
  0x2a   :  { %v129_v41 = vmul.u32 2246822507, %v113_v25  ;;  %v130_v42 = vmul.u32 2246822507, %v114_v26  ;;  %v137_v43 = vshrl.u32 %v121_v27, 13  ;;  %v138_v44 = vshrl.u32 %v122_v28, 13 }
  0x2b   :  { %v139_v45 = vshrl.u32 %v123_v29, 13  ;;  %v140_v46 = vshrl.u32 %v124_v30, 13  ;;  %v147_v47 = vxor.u32 %v131_v31, %v115_v15  ;;  %v148_v48 = vxor.u32 %v132_v32, %v116_v16 }
  0x2c   :  { %v141_v49 = vshrl.u32 %v125_v33, 13  ;;  %v142_v50 = vshrl.u32 %v126_v34, 13  ;;  %v149_v51 = vxor.u32 %v133_v35, %v117_v19  ;;  %v150_v52 = vxor.u32 %v134_v36, %v118_v20 }
  0x2d   :  { %v143_v53 = vshrl.u32 %v127_v37, 13  ;;  %v144_v54 = vshrl.u32 %v128_v38, 13  ;;  %v151_v55 = vxor.u32 %v135_v39, %v119_v23  ;;  %v152_v56 = vxor.u32 %v136_v40, %v120_v24 }
  0x2e   :  { %v145_v57 = vshrl.u32 %v129_v41, 13  ;;  %v146_v58 = vshrl.u32 %v130_v42, 13  ;;  %v153_v59 = vxor.u32 %v137_v43, %v121_v27  ;;  %v154_v60 = vxor.u32 %v138_v44, %v122_v28 }
  0x2f   :  { %v155_v61 = vxor.u32 %v139_v45, %v123_v29  ;;  %v156_v62 = vxor.u32 %v140_v46, %v124_v30  ;;  %v163_v63 = vmul.u32 3266489909, %v147_v47  ;;  %v164_v0 = vmul.u32 3266489909, %v148_v48 }
  0x30   :  { %v157_v2 = vxor.u32 %v141_v49, %v125_v33  ;;  %v158_v3 = vxor.u32 %v142_v50, %v126_v34  ;;  %v165_v4 = vmul.u32 3266489909, %v149_v51  ;;  %v166_v5 = vmul.u32 3266489909, %v150_v52 }
  0x31   :  { %v159_v6 = vxor.u32 %v143_v53, %v127_v37  ;;  %v160_v7 = vxor.u32 %v144_v54, %v128_v38  ;;  %v167_v8 = vmul.u32 3266489909, %v151_v55  ;;  %v168_v9 = vmul.u32 3266489909, %v152_v56 }
  0x32   :  { %v161_v10 = vxor.u32 %v145_v57, %v129_v41  ;;  %v162_v12 = vxor.u32 %v146_v58, %v130_v42  ;;  %v169_v13 = vmul.u32 3266489909, %v153_v59  ;;  %v170_v14 = vmul.u32 3266489909, %v154_v60 }
  0x33   :  { %v171_v11 = vmul.u32 3266489909, %v155_v61  ;;  %v172_v15 = vmul.u32 3266489909, %v156_v62  ;;  %v179_v22 = vshrl.u32 %v163_v63, 16  ;;  %v180_v23 = vshrl.u32 %v164_v0, 16 }
  0x34   :  { %v173_v16 = vmul.u32 3266489909, %v157_v2  ;;  %v174_v17 = vmul.u32 3266489909, %v158_v3  ;;  %v181_v24 = vshrl.u32 %v165_v4, 16  ;;  %v182_v25 = vshrl.u32 %v166_v5, 16 }
  0x35   :  { %v175_v18 = vmul.u32 3266489909, %v159_v6  ;;  %v176_v19 = vmul.u32 3266489909, %v160_v7  ;;  %v183_v26 = vshrl.u32 %v167_v8, 16  ;;  %v184_v27 = vshrl.u32 %v168_v9, 16 }
  0x36   :  { %v177_v20 = vmul.u32 3266489909, %v161_v10  ;;  %v178_v21 = vmul.u32 3266489909, %v162_v12  ;;  %v185_v28 = vshrl.u32 %v169_v13, 16  ;;  %v186_v29 = vshrl.u32 %v170_v14, 16 }
  0x37   :  { %v187_v30 = vshrl.u32 %v171_v11, 16  ;;  %v188_v31 = vshrl.u32 %v172_v15, 16  ;;  %v189_v32 = vshrl.u32 %v173_v16, 16  ;;  %v190_v33 = vshrl.u32 %v174_v17, 16 }
  0x38   :  { %v191_v34 = vshrl.u32 %v175_v18, 16  ;;  %v192_v35 = vshrl.u32 %v176_v19, 16  ;;  %v193_v36 = vshrl.u32 %v177_v20, 16  ;;  %v194_v37 = vshrl.u32 %v178_v21, 16 }
  0x39   :  { %v4755_v38 = vxor.u32 %v179_v22, %v163_v63  ;;  %v4757_v39 = vxor.u32 %v180_v23, %v164_v0  ;;  %v4759_v40 = vxor.u32 %v181_v24, %v165_v4  ;;  %v4761_v41 = vxor.u32 %v182_v25, %v166_v5 }
  0x3a   :  { %v4763_v42 = vxor.u32 %v183_v26, %v167_v8  ;;  %v4765_v43 = vxor.u32 %v184_v27, %v168_v9  ;;  %v4767_v44 = vxor.u32 %v185_v28, %v169_v13  ;;  %v4769_v45 = vxor.u32 %v186_v29, %v170_v14 }
  0x3b   :  { %v4771_v46 = vxor.u32 %v187_v30, %v171_v11  ;;  %v4773_v47 = vxor.u32 %v188_v31, %v172_v15  ;;  %v4775_v48 = vxor.u32 %v189_v32, %v173_v16  ;;  %v4777_v49 = vxor.u32 %v190_v33, %v174_v17 }
  0x3c   :  { %v211_v50 = vxor.u32 1013904242, %v4755_v38  ;;  %v212_v51 = vxor.u32 1013904242, %v4757_v39  ;;  %v4781_v52 = vxor.u32 %v191_v34, %v175_v18  ;;  %v4783_v53 = vxor.u32 %v192_v35, %v176_v19 }
  0x3d   :  { %v213_v54 = vxor.u32 1013904242, %v4759_v40  ;;  %v214_v55 = vxor.u32 1013904242, %v4761_v41  ;;  %v4787_v56 = vxor.u32 %v193_v36, %v177_v20  ;;  %v215_v57 = vxor.u32 1013904242, %v4763_v42 }
  0x3e   :  { %v216_v58 = vxor.u32 1013904242, %v4765_v43  ;;  %v217_v59 = vxor.u32 1013904242, %v4767_v44  ;;  %v4792_v60 = vxor.u32 %v194_v37, %v178_v21  ;;  %v218_v61 = vxor.u32 1013904242, %v4769_v45 }
  0x3f   :  { %v219_v62 = vxor.u32 1013904242, %v4771_v46  ;;  %v220_v63 = vxor.u32 1013904242, %v4773_v47  ;;  %v221_v0 = vxor.u32 1013904242, %v4775_v48 }
  0x40   :  { %v222_v2 = vxor.u32 1013904242, %v4777_v49  ;;  %v227_v3 = vshrl.u32 %v211_v50, 16  ;;  %v228_v4 = vshrl.u32 %v212_v51, 16  ;;  %v223_v5 = vxor.u32 1013904242, %v4781_v52 }
  0x41   :  { %v224_v6 = vxor.u32 1013904242, %v4783_v53  ;;  %v229_v7 = vshrl.u32 %v213_v54, 16  ;;  %v230_v8 = vshrl.u32 %v214_v55, 16  ;;  %v225_v9 = vxor.u32 1013904242, %v4787_v56 }
  0x42   :  { %v226_v10 = vxor.u32 1013904242, %v4792_v60  ;;  %v231_v12 = vshrl.u32 %v215_v57, 16  ;;  %v232_v13 = vshrl.u32 %v216_v58, 16  ;;  %v233_v14 = vshrl.u32 %v217_v59, 16 }
  0x43   :  { %v234_v11 = vshrl.u32 %v218_v61, 16  ;;  %v235_v15 = vshrl.u32 %v219_v62, 16  ;;  %v236_v16 = vshrl.u32 %v220_v63, 16  ;;  %v237_v17 = vshrl.u32 %v221_v0, 16 }
  0x44   :  { %v238_v18 = vshrl.u32 %v222_v2, 16  ;;  %v243_v19 = vxor.u32 %v227_v3, %v211_v50  ;;  %v244_v20 = vxor.u32 %v228_v4, %v212_v51  ;;  %v239_v21 = vshrl.u32 %v223_v5, 16 }
  0x45   :  { %v240_v22 = vshrl.u32 %v224_v6, 16  ;;  %v245_v23 = vxor.u32 %v229_v7, %v213_v54  ;;  %v246_v24 = vxor.u32 %v230_v8, %v214_v55  ;;  %v241_v25 = vshrl.u32 %v225_v9, 16 }
  0x46   :  { %v242_v26 = vshrl.u32 %v226_v10, 16  ;;  %v247_v27 = vxor.u32 %v231_v12, %v215_v57  ;;  %v248_v28 = vxor.u32 %v232_v13, %v216_v58  ;;  %v249_v29 = vxor.u32 %v233_v14, %v217_v59 }
  0x47   :  { %v250_v30 = vxor.u32 %v234_v11, %v218_v61  ;;  %v251_v31 = vxor.u32 %v235_v15, %v219_v62  ;;  %v252_v32 = vxor.u32 %v236_v16, %v220_v63  ;;  %v253_v33 = vxor.u32 %v237_v17, %v221_v0 }
  0x48   :  { %v254_v34 = vxor.u32 %v238_v18, %v222_v2  ;;  %v259_v35 = vmul.u32 2246822507, %v243_v19  ;;  %v260_v36 = vmul.u32 2246822507, %v244_v20  ;;  %v255_v37 = vxor.u32 %v239_v21, %v223_v5 }
  0x49   :  { %v256_v1 = vxor.u32 %v240_v22, %v224_v6  ;;  %v261_v50 = vmul.u32 2246822507, %v245_v23  ;;  %v262_v51 = vmul.u32 2246822507, %v246_v24  ;;  %v257_v3 = vxor.u32 %v241_v25, %v225_v9 }
  0x4a   :  { %v263_v4 = vmul.u32 2246822507, %v247_v27  ;;  %v264_v54 = vmul.u32 2246822507, %v248_v28  ;;  %v355_v55 = vxor.u32 461845907, %v4755_v38  ;;  %v258_v7 = vxor.u32 %v242_v26, %v226_v10 }
  0x4b   :  { %v265_v57 = vmul.u32 2246822507, %v249_v29  ;;  %v266_v58 = vmul.u32 2246822507, %v250_v30  ;;  %v356_v59 = vxor.u32 461845907, %v4757_v39 }
  0x4c   :  { %v267_v61 = vmul.u32 2246822507, %v251_v31  ;;  %v268_v62 = vmul.u32 2246822507, %v252_v32  ;;  %v275_v63 = vshrl.u32 %v259_v35, 13  ;;  %v276_v0 = vshrl.u32 %v260_v36, 13 }
  0x4d   :  { %v269_v2 = vmul.u32 2246822507, %v253_v33  ;;  %v270_v8 = vmul.u32 2246822507, %v254_v34  ;;  %v277_v5 = vshrl.u32 %v261_v50, 13  ;;  %v278_v6 = vshrl.u32 %v262_v51, 13 }
  0x4e   :  { %v271_v12 = vmul.u32 2246822507, %v255_v37  ;;  %v272_v13 = vmul.u32 2246822507, %v256_v1  ;;  %v279_v9 = vshrl.u32 %v263_v4, 13  ;;  %v280_v14 = vshrl.u32 %v264_v54, 13 }
  0x4f   :  { %v273_v11 = vmul.u32 2246822507, %v257_v3  ;;  %v274_v15 = vmul.u32 2246822507, %v258_v7  ;;  %v281_v16 = vshrl.u32 %v265_v57, 13  ;;  %v282_v10 = vshrl.u32 %v266_v58, 13 }
  0x50   :  { %v283_v17 = vshrl.u32 %v267_v61, 13  ;;  %v284_v18 = vshrl.u32 %v268_v62, 13  ;;  %v291_v19 = vxor.u32 %v275_v63, %v259_v35  ;;  %v292_v20 = vxor.u32 %v276_v0, %v260_v36 }
  0x51   :  { %v285_v21 = vshrl.u32 %v269_v2, 13  ;;  %v286_v22 = vshrl.u32 %v270_v8, 13  ;;  %v293_v23 = vxor.u32 %v277_v5, %v261_v50  ;;  %v294_v24 = vxor.u32 %v278_v6, %v262_v51 }
  0x52   :  { %v287_v25 = vshrl.u32 %v271_v12, 13  ;;  %v288_v26 = vshrl.u32 %v272_v13, 13  ;;  %v295_v27 = vxor.u32 %v279_v9, %v263_v4  ;;  %v296_v28 = vxor.u32 %v280_v14, %v264_v54 }
  0x53   :  { %v289_v29 = vshrl.u32 %v273_v11, 13  ;;  %v290_v1 = vshrl.u32 %v274_v15, 13  ;;  %v297_v30 = vxor.u32 %v281_v16, %v265_v57  ;;  %v298_v31 = vxor.u32 %v282_v10, %v266_v58 }
  0x54   :  { %v299_v32 = vxor.u32 %v283_v17, %v267_v61  ;;  %v300_v33 = vxor.u32 %v284_v18, %v268_v62  ;;  %v307_v34 = vmul.u32 3266489909, %v291_v19  ;;  %v308_v37 = vmul.u32 3266489909, %v292_v20 }
  0x55   :  { %v301_v3 = vxor.u32 %v285_v21, %v269_v2  ;;  %v302_v7 = vxor.u32 %v286_v22, %v270_v8  ;;  %v309_v35 = vmul.u32 3266489909, %v293_v23  ;;  %v310_v36 = vmul.u32 3266489909, %v294_v24 }
  0x56   :  { %v303_v63 = vxor.u32 %v287_v25, %v271_v12  ;;  %v304_v0 = vxor.u32 %v288_v26, %v272_v13  ;;  %v311_v50 = vmul.u32 3266489909, %v295_v27  ;;  %v312_v51 = vmul.u32 3266489909, %v296_v28 }
  0x57   :  { %v305_v5 = vxor.u32 %v289_v29, %v273_v11  ;;  %v306_v6 = vxor.u32 %v290_v1, %v274_v15  ;;  %v313_v4 = vmul.u32 3266489909, %v297_v30  ;;  %v314_v54 = vmul.u32 3266489909, %v298_v31 }
  0x58   :  { %v315_v9 = vmul.u32 3266489909, %v299_v32  ;;  %v316_v14 = vmul.u32 3266489909, %v300_v33  ;;  %v357_v57 = vxor.u32 461845907, %v4759_v40 }
  0x59   :  { %v317_v58 = vmul.u32 3266489909, %v301_v3  ;;  %v318_v61 = vmul.u32 3266489909, %v302_v7  ;;  %v358_v62 = vxor.u32 461845907, %v4761_v41 }
  0x5a   :  { %v319_v2 = vmul.u32 3266489909, %v303_v63  ;;  %v320_v8 = vmul.u32 3266489909, %v304_v0  ;;  %v323_v16 = vshrl.u32 %v307_v34, 16  ;;  %v324_v13 = vshrl.u32 %v308_v37, 16 }
  0x5b   :  { %v321_v10 = vmul.u32 3266489909, %v305_v5  ;;  %v322_v12 = vmul.u32 3266489909, %v306_v6  ;;  %v325_v17 = vshrl.u32 %v309_v35, 16  ;;  %v326_v18 = vshrl.u32 %v310_v36, 16 }
  0x5c   :  { %v327_v11 = vshrl.u32 %v311_v50, 16  ;;  %v328_v15 = vshrl.u32 %v312_v51, 16  ;;  %v329_v19 = vshrl.u32 %v313_v4, 16  ;;  %v330_v20 = vshrl.u32 %v314_v54, 16 }
  0x5d   :  { %v331_v21 = vshrl.u32 %v315_v9, 16  ;;  %v332_v22 = vshrl.u32 %v316_v14, 16  ;;  %v333_v23 = vshrl.u32 %v317_v58, 16  ;;  %v334_v24 = vshrl.u32 %v318_v61, 16 }
  0x5e   :  { %v335_v25 = vshrl.u32 %v319_v2, 16  ;;  %v336_v26 = vshrl.u32 %v320_v8, 16  ;;  %v4807_v27 = vxor.u32 %v323_v16, %v307_v34  ;;  %v337_v28 = vshrl.u32 %v321_v10, 16 }
  0x5f   :  { %v338_v29 = vshrl.u32 %v322_v12, 16  ;;  %v4809_v1 = vxor.u32 %v324_v13, %v308_v37  ;;  %v4811_v30 = vxor.u32 %v325_v17, %v309_v35  ;;  %v4813_v31 = vxor.u32 %v326_v18, %v310_v36 }
  0x60   :  { %v4815_v32 = vxor.u32 %v327_v11, %v311_v50  ;;  %v4817_v33 = vxor.u32 %v328_v15, %v312_v51  ;;  %v4819_v3 = vxor.u32 %v329_v19, %v313_v4  ;;  %v4821_v7 = vxor.u32 %v330_v20, %v314_v54 }
  0x61   :  { %v4823_v63 = vxor.u32 %v331_v21, %v315_v9  ;;  %v4825_v34 = vxor.u32 %v332_v22, %v316_v14  ;;  %v4827_v0 = vxor.u32 %v333_v23, %v317_v58  ;;  %v4829_v37 = vxor.u32 %v334_v24, %v318_v61 }
  0x62   :  { %v4831_v35 = vxor.u32 %v335_v25, %v319_v2  ;;  %v4833_v36 = vxor.u32 %v336_v26, %v320_v8  ;;  %v359_v50 = vxor.u32 461845907, %v4763_v42  ;;  %v4836_v51 = vxor.u32 %v337_v28, %v321_v10 }
  0x63   :  { %v360_v5 = vxor.u32 461845907, %v4765_v43  ;;  %v361_v6 = vxor.u32 461845907, %v4767_v44  ;;  %v362_v4 = vxor.u32 461845907, %v4769_v45  ;;  %v4841_v54 = vxor.u32 %v338_v29, %v322_v12 }
  0x64   :  { %v363_v9 = vxor.u32 461845907, %v4771_v46  ;;  %v364_v14 = vxor.u32 461845907, %v4773_v47  ;;  %v371_v58 = vshrl.u32 %v355_v55, 16  ;;  %v372_v43 = vshrl.u32 %v356_v59, 16 }
  0x65   :  { %v365_v61 = vxor.u32 461845907, %v4775_v48  ;;  %v366_v42 = vxor.u32 461845907, %v4777_v49  ;;  %v373_v44 = vshrl.u32 %v357_v57, 16  ;;  %v374_v46 = vshrl.u32 %v358_v62, 16 }
  0x66   :  { %v367_v45 = vxor.u32 461845907, %v4781_v52  ;;  %v368_v2 = vxor.u32 461845907, %v4783_v53  ;;  %v375_v47 = vshrl.u32 %v359_v50, 16  ;;  %v376_v16 = vshrl.u32 %v360_v5, 16 }
  0x67   :  { %v369_v8 = vxor.u32 461845907, %v4787_v56  ;;  %v370_v48 = vxor.u32 461845907, %v4792_v60  ;;  %v377_v49 = vshrl.u32 %v361_v6, 16  ;;  %v378_v10 = vshrl.u32 %v362_v4, 16 }
  0x68   :  { %v379_v12 = vshrl.u32 %v363_v9, 16  ;;  %v380_v13 = vshrl.u32 %v364_v14, 16  ;;  %v387_v17 = vxor.u32 %v371_v58, %v355_v55  ;;  %v381_v18 = vshrl.u32 %v365_v61, 16 }
  0x69   :  { %v382_v52 = vshrl.u32 %v366_v42, 16  ;;  %v388_v53 = vxor.u32 %v372_v43, %v356_v59  ;;  %v389_v11 = vxor.u32 %v373_v44, %v357_v57  ;;  %v383_v15 = vshrl.u32 %v367_v45, 16 }
  0x6a   :  { %v384_v56 = vshrl.u32 %v368_v2, 16  ;;  %v390_v60 = vxor.u32 %v374_v46, %v358_v62  ;;  %v391_v19 = vxor.u32 %v375_v47, %v359_v50  ;;  %v385_v20 = vshrl.u32 %v369_v8, 16 }
  0x6b   :  { %v386_v21 = vshrl.u32 %v370_v48, 16  ;;  %v392_v22 = vxor.u32 %v376_v16, %v360_v5  ;;  %v393_v23 = vxor.u32 %v377_v49, %v361_v6  ;;  %v394_v38 = vxor.u32 %v378_v10, %v362_v4 }
  0x6c   :  { %v395_v55 = vxor.u32 %v379_v12, %v363_v9  ;;  %v396_v24 = vxor.u32 %v380_v13, %v364_v14  ;;  %v403_v25 = vmul.u32 2246822507, %v387_v17  ;;  %v397_v26 = vxor.u32 %v381_v18, %v365_v61 }
  0x6d   :  { %v398_v39 = vxor.u32 %v382_v52, %v366_v42  ;;  %v404_v59 = vmul.u32 2246822507, %v388_v53  ;;  %v405_v28 = vmul.u32 2246822507, %v389_v11  ;;  %v399_v40 = vxor.u32 %v383_v15, %v367_v45 }
  0x6e   :  { %v400_v57 = vxor.u32 %v384_v56, %v368_v2  ;;  %v406_v29 = vmul.u32 2246822507, %v390_v60  ;;  %v407_v58 = vmul.u32 2246822507, %v391_v19  ;;  %v401_v43 = vxor.u32 %v385_v20, %v369_v8 }
  0x6f   :  { %v402_v41 = vxor.u32 %v386_v21, %v370_v48  ;;  %v408_v62 = vmul.u32 2246822507, %v392_v22  ;;  %v409_v50 = vmul.u32 2246822507, %v393_v23  ;;  %v419_v5 = vshrl.u32 %v403_v25, 13 }
  0x70   :  { %v410_v44 = vmul.u32 2246822507, %v394_v38  ;;  %v411_v46 = vmul.u32 2246822507, %v395_v55  ;;  %v499_v6 = vshrl.u32 %v4807_v27, 9  ;;  %v420_v14 = vshrl.u32 %v404_v59, 13 }
  0x71   :  { %v412_v4 = vmul.u32 2246822507, %v396_v24  ;;  %v413_v9 = vmul.u32 2246822507, %v397_v26  ;;  %v421_v61 = vshrl.u32 %v405_v28, 13  ;;  %v422_v16 = vshrl.u32 %v406_v29, 13 }
  0x72   :  { %v414_v42 = vmul.u32 2246822507, %v398_v39  ;;  %v415_v47 = vmul.u32 2246822507, %v399_v40  ;;  %v423_v45 = vshrl.u32 %v407_v58, 13  ;;  %v424_v10 = vshrl.u32 %v408_v62, 13 }
  0x73   :  { %v416_v2 = vmul.u32 2246822507, %v400_v57  ;;  %v417_v49 = vmul.u32 2246822507, %v401_v43  ;;  %v425_v8 = vshrl.u32 %v409_v50, 13  ;;  %v426_v12 = vshrl.u32 %v410_v44, 13 }
  0x74   :  { %v418_v48 = vmul.u32 2246822507, %v402_v41  ;;  %v427_v13 = vshrl.u32 %v411_v46, 13  ;;  %v4868_v17 = vxor.u32 %v419_v5, %v403_v25  ;;  %v428_v18 = vshrl.u32 %v412_v4, 13 }
  0x75   :  { %v429_v52 = vshrl.u32 %v413_v9, 13  ;;  %v436_v53 = vxor.u32 %v420_v14, %v404_v59  ;;  %v437_v11 = vxor.u32 %v421_v61, %v405_v28  ;;  %v430_v15 = vshrl.u32 %v414_v42, 13 }
  0x76   :  { %v431_v56 = vshrl.u32 %v415_v47, 13  ;;  %v438_v60 = vxor.u32 %v422_v16, %v406_v29  ;;  %v439_v19 = vxor.u32 %v423_v45, %v407_v58  ;;  %v432_v20 = vshrl.u32 %v416_v2, 13 }
  0x77   :  { %v433_v21 = vshrl.u32 %v417_v49, 13  ;;  %v440_v22 = vxor.u32 %v424_v10, %v408_v62  ;;  %v441_v23 = vxor.u32 %v425_v8, %v409_v50  ;;  %v434_v38 = vshrl.u32 %v418_v48, 13 }
  0x78   :  { %v442_v55 = vxor.u32 %v426_v12, %v410_v44  ;;  %v443_v24 = vxor.u32 %v427_v13, %v411_v46  ;;  %v451_v26 = vmul.u32 3266489909, %v4868_v17  ;;  %v444_v39 = vxor.u32 %v428_v18, %v412_v4 }
  0x79   :  { %v445_v25 = vxor.u32 %v429_v52, %v413_v9  ;;  %v452_v40 = vmul.u32 3266489909, %v436_v53  ;;  %v453_v57 = vmul.u32 3266489909, %v437_v11  ;;  %v446_v43 = vxor.u32 %v430_v15, %v414_v42 }
  0x7a   :  { %v447_v59 = vxor.u32 %v431_v56, %v415_v47  ;;  %v454_v28 = vmul.u32 3266489909, %v438_v60  ;;  %v455_v41 = vmul.u32 3266489909, %v439_v19  ;;  %v448_v5 = vxor.u32 %v432_v20, %v416_v2 }
  0x7b   :  { %v449_v29 = vxor.u32 %v433_v21, %v417_v49  ;;  %v456_v58 = vmul.u32 3266489909, %v440_v22  ;;  %v457_v14 = vmul.u32 3266489909, %v441_v23  ;;  %v450_v61 = vxor.u32 %v434_v38, %v418_v48 }
  0x7c   :  { %v458_v62 = vmul.u32 3266489909, %v442_v55  ;;  %v459_v50 = vmul.u32 3266489909, %v443_v24  ;;  %v500_v44 = vshrl.u32 %v4809_v1, 9  ;;  %v501_v4 = vshrl.u32 %v4811_v30, 9 }
  0x7d   :  { %v460_v46 = vmul.u32 3266489909, %v444_v39  ;;  %v461_v16 = vmul.u32 3266489909, %v445_v25  ;;  %v502_v9 = vshrl.u32 %v4813_v31, 9  ;;  %v503_v47 = vshrl.u32 %v4815_v32, 9 }
  0x7e   :  { %v462_v45 = vmul.u32 3266489909, %v446_v43  ;;  %v463_v42 = vmul.u32 3266489909, %v447_v59  ;;  %v504_v2 = vshrl.u32 %v4817_v33, 9  ;;  %v505_v8 = vshrl.u32 %v4819_v3, 9 }
  0x7f   :  { %v464_v49 = vmul.u32 3266489909, %v448_v5  ;;  %v465_v10 = vmul.u32 3266489909, %v449_v29  ;;  %v506_v48 = vshrl.u32 %v4821_v7, 9  ;;  %v467_v1 = vshrl.u32 %v451_v26, 16 }
  0x80   :  { %v466_v12 = vmul.u32 3266489909, %v450_v61  ;;  %v468_v13 = vshrl.u32 %v452_v40, 16  ;;  %v469_v17 = vshrl.u32 %v453_v57, 16  ;;  %v470_v18 = vshrl.u32 %v454_v28, 16 }
  0x81   :  { %v471_v30 = vshrl.u32 %v455_v41, 16  ;;  %v472_v52 = vshrl.u32 %v456_v58, 16  ;;  %v473_v31 = vshrl.u32 %v457_v14, 16  ;;  %v474_v53 = vshrl.u32 %v458_v62, 16 }
  0x82   :  { %v475_v11 = vshrl.u32 %v459_v50, 16  ;;  %v476_v15 = vshrl.u32 %v460_v46, 16  ;;  %v477_v32 = vshrl.u32 %v461_v16, 16  ;;  %v478_v56 = vshrl.u32 %v462_v45, 16 }
  0x83   :  { %v479_v33 = vshrl.u32 %v463_v42, 16  ;;  %v480_v60 = vshrl.u32 %v464_v49, 16  ;;  %v481_v19 = vshrl.u32 %v465_v10, 16  ;;  %v482_v20 = vshrl.u32 %v466_v12, 16 }
  0x84   :  { %v483_v3 = vxor.u32 %v467_v1, %v451_v26  ;;  %v4878_v21 = vxor.u32 %v468_v13, %v452_v40  ;;  %v4880_v7 = vxor.u32 %v469_v17, %v453_v57  ;;  %v4882_v22 = vxor.u32 %v470_v18, %v454_v28 }
  0x85   :  { %v4884_v23 = vxor.u32 %v471_v30, %v455_v41  ;;  %v4886_v38 = vxor.u32 %v472_v52, %v456_v58  ;;  %v4888_v55 = vxor.u32 %v473_v31, %v457_v14  ;;  %v4890_v24 = vxor.u32 %v474_v53, %v458_v62 }
  0x86   :  { %v4892_v39 = vxor.u32 %v475_v11, %v459_v50  ;;  %v4894_v25 = vxor.u32 %v476_v15, %v460_v46  ;;  %v4896_v43 = vxor.u32 %v477_v32, %v461_v16  ;;  %v4898_v26 = vxor.u32 %v478_v56, %v462_v45 }
  0x87   :  { %v4900_v40 = vxor.u32 %v479_v33, %v463_v42  ;;  %v4902_v57 = vxor.u32 %v480_v60, %v464_v49  ;;  %v4904_v59 = vxor.u32 %v481_v19, %v465_v10  ;;  %v4906_v28 = vxor.u32 %v482_v20, %v466_v12 }
  0x88   :  { %v507_v41 = vshrl.u32 %v4823_v63, 9  ;;  %v508_v5 = vshrl.u32 %v4825_v34, 9  ;;  %v509_v29 = vshrl.u32 %v4827_v0, 9  ;;  %v510_v58 = vshrl.u32 %v4829_v37, 9 }
  0x89   :  { %v511_v14 = vshrl.u32 %v4831_v35, 9  ;;  %v512_v61 = vshrl.u32 %v4833_v36, 9  ;;  %v513_v62 = vshrl.u32 %v4836_v51, 9  ;;  %v514_v50 = vshrl.u32 %v4841_v54, 9 }
  0x8a   :  { %v515_v46 = vcvt.s32.f32 %v499_v6  ;;  %v516_v16 = vcvt.s32.f32 %v500_v44  ;;  %v517_v45 = vcvt.s32.f32 %v501_v4  ;;  %v518_v63 = vcvt.s32.f32 %v502_v9 }
  0x8b   :  { %v519_v42 = vcvt.s32.f32 %v503_v47  ;;  %v520_v34 = vcvt.s32.f32 %v504_v2  ;;  %v521_v49 = vcvt.s32.f32 %v505_v8  ;;  %v522_v0 = vcvt.s32.f32 %v506_v48 }
  0x8c   :  { %v523_v10 = vcvt.s32.f32 %v507_v41  ;;  %v524_v37 = vcvt.s32.f32 %v508_v5  ;;  %v547_v12 = vshrl.u32 %v483_v3, 9  ;;  %v525_v35 = vcvt.s32.f32 %v509_v29 }
  0x8d   :  { %v526_v1 = vcvt.s32.f32 %v510_v58  ;;  %v527_v36 = vcvt.s32.f32 %v511_v14  ;;  %v528_v13 = vcvt.s32.f32 %v512_v61  ;;  %v529_v51 = vcvt.s32.f32 %v513_v62 }
  0x8e   :  { %v530_v17 = vcvt.s32.f32 %v514_v50  ;;  %v531_v54 = vmul.f32 1.1920929e-07, %v515_v46  ;;  %v532_v18 = vmul.f32 1.1920929e-07, %v516_v16  ;;  %v4918_v27 = vmul.f32 1.1920929e-07, %v517_v45 }
  0x8f   :  { %v4920_v6 = vmul.f32 1.1920929e-07, %v518_v63  ;;  %v4922_v44 = vmul.f32 1.1920929e-07, %v519_v42  ;;  %v4924_v4 = vmul.f32 1.1920929e-07, %v520_v34  ;;  %v4926_v9 = vmul.f32 1.1920929e-07, %v521_v49 }
  0x90   :  { %v4928_v47 = vmul.f32 1.1920929e-07, %v522_v0  ;;  %v4930_v2 = vmul.f32 1.1920929e-07, %v523_v10  ;;  %v563_v8 = vcvt.s32.f32 %v547_v12  ;;  %v4932_v48 = vmul.f32 1.1920929e-07, %v524_v37 }
  0x91   :  { %v4934_v30 = vmul.f32 1.1920929e-07, %v525_v35  ;;  %v4936_v52 = vmul.f32 1.1920929e-07, %v526_v1  ;;  %v4938_v31 = vmul.f32 1.1920929e-07, %v527_v36  ;;  %v4940_v53 = vmul.f32 1.1920929e-07, %v528_v13 }
  0x92   :  { %v4942_v11 = vmul.f32 1.1920929e-07, %v529_v51  ;;  %v4944_v15 = vmul.f32 1.1920929e-07, %v530_v17  ;;  %v548_v32 = vshrl.u32 %v4878_v21, 9  ;;  %v549_v56 = vshrl.u32 %v4880_v7, 9 }
  0x93   :  { %v550_v33 = vshrl.u32 %v4882_v22, 9  ;;  %v551_v60 = vshrl.u32 %v4884_v23, 9  ;;  %v552_v19 = vshrl.u32 %v4886_v38, 9  ;;  %v553_v20 = vshrl.u32 %v4888_v55, 9 }
  0x94   :  { %v554_v3 = vshrl.u32 %v4890_v24, 9  ;;  %v555_v41 = vshrl.u32 %v4892_v39, 9  ;;  %v579_v5 = vmul.f32 1.1920929e-07, %v563_v8  ;;  %v556_v29 = vshrl.u32 %v4894_v25, 9 }
  0x95   :  { %v557_v58 = vshrl.u32 %v4896_v43, 9  ;;  %v558_v21 = vshrl.u32 %v4898_v26, 9  ;;  %v559_v7 = vshrl.u32 %v4900_v40, 9  ;;  %v560_v22 = vshrl.u32 %v4902_v57, 9 }
  0x96   :  { %v561_v23 = vshrl.u32 %v4904_v59, 9  ;;  %v562_v38 = vshrl.u32 %v4906_v28, 9  ;;  %v564_v55 = vcvt.s32.f32 %v548_v32  ;;  %v565_v14 = vcvt.s32.f32 %v549_v56 }
  0x97   :  { %v566_v24 = vcvt.s32.f32 %v550_v33  ;;  %v567_v61 = vcvt.s32.f32 %v551_v60  ;;  %v568_v39 = vcvt.s32.f32 %v552_v19  ;;  %v569_v62 = vcvt.s32.f32 %v553_v20 }
  0x98   :  { %v570_v50 = vcvt.s32.f32 %v554_v3  ;;  %v595_v25 = vsub.f32 1.0, %v531_v54  ;;  %v4961_v46 = vmul.f32 6.2831855, %v579_v5  ;;  %v571_v43 = vcvt.s32.f32 %v555_v41 }
  0x99   :  { %v572_v26 = vcvt.s32.f32 %v556_v29  ;;  %v573_v16 = vcvt.s32.f32 %v557_v58  ;;  %v596_v40 = vsub.f32 1.0, %v532_v18  ;;  %v574_v45 = vcvt.s32.f32 %v558_v21 }
  0x9a   :  { %7497 = vst [vmem:[#allocation10_spill] sm:$0xff] %v4961_v46  ;;  %v575_v57 = vcvt.s32.f32 %v559_v7  ;;  %v576_v63 = vcvt.s32.f32 %v560_v22  ;;  %v597_v59 = vsub.f32 1.0, %v4918_v27  ;;  %v577_v28 = vcvt.s32.f32 %v561_v23 }
  0x9b   :  { %v578_v42 = vcvt.s32.f32 %v562_v38  ;;  %v580_v34 = vmul.f32 1.1920929e-07, %v564_v55  ;;  %v598_v49 = vsub.f32 1.0, %v4920_v6  ;;  %v581_v0 = vmul.f32 1.1920929e-07, %v565_v14 }
  0x9c   :  { %v599_v10 = vsub.f32 1.0, %v4922_v44  ;;  %4550 = vlog2.f32 %v595_v25  ;;  %v806_v37 = vand.u32 2139095040, %v4961_v46  ;;  %v582_v12 = vmul.f32 1.1920929e-07, %v566_v24 }
  0x9d   :  { %v583_v35 = vmul.f32 1.1920929e-07, %v567_v61  ;;  %v600_v1 = vsub.f32 1.0, %v4924_v4  ;;  %4552 = vlog2.f32 %v596_v40  ;;  %v584_v36 = vmul.f32 1.1920929e-07, %v568_v39 }
  0x9e   :  { %v585_v13 = vmul.f32 1.1920929e-07, %v569_v62  ;;  %v601_v51 = vsub.f32 1.0, %v4926_v9  ;;  %4554 = vlog2.f32 %v597_v59  ;;  %v586_v17 = vmul.f32 1.1920929e-07, %v570_v50 }
  0x9f   :  { %v587_v54 = vmul.f32 1.1920929e-07, %v571_v43  ;;  %v602_v18 = vsub.f32 1.0, %v4928_v47  ;;  %4556 = vlog2.f32 %v598_v49  ;;  %v588_v27 = vmul.f32 1.1920929e-07, %v572_v26 }
  0xa0   :  { %v603_v6 = vsub.f32 1.0, %v4930_v2  ;;  %4558 = vlog2.f32 %v599_v10  ;;  %v807_v44 = vshrl.u32 %v806_v37, 23  ;;  %v589_v8 = vmul.f32 1.1920929e-07, %v573_v16 }
  0xa1   :  { %v590_v32 = vmul.f32 1.1920929e-07, %v574_v45  ;;  %v604_v4 = vsub.f32 1.0, %v4932_v48  ;;  %4560 = vlog2.f32 %v600_v1  ;;  %v591_v56 = vmul.f32 1.1920929e-07, %v575_v57 }
  0xa2   :  { %v592_v33 = vmul.f32 1.1920929e-07, %v576_v63  ;;  %v593_v60 = vmul.f32 1.1920929e-07, %v577_v28  ;;  %4562 = vlog2.f32 %v601_v51  ;;  %v594_v9 = vmul.f32 1.1920929e-07, %v578_v42 }
  0xa3   :  { %v605_v19 = vsub.f32 1.0, %v4934_v30  ;;  %v606_v47 = vsub.f32 1.0, %v4936_v52  ;;  %4564 = vlog2.f32 %v602_v18  ;;  %v607_v20 = vsub.f32 1.0, %v4938_v31 }
  0xa4   :  { %4566 = vlog2.f32 %v603_v6  ;;  %v4975_v2 = vmul.f32 6.2831855, %v580_v34  ;;  %v4349_v3 = vadd.s32 4294967169, %v807_v44  ;;  %v608_v41 = vsub.f32 1.0, %v4940_v53 }
  0xa5   :  { %v609_v48 = vsub.f32 1.0, %v4942_v11  ;;  %v610_v5 = vsub.f32 1.0, %v4944_v15  ;;  %4568 = vlog2.f32 %v604_v4  ;;  %v4980_v29 = vmul.f32 6.2831855, %v581_v0 }
  0xa6   :  { %7498 = vst [vmem:[#allocation11_spill] sm:$0xff] %v4975_v2  ;;  %v4982_v58 = vmul.f32 6.2831855, %v582_v12  ;;  %v4984_v30 = vmul.f32 6.2831855, %v583_v35  ;;  %4570 = vlog2.f32 %v605_v19  ;;  %v813_v53 = vadd.s32 1, %v4349_v3 }
  0xa7   :  { %7499 = vst [vmem:[#allocation12_spill] sm:$0xff] %v4980_v29  ;;  %v4986_v52 = vmul.f32 6.2831855, %v584_v36  ;;  %v4988_v31 = vmul.f32 6.2831855, %v585_v13  ;;  %4572 = vlog2.f32 %v606_v47  ;;  %v909_v15 = vand.u32 2139095040, %v4975_v2 }
  0xa8   :  { %7500 = vst [vmem:[#allocation13_spill] sm:$0xff] %v4982_v58  ;;  %7501 = vst [vmem:[#allocation14_spill] sm:$0xff] %v4984_v30  ;;  %v7349_v21 = vand.u32 2147483647, %v4961_v46  ;;  %v7348_v11 = vand.u32 2147483647, %v4975_v2  ;;  %4574 = vlog2.f32 %v607_v20 }
  0xa9   :  { %7502 = vst [vmem:[#allocation15_spill] sm:$0xff] %v4986_v52  ;;  %7503 = vst [vmem:[#allocation16_spill] sm:$0xff] %v4988_v31  ;;  %v4551_v7 = vpop.eup %4550  ;;  %v4993_v22 = vmul.f32 6.2831855, %v586_v17  ;;  %v4995_v23 = vmul.f32 6.2831855, %v587_v54  ;;  %4576 = vlog2.f32 %v608_v41 }
  0xaa   :  { %v4997_v38 = vmul.f32 6.2831855, %v588_v27  ;;  %v4553_v55 = vpop.eup %4552  ;;  %v4999_v14 = vmul.f32 6.2831855, %v589_v8  ;;  %v5001_v24 = vmul.f32 6.2831855, %v590_v32  ;;  %4578 = vlog2.f32 %v609_v48 }
  0xab   :  { %7504 = vst [vmem:[#allocation17_spill] sm:$0xff] %v4993_v22  ;;  %7505 = vst [vmem:[#allocation18_spill] sm:$0xff] %v4995_v23  ;;  %v5003_v61 = vmul.f32 6.2831855, %v591_v56  ;;  %v4555_v39 = vpop.eup %4554  ;;  %v5005_v62 = vmul.f32 6.2831855, %v592_v33  ;;  %4580 = vlog2.f32 %v610_v5 }
  0xac   :  { %7506 = vst [vmem:[#allocation19_spill] sm:$0xff] %v4997_v38  ;;  %7507 = vst [vmem:[#allocation20_spill] sm:$0xff] %v4999_v14  ;;  %v5007_v50 = vmul.f32 6.2831855, %v593_v60  ;;  %v810_v25 = vand.u32 8388607, %v7349_v21  ;;  %v4557_v43 = vpop.eup %4556 }
  0xad   :  { %7508 = vst [vmem:[#allocation21_spill] sm:$0xff] %v5001_v24  ;;  %7509 = vst [vmem:[#allocation22_spill] sm:$0xff] %v5003_v61  ;;  %vm814_vm0 = vcmp.gt.s32.totalorder %v813_v53, 0  ;;  %v910_v26 = vshrl.u32 %v909_v15, 23  ;;  %v913_v16 = vand.u32 8388607, %v7348_v11  ;;  %v4559_v40 = vpop.eup %4558 }
  0xae   :  { %7510 = vst [vmem:[#allocation23_spill] sm:$0xff] %v5005_v62  ;;  %7511 = vst [vmem:[#allocation24_spill] sm:$0xff] %v5007_v50  ;;  %v612_v45 = vmul.f32 0.6931472, %v4551_v7  ;;  %v5013_v57 = vmul.f32 6.2831855, %v594_v9  ;;  %v4561_v63 = vpop.eup %4560 }
  0xaf   :  { %v614_v59 = vmul.f32 0.6931472, %v4553_v55  ;;  %v4563_v28 = vpop.eup %4562  ;;  %v811_v42 = vor.u32 8388608, %v810_v25  ;;  %v815_v34 = vsel %vm814_vm0, %v813_v53, 0  ;;  %v616_v0 = vmul.f32 0.6931472, %v4555_v39 }
  0xb0   :  { %7512 = vst [vmem:[#allocation25_spill] sm:$0xff] %v5013_v57  ;;  %v4565_v49 = vpop.eup %4564  ;;  %v4353_v10 = vadd.s32 4294967169, %v910_v26  ;;  %v914_v37 = vor.u32 8388608, %v913_v16  ;;  %v618_v35 = vmul.f32 0.6931472, %v4557_v43  ;;  %v5015_v1 = vmul.f32 -2.0, %v612_v45 }
  0xb1   :  { %v4567_v12 = vpop.eup %4566  ;;  %v620_v13 = vmul.f32 0.6931472, %v4559_v40  ;;  %v5017_v51 = vmul.f32 -2.0, %v614_v59  ;;  %v817_v17 = vand.u32 31, %v815_v34  ;;  %v622_v18 = vmul.f32 0.6931472, %v4561_v63 }
  0xb2   :  { %v4569_v36 = vpop.eup %4568  ;;  %v624_v27 = vmul.f32 0.6931472, %v4563_v28  ;;  %v5020_v6 = vshrl.u32 %v815_v34, 5  ;;  %v5022_v44 = vshll.u32 %v811_v42, 8  ;;  %v626_v32 = vmul.f32 0.6931472, %v4565_v49 }
  0xb3   :  { %v4571_v8 = vpop.eup %4570  ;;  %v5024_v4 = vmul.f32 -2.0, %v616_v0  ;;  %v5026_v56 = vadd.s32 1, %v4353_v10  ;;  %v5028_v33 = vshll.u32 %v914_v37, 8  ;;  %v628_v9 = vmul.f32 0.6931472, %v4567_v12 }
  0xb4   :  { %v4573_v60 = vpop.eup %4572  ;;  %v630_v19 = vmul.f32 0.6931472, %v4569_v36  ;;  %v5030_v47 = vmul.f32 -2.0, %v618_v35  ;;  %4582 = vrsqrt.f32 %v5015_v1  ;;  %v5033_v20 = vmul.f32 -2.0, %v620_v13 }
  0xb5   :  { %4584 = vrsqrt.f32 %v5017_v51  ;;  %v818_v41 = vsub.s32 32, %v817_v17  ;;  %v632_v48 = vmul.f32 0.6931472, %v4571_v8  ;;  %v5037_v5 = vmul.f32 -2.0, %v622_v18  ;;  %v4575_v7 = vpop.eup %4574 }
  0xb6   :  { %v5039_v53 = vmul.f32 -2.0, %v624_v27  ;;  %v634_v55 = vmul.f32 0.6931472, %v4573_v60  ;;  %v5042_v39 = vmul.f32 -2.0, %v626_v32  ;;  %4586 = vrsqrt.f32 %v5024_v4  ;;  %v4577_v43 = vpop.eup %4576 }
  0xb7   :  { %v5046_v26 = vmul.f32 -2.0, %v628_v9  ;;  %v5048_v16 = vmul.f32 -2.0, %v630_v19  ;;  %4588 = vrsqrt.f32 %v5030_v47  ;;  %v7359_v40 = vmov 683565275   ;;  %v4579_v63 = vpop.eup %4578 }
  0xb8   :  { %v820_v45 = vshll.u32 %v7359_v40, %v817_v17  ;;  %v7352_v59 = vmov 2475754826   ;;  %v7361_v34 = vmov 2131351028   ;;  %v636_v10 = vmul.f32 0.6931472, %v4575_v7  ;;  %v4581_v8 = vpop.eup %4580 }
  0xb9   :  { %v821_v28 = vshrl.u32 %v7352_v59, %v818_v41  ;;  %v823_v42 = vshll.u32 %v7352_v59, %v817_v17  ;;  %v824_v49 = vshrl.u32 %v7361_v34, %v818_v41  ;;  %v826_v0 = vshll.u32 %v7361_v34, %v817_v17 }
  0xba   :  { %v5056_v37 = vmul.f32 -2.0, %v632_v48  ;;  %4590 = vrsqrt.f32 %v5033_v20  ;;  %v638_v35 = vmul.f32 0.6931472, %v4577_v43  ;;  %v5060_v36 = vmul.f32 -2.0, %v634_v55 }
  0xbb   :  { %v7363_v13 = vmov 2102212464   ;;  %v640_v32 = vmul.f32 0.6931472, %v4579_v63  ;;  %v819_v9 = vshrl.u32 %v7359_v40, %v818_v41  ;;  %v7368_v19 = vmov 920167782  }
  0xbc   :  { %v827_v18 = vshrl.u32 %v7363_v13, %v818_v41  ;;  %v829_v27 = vshll.u32 %v7363_v13, %v817_v17  ;;  %v830_v48 = vshrl.u32 %v7368_v19, %v818_v41  ;;  %v822_v7 = vor.u32 %v821_v28, %v820_v45 }
  0xbd   :  { %v825_v11 = vor.u32 %v824_v49, %v823_v42  ;;  %v832_v55 = vshll.u32 %v7368_v19, %v817_v17  ;;  %v5068_v43 = vmul.f32 -2.0, %v636_v10  ;;  %4592 = vrsqrt.f32 %v5037_v5 }
  0xbe   :  { %v828_v21 = vor.u32 %v827_v18, %v826_v0  ;;  %v831_v54 = vor.u32 %v830_v48, %v829_v27  ;;  %v7350_v12 = vmov 1326507024   ;;  %v642_v25 = vmul.f32 0.6931472, %v4581_v8 }
  0xbf   :  { %v833_v63 = vshrl.u32 %v7350_v12, %v818_v41  ;;  %v5072_v60 = vmul.f32 -2.0, %v638_v35  ;;  %vm835_vm1 = vcmp.lt.s32.totalorder %v5020_v6, 1  ;;  %vm837_vm2 = vcmp.lt.s32.totalorder %v5020_v6, 3 }
  0xc0   :  { %vm836_vm3 = vcmp.lt.s32.totalorder %v5020_v6, 2  ;;  %vm838_vm4 = vcmp.lt.s32.totalorder %v5020_v6, 4  ;;  %v839_v17 = vsel %vm835_vm1, %v819_v9, %v822_v7  ;;  %v843_v49 = vsel %vm835_vm1, %v822_v7, %v825_v11 }
  0xc1   :  { %v834_v45 = vor.u32 %v833_v63, %v832_v55  ;;  %v4583_v28 = vpop.eup %4582  ;;  %v840_v42 = vsel %vm838_vm4, %v828_v21, 2102212464  ;;  %v844_v0 = vsel %vm838_vm4, %v831_v54, 920167782  ;;  %v847_v10 = vsel %vm835_vm1, %v825_v11, %v828_v21 }
  0xc2   :  { %v5078_v18 = vpop.eup %4584  ;;  %v841_v41 = vsel %vm837_vm2, %v825_v11, %v840_v42  ;;  %v845_v35 = vsel %vm837_vm2, %v828_v21, %v844_v0  ;;  %vm917_vm5 = vcmp.gt.s32.totalorder %v5026_v56, 0  ;;  %vm661_vm6 = vcmp.eq.f32.partialorder %v5015_v1, inf }
  0xc3   :  { %v848_v27 = vsel %vm838_vm4, %v834_v45, 1326507024  ;;  %v846_v9 = vsel %vm836_vm3, %v843_v49, %v845_v35  ;;  %v918_v7 = vsel %vm917_vm5, %v5026_v56, 0  ;;  %v5091_v55 = vpop.eup %4586  ;;  %v842_v11 = vsel %vm836_vm3, %v839_v17, %v841_v41 }
  0xc4   :  { %v849_v48 = vsel %vm837_vm2, %v831_v54, %v848_v27  ;;  %v5098_v63 = vmul.u32.u64.low %v5022_v44, %v846_v9  ;;  %v5099_v45 = vmul.u32.u64.high %v5022_v44, %v846_v9, %v5098_v63  ;;  %v5102_v42 = vpop.eup %4588  ;;  %v5109_v49 = vshrl.u32 %v918_v7, 5 }
  0xc5   :  { %v850_v21 = vsel %vm836_vm3, %v847_v10, %v849_v48  ;;  %v920_v0 = vand.u32 31, %v918_v7  ;;  %v5111_v17 = vmul.f32 -2.0, %v640_v32  ;;  %v5113_v6 = vmul.f32 -2.0, %v642_v25 }
  0xc6   :  { %v5106_v54 = vmul.u32.u64.low %v5022_v44, %v850_v21  ;;  %v5107_v56 = vmul.u32.u64.high %v5022_v44, %v850_v21, %v5106_v54  ;;  %v660_v10 = vmul.f32 %v4583_v28, %v5015_v1  ;;  %4594 = vrsqrt.f32 %v5039_v53 }
  0xc7   :  { %v5117_v41 = vpop.eup %4590  ;;  %v858_v35 = vmul.u32 %v5022_v44, %v842_v11  ;;  %v921_v27 = vsub.s32 32, %v920_v0  ;;  %v923_v9 = vshll.u32 %v7359_v40, %v920_v0  ;;  %v1012_v48 = vand.u32 2139095040, %v4980_v29 }
  0xc8   :  { %v861_v21 = vadd.s32 1, %v5099_v45  ;;  %v926_v32 = vshll.u32 %v7352_v59, %v920_v0  ;;  %v929_v25 = vshll.u32 %v7361_v34, %v920_v0  ;;  %v932_v7 = vshll.u32 %v7363_v13, %v920_v0 }
  0xc9   :  { %vm860_vm7 = vc.u32 %v5107_v56, %v5098_v63  ;;  %v924_v28 = vshrl.u32 %v7352_v59, %v921_v27  ;;  %v935_v44 = vshll.u32 %v7368_v19, %v920_v0  ;;  %vm938_vm8 = vcmp.lt.s32.totalorder %v5109_v49, 1 }
  0xca   :  { %vm663_vm9 = vcmp.eq.f32.partialorder %v5015_v1, 0.0  ;;  %v862_v11 = vsel %vm860_vm7, %v861_v21, %v5099_v45  ;;  %v927_v54 = vshrl.u32 %v7361_v34, %v921_v27  ;;  %v930_v8 = vshrl.u32 %v7363_v13, %v921_v27  ;;  %v5136_v3 = vpop.eup %4592 }
  0xcb   :  { %v933_v15 = vshrl.u32 %v7368_v19, %v921_v27  ;;  %vm668_vm10 = vcmp.eq.f32.partialorder %v5017_v51, inf  ;;  %v863_v12 = vadd.s32 %v862_v11, %v858_v35  ;;  %v922_v59 = vshrl.u32 %v7359_v40, %v921_v27 }
  0xcc   :  { %v925_v0 = vor.u32 %v924_v28, %v923_v9  ;;  %v7513_v57 = vmov 1326507024   ;;  %v928_v62 = vor.u32 %v927_v54, %v926_v32  ;;  %v931_v61 = vor.u32 %v930_v8, %v929_v25 }
  0xcd   :  { %v936_v50 = vshrl.u32 %v7513_v57, %v921_v27  ;;  %v934_v24 = vor.u32 %v933_v15, %v932_v7  ;;  %vm940_vm11 = vcmp.lt.s32.totalorder %v5109_v49, 3  ;;  %vm675_vm12 = vcmp.eq.f32.partialorder %v5024_v4, inf }
  0xce   :  { %v864_v45 = vadd.s32 536870912, %v863_v12  ;;  %vm939_vm13 = vcmp.lt.s32.totalorder %v5109_v49, 2  ;;  %vm941_vm14 = vcmp.lt.s32.totalorder %v5109_v49, 4  ;;  %vm670_vm15 = vcmp.eq.f32.partialorder %v5017_v51, 0.0 }
  0xcf   :  { %v937_v21 = vor.u32 %v936_v50, %v935_v44  ;;  %vm682_vm0 = vcmp.eq.f32.partialorder %v5030_v47, inf  ;;  %v943_v35 = vsel %vm941_vm14, %v931_v61, 2102212464  ;;  %v946_v27 = vsel %vm938_vm8, %v925_v0, %v928_v62 }
  0xd0   :  { %v947_v8 = vsel %vm941_vm14, %v934_v24, 920167782  ;;  %v950_v15 = vsel %vm938_vm8, %v928_v62, %v931_v61  ;;  %vm689_vm1 = vcmp.eq.f32.partialorder %v5033_v20, inf  ;;  %v5153_v9 = vshrl.u32 %v864_v45, 30 }
  0xd1   :  { %v948_v32 = vsel %vm940_vm11, %v931_v61, %v947_v8  ;;  %v951_v25 = vsel %vm941_vm14, %v937_v21, 1326507024  ;;  %v662_v7 = vsel %vm661_vm6, %v5015_v1, %v660_v10  ;;  %vm677_vm2 = vcmp.eq.f32.partialorder %v5024_v4, 0.0 }
  0xd2   :  { %v949_v28 = vsel %vm939_vm13, %v946_v27, %v948_v32  ;;  %v952_v44 = vsel %vm940_vm11, %v934_v24, %v951_v25  ;;  %v1013_v11 = vshrl.u32 %v1012_v48, 23  ;;  %v667_v54 = vmul.f32 %v5078_v18, %v5017_v51 }
  0xd3   :  { %vm684_vm3 = vcmp.eq.f32.partialorder %v5030_v47, 0.0  ;;  %v942_v61 = vsel %vm938_vm8, %v922_v59, %v925_v0  ;;  %v944_v10 = vsel %vm940_vm11, %v928_v62, %v943_v35  ;;  %v953_v45 = vsel %vm939_vm13, %v950_v15, %v952_v44  ;;  %v4595_v27 = vpop.eup %4594 }
  0xd4   :  { %vm691_vm4 = vcmp.eq.f32.partialorder %v5033_v20, 0.0  ;;  %v5176_v21 = vmul.u32.u64.low %v5028_v33, %v953_v45  ;;  %v5177_v24 = vmul.u32.u64.high %v5028_v33, %v953_v45, %v5176_v21  ;;  %vm696_vm5 = vcmp.eq.f32.partialorder %v5037_v5, inf }
  0xd5   :  { %v5180_v48 = vmul.u32.u64.low %v5028_v33, %v949_v28  ;;  %v5181_v18 = vmul.u32.u64.high %v5028_v33, %v949_v28, %v5180_v48  ;;  %4596 = vrsqrt.f32 %v5042_v39  ;;  %v866_v59 = vshll.u32 %v5153_v9, 30 }
  0xd6   :  { %v4357_v0 = vadd.s32 4294967169, %v1013_v11  ;;  %v674_v35 = vmul.f32 %v5091_v55, %v5024_v4  ;;  %4598 = vrsqrt.f32 %v5046_v26  ;;  %v945_v15 = vsel %vm939_vm13, %v942_v61, %v944_v10 }
  0xd7   :  { %v7514_v32 = vand.u32 2147483648, %v5015_v1  ;;  %v681_v28 = vmul.f32 %v5102_v42, %v5030_v47  ;;  %4600 = vrsqrt.f32 %v5048_v16  ;;  %v669_v55 = vsel %vm668_vm10, %v5017_v51, %v667_v54 }
  0xd8   :  { %v1019_v44 = vadd.s32 1, %v4357_v0  ;;  %v688_v49 = vmul.f32 %v5117_v41, %v5033_v20  ;;  %vm963_vm6 = vc.u32 %v5177_v24, %v5180_v48  ;;  %v964_v1 = vadd.s32 1, %v5181_v18 }
  0xd9   :  { %v5198_v25 = vsel %vm663_vm9, %v7514_v32, %v662_v7  ;;  %vm698_vm7 = vcmp.eq.f32.partialorder %v5037_v5, 0.0  ;;  %4602 = vrsqrt.f32 %v5056_v37  ;;  %v5214_v42 = vsub.s32 %v863_v12, %v866_v59 }
  0xda   :  { %v961_v11 = vmul.u32 %v5028_v33, %v945_v15  ;;  %v676_v54 = vsel %vm675_vm12, %v5024_v4, %v674_v35  ;;  %v965_v61 = vsel %vm963_vm6, %v964_v1, %v5181_v18  ;;  %vm1020_vm8 = vcmp.gt.s32.totalorder %v1019_v44, 0 }
  0xdb   :  { %v7515_v10 = vand.u32 2147483648, %v5017_v51  ;;  %v683_v12 = vsel %vm682_vm0, %v5030_v47, %v681_v28  ;;  %4604 = vrsqrt.f32 %v5060_v36  ;;  %v1021_v33 = vsel %vm1020_vm8, %v1019_v44, 0 }
  0xdc   :  { %v690_v21 = vsel %vm689_vm1, %v5033_v20, %v688_v49  ;;  %v695_v18 = vmul.f32 %v5136_v3, %v5037_v5  ;;  %vm703_vm9 = vcmp.eq.f32.partialorder %v5039_v53, inf  ;;  %v1023_v51 = vand.u32 31, %v1021_v33 }
  0xdd   :  { %v672_v45 = vsel %vm670_vm15, %v7515_v10, %v669_v55  ;;  %v7516_v0 = vand.u32 2147483648, %v5024_v4  ;;  %4606 = vrsqrt.f32 %v5068_v43  ;;  %v869_v15 = vsub.s32 0, %v5214_v42 }
  0xde   :  { %v5243_v32 = vadd.s32 %v965_v61, %v961_v11  ;;  %v7517_v28 = vand.u32 2147483648, %v5030_v47  ;;  %4608 = vrsqrt.f32 %v5072_v60  ;;  %v5253_v55 = vsub.s32 32, %v1023_v51 }
  0xdf   :  { %v679_v35 = vsel %vm677_vm2, %v7516_v0, %v676_v54  ;;  %v7518_v4 = vand.u32 2147483648, %v5033_v20  ;;  %4610 = vrsqrt.f32 %v5111_v17  ;;  %v697_v11 = vsel %vm696_vm5, %v5037_v5, %v695_v18 }
  0xe0   :  { %v5249_v3 = vsel %vm684_vm3, %v7517_v28, %v683_v12  ;;  %v702_v54 = vmul.f32 %v4595_v27, %v5039_v53  ;;  %4612 = vrsqrt.f32 %v5113_v6  ;;  %v1115_v61 = vand.u32 2139095040, %v4982_v58 }
  0xe1   :  { %v5259_v49 = vsel %vm691_vm4, %v7518_v4, %v690_v21  ;;  %v4350_v20 = vmin.u32 %v869_v15, %v5214_v42  ;;  %v967_v10 = vadd.s32 536870912, %v5243_v32  ;;  %v7519_v12 = vand.u32 2147483647, %v4980_v29 }
  0xe2   :  { %v1026_v0 = vshll.u32 %v7359_v40, %v1023_v51  ;;  %v4597_v28 = vpop.eup %4596  ;;  %vm705_vm10 = vcmp.eq.f32.partialorder %v5039_v53, 0.0  ;;  %vm710_vm11 = vcmp.eq.f32.partialorder %v5042_v39, inf  ;;  %v7520_v27 = vmov 2475754826  }
  0xe3   :  { %v1016_v21 = vand.u32 8388607, %v7519_v12  ;;  %v1027_v18 = vshrl.u32 %v7520_v27, %v5253_v55  ;;  %v1029_v4 = vshll.u32 %v7520_v27, %v1023_v51  ;;  %v1030_v15 = vshrl.u32 %v7361_v34, %v5253_v55  ;;  %v4599_v1 = vpop.eup %4598 }
  0xe4   :  { %v1035_v47 = vshll.u32 %v7363_v13, %v1023_v51  ;;  %v5283_v44 = vshrl.u32 %v1021_v33, 5  ;;  %v1032_v12 = vshll.u32 %v7361_v34, %v1023_v51  ;;  %v1033_v59 = vshrl.u32 %v7363_v13, %v5253_v55  ;;  %v4601_v7 = vpop.eup %4600 }
  0xe5   :  { %v1036_v41 = vshrl.u32 %v7368_v19, %v5253_v55  ;;  %v7521_v8 = vand.u32 2147483648, %v5037_v5  ;;  %v1038_v50 = vshll.u32 %v7368_v19, %v1023_v51  ;;  %v1039_v33 = vshrl.u32 %v7513_v57, %v5253_v55 }
  0xe6   :  { %v1116_v40 = vshrl.u32 %v1115_v61, 23  ;;  %v709_v34 = vmul.f32 %v4597_v28, %v5042_v39  ;;  %vm717_vm12 = vcmp.eq.f32.partialorder %v5046_v26, inf  ;;  %v5302_v13 = vmul.f32 0.1, %v5198_v25  ;;  %v5306_v23 = vpop.eup %4602 }
  0xe7   :  { %v5294_v62 = vsel %vm698_vm7, %v7521_v8, %v697_v11  ;;  %v5304_v14 = vshrl.u32 %v967_v10, 30  ;;  %v1017_v38 = vor.u32 8388608, %v1016_v21  ;;  %vm712_vm13 = vcmp.eq.f32.partialorder %v5042_v39, 0.0 }
  0xe8   :  { %7522 = vst [vmem:[#allocation26_spill] sm:$0xff] %v5302_v13  ;;  %v871_v5 = vclz %v4350_v20  ;;  %v1028_v8 = vor.u32 %v1027_v18, %v1026_v0  ;;  %v1031_v51 = vor.u32 %v1030_v15, %v1029_v4  ;;  %v1037_v11 = vor.u32 %v1036_v41, %v1035_v47  ;;  %v5315_v25 = vpop.eup %4604 }
  0xe9   :  { %7523 = vst [vmem:[#allocation27_spill] sm:$0xff] %v5304_v14  ;;  %v704_v61 = vsel %vm703_vm9, %v5039_v53, %v702_v54  ;;  %v5312_v28 = vmul.f32 0.1, %v672_v45  ;;  %v1034_v19 = vor.u32 %v1033_v59, %v1032_v12  ;;  %vm1041_vm14 = vcmp.lt.s32.totalorder %v5283_v44, 1 }
  0xea   :  { %vm719_vm15 = vcmp.eq.f32.partialorder %v5046_v26, 0.0  ;;  %vm724_vm0 = vcmp.eq.f32.partialorder %v5048_v16, inf  ;;  %v1040_v10 = vor.u32 %v1039_v33, %v1038_v50  ;;  %vm1043_vm1 = vcmp.lt.s32.totalorder %v5283_v44, 3  ;;  %v5326_v59 = vpop.eup %4606 }
  0xeb   :  { %7524 = vst [vmem:[#allocation28_spill] sm:$0xff] %v5312_v28  ;;  %vm1044_vm2 = vcmp.lt.s32.totalorder %v5283_v44, 4  ;;  %v4361_v41 = vadd.s32 4294967169, %v1116_v40  ;;  %v716_v47 = vmul.f32 %v4599_v1, %v5046_v26  ;;  %v5322_v54 = vmul.f32 0.1, %v679_v35  ;;  %v5334_v40 = vpop.eup %4608 }
  0xec   :  { %v969_v45 = vshll.u32 %v5304_v14, 30  ;;  %vm1042_vm3 = vcmp.lt.s32.totalorder %v5283_v44, 2  ;;  %v4351_v20 = vadd.s32 4294967294, %v871_v5  ;;  %v1049_v21 = vsel %vm1041_vm14, %v1028_v8, %v1031_v51  ;;  %v5345_v12 = vpop.eup %4610 }
  0xed   :  { %7525 = vst [vmem:[#allocation29_spill] sm:$0xff] %v5322_v54  ;;  %v1050_v50 = vsel %vm1044_vm2, %v1037_v11, 920167782  ;;  %v5332_v0 = vshll.u32 %v1017_v38, 8  ;;  %v5337_v35 = vmul.f32 0.1, %v5249_v3  ;;  %v1053_v15 = vsel %vm1041_vm14, %v1031_v51, %v1034_v19 }
  0xee   :  { %v7527_v1 = vmov 683565275   ;;  %v1051_v4 = vsel %vm1043_vm1, %v1034_v19, %v1050_v50  ;;  %v1046_v38 = vsel %vm1044_vm2, %v1034_v19, 2102212464  ;;  %v1054_v3 = vsel %vm1044_vm2, %v1040_v10, 1326507024 }
  0xef   :  { %7526 = vst [vmem:[#allocation30_spill] sm:$0xff] %v5337_v35  ;;  %v1025_v18 = vshrl.u32 %v7527_v1, %v5253_v55  ;;  %v1052_v33 = vsel %vm1042_vm3, %v1049_v21, %v1051_v4  ;;  %v1122_v5 = vadd.s32 1, %v4361_v41  ;;  %v5353_v35 = vpop.eup %4612  ;;  %v7528_v55 = vand.u32 2147483648, %v5039_v53 }
  0xf0   :  { %v711_v54 = vsel %vm710_vm11, %v5042_v39, %v709_v34  ;;  %v5363_v19 = vsub.s32 %v5243_v32, %v969_v45  ;;  %v1055_v21 = vsel %vm1043_vm1, %v1037_v11, %v1054_v3  ;;  %vm4352_vm4 = vcmp.lt.s32.totalorder %v4351_v20, 0 }
  0xf1   :  { %v707_v50 = vsel %vm705_vm10, %v7528_v55, %v704_v61  ;;  %v1056_v10 = vsel %vm1042_vm3, %v1053_v15, %v1055_v21  ;;  %v5370_v41 = vmul.u32.u64.low %v5332_v0, %v1052_v33  ;;  %v5371_v4 = vmul.u32.u64.high %v5332_v0, %v1052_v33, %v5370_v41 }
  0xf2   :  { %v723_v53 = vmul.f32 %v4601_v7, %v5048_v16  ;;  %v5376_v61 = vmul.f32 0.1, %v5259_v49  ;;  %v1045_v34 = vsel %vm1041_vm14, %v1025_v18, %v1028_v8  ;;  %v1047_v32 = vsel %vm1043_vm1, %v1031_v51, %v1046_v38 }
  0xf3   :  { %v718_v11 = vsel %vm717_vm12, %v5046_v26, %v716_v47  ;;  %v5386_v45 = vmul.u32.u64.low %v5332_v0, %v1056_v10  ;;  %v5387_v15 = vmul.u32.u64.high %v5332_v0, %v1056_v10, %v5386_v45  ;;  %vm1123_vm5 = vcmp.gt.s32.totalorder %v1122_v5, 0 }
  0xf4   :  { %7529 = vst [vmem:[#allocation31_spill] sm:$0xff] %v5376_v61  ;;  %v7530_v7 = vand.u32 2147483648, %v5042_v39  ;;  %v874_v33 = vsel %vm4352_vm4, 0, %v4351_v20  ;;  %v972_v8 = vsub.s32 0, %v5363_v19  ;;  %v1124_v18 = vsel %vm1123_vm5, %v1122_v5, 0 }
  0xf5   :  { %vm726_vm6 = vcmp.eq.f32.partialorder %v5048_v16, 0.0  ;;  %v5396_v51 = vmul.f32 0.1, %v5294_v62  ;;  %v1048_v47 = vsel %vm1042_vm3, %v1045_v34, %v1047_v32  ;;  %v1067_v38 = vadd.s32 1, %v5371_v4 }
  0xf6   :  { %v714_v49 = vsel %vm712_vm13, %v7530_v7, %v711_v54  ;;  %v1126_v3 = vand.u32 31, %v1124_v18  ;;  %v7532_v55 = vand.u32 2147483648, %v5046_v26  ;;  %v725_v54 = vsel %vm724_vm0, %v5048_v16, %v723_v53 }
  0xf7   :  { %7531 = vst [vmem:[#allocation32_spill] sm:$0xff] %v5396_v51  ;;  %v5408_v20 = vmul.f32 0.1, %v707_v50  ;;  %v859_v62 = vadd.s32 %v5098_v63, %v5107_v56  ;;  %v879_v5 = vsub.s32 4294967266, %v874_v33  ;;  %vm1066_vm7 = vc.u32 %v5387_v15, %v5370_v41 }
  0xf8   :  { %v721_v39 = vsel %vm719_vm15, %v7532_v55, %v718_v11  ;;  %v1127_v21 = vsub.s32 32, %v1126_v3  ;;  %vm731_vm8 = vcmp.eq.f32.partialorder %v5056_v37, inf  ;;  %v875_v26 = vsub.s32 32, %v874_v33 }
  0xf9   :  { %7533 = vst [vmem:[#allocation33_spill] sm:$0xff] %v5408_v20  ;;  %v4354_v10 = vmin.u32 %v972_v8, %v5363_v19  ;;  %v1064_v34 = vmul.u32 %v5332_v0, %v1048_v47  ;;  %v5418_v53 = vshrl.u32 %v1124_v18, 5  ;;  %v1068_v50 = vsel %vm1066_vm7, %v1067_v38, %v5371_v4 }
  0xfa   :  { %v1129_v63 = vshll.u32 %v7527_v1, %v1126_v3  ;;  %v1130_v56 = vshrl.u32 %v7520_v27, %v1127_v21  ;;  %v1132_v32 = vshll.u32 %v7520_v27, %v1126_v3  ;;  %v7534_v11 = vmov 2131351028  }
  0xfb   :  { %v1133_v45 = vshrl.u32 %v7534_v11, %v1127_v21  ;;  %v1135_v7 = vshll.u32 %v7534_v11, %v1126_v3  ;;  %v7535_v55 = vmov 2102212464   ;;  %v730_v0 = vmul.f32 %v5306_v23, %v5056_v37 }
  0xfc   :  { %v1136_v44 = vshrl.u32 %v7535_v55, %v1127_v21  ;;  %v1138_v8 = vshll.u32 %v7535_v55, %v1126_v3  ;;  %v880_v18 = vadd.s32 127, %v879_v5  ;;  %v7536_v4 = vand.u32 2147483647, %v4982_v58 }
  0xfd   :  { %v7537_v38 = vmov 920167782   ;;  %v5433_v51 = vmul.f32 0.1, %v714_v49  ;;  %v876_v61 = vshll.u32 %v5214_v42, %v874_v33  ;;  %v1142_v13 = vshrl.u32 %v7513_v57, %v1127_v21 }
  0xfe   :  { %v1119_v47 = vand.u32 8388607, %v7536_v4  ;;  %v1139_v20 = vshrl.u32 %v7537_v38, %v1127_v21  ;;  %v1141_v28 = vshll.u32 %v7537_v38, %v1126_v3  ;;  %v877_v22 = vshrl.u32 %v859_v62, %v875_v26 }
  0xff   :  { %v974_v29 = vclz %v4354_v10  ;;  %v5438_v31 = vadd.s32 %v1068_v50, %v1064_v34  ;;  %vm733_vm9 = vcmp.eq.f32.partialorder %v5056_v37, 0.0  ;;  %v1131_v23 = vor.u32 %v1130_v56, %v1129_v63 }
 0x100   :  { %v1140_v14 = vor.u32 %v1139_v20, %v1138_v8  ;;  %v1134_v5 = vor.u32 %v1133_v45, %v1132_v32  ;;  %v1137_v4 = vor.u32 %v1136_v44, %v1135_v7  ;;  %vm1147_vm10 = vcmp.lt.s32.totalorder %v5418_v53, 4 }
 0x101   :  { %vm738_vm11 = vcmp.eq.f32.partialorder %v5060_v36, inf  ;;  %vm745_vm12 = vcmp.eq.f32.partialorder %v5068_v43, inf  ;;  %v881_v42 = vshll.u32 %v880_v18, 23  ;;  %v1120_v49 = vor.u32 8388608, %v1119_v47 }
 0x102   :  { %vm1144_vm13 = vcmp.lt.s32.totalorder %v5418_v53, 1  ;;  %vm1146_vm14 = vcmp.lt.s32.totalorder %v5418_v53, 3  ;;  %v7538_v33 = vand.u32 2147483648, %v5048_v16  ;;  %v1128_v20 = vshrl.u32 %v7527_v1, %v1127_v21 }
 0x103   :  { %v1143_v62 = vor.u32 %v1142_v13, %v1141_v28  ;;  %v1153_v44 = vsel %vm1147_vm10, %v1140_v14, 920167782  ;;  %v5453_v26 = vmul.f32 0.1, %v721_v39  ;;  %v878_v10 = vor.u32 %v877_v22, %v876_v61 }
 0x104   :  { %v728_v3 = vsel %vm726_vm6, %v7538_v33, %v725_v54  ;;  %v1070_v34 = vadd.s32 536870912, %v5438_v31  ;;  %v1149_v50 = vsel %vm1147_vm10, %v1137_v4, 2102212464  ;;  %vm740_vm15 = vcmp.eq.f32.partialorder %v5060_v36, 0.0 }
 0x105   :  { %vm747_vm0 = vcmp.eq.f32.partialorder %v5068_v43, 0.0  ;;  %v4355_v16 = vadd.s32 4294967294, %v974_v29  ;;  %vm1145_vm1 = vcmp.lt.s32.totalorder %v5418_v53, 2  ;;  %v1152_v13 = vsel %vm1144_vm13, %v1131_v23, %v1134_v5 }
 0x106   :  { %v1154_v28 = vsel %vm1146_vm14, %v1137_v4, %v1153_v44  ;;  %v732_v22 = vsel %vm731_vm8, %v5056_v37, %v730_v0  ;;  %vm752_vm2 = vcmp.eq.f32.partialorder %v5072_v60, inf  ;;  %vm759_vm3 = vcmp.eq.f32.partialorder %v5111_v17, inf }
 0x107   :  { %v882_v61 = vor.u32 4788187, %v881_v42  ;;  %v1160_v39 = vshll.u32 %v1120_v49, 8  ;;  %v1218_v29 = vand.u32 2139095040, %v4984_v30  ;;  %v1148_v54 = vsel %vm1144_vm13, %v1128_v20, %v1131_v23 }
 0x108   :  { %v1150_v21 = vsel %vm1146_vm14, %v1134_v5, %v1149_v50  ;;  %v1156_v63 = vsel %vm1144_vm13, %v1134_v5, %v1137_v4  ;;  %v1157_v56 = vsel %vm1147_vm10, %v1143_v62, 1326507024  ;;  %v737_v32 = vmul.f32 %v5315_v25, %v5060_v36 }
 0x109   :  { %v5481_v45 = vmul.f32 0.1, %v728_v3  ;;  %v5483_v7 = vshrl.u32 %v1070_v34, 30  ;;  %v1155_v8 = vsel %vm1145_vm1, %v1152_v13, %v1154_v28  ;;  %v744_v0 = vmul.f32 %v5326_v59, %v5068_v43 }
 0x10a   :  { %v885_v18 = vcvt.s32.f32 %v878_v10  ;;  %vm4356_vm4 = vcmp.lt.s32.totalorder %v4355_v16, 0  ;;  %v1158_v47 = vsel %vm1146_vm14, %v1140_v14, %v1157_v56  ;;  %v883_v23 = vand.u32 2147483647, %v882_v61 }
 0x10b   :  { %v1151_v5 = vsel %vm1145_vm1, %v1148_v54, %v1150_v21  ;;  %v1159_v25 = vsel %vm1145_vm1, %v1156_v63, %v1158_v47  ;;  %v1219_v4 = vshrl.u32 %v1218_v29, 23  ;;  %vm754_vm5 = vcmp.eq.f32.partialorder %v5072_v60, 0.0 }
 0x10c   :  { %vm761_vm6 = vcmp.eq.f32.partialorder %v5111_v17, 0.0  ;;  %vm766_vm7 = vcmp.eq.f32.partialorder %v5113_v6, inf  ;;  %v5498_v59 = vmul.u32.u64.low %v1160_v39, %v1159_v25  ;;  %v5499_v42 = vmul.u32.u64.high %v1160_v39, %v1159_v25, %v5498_v59 }
 0x10d   :  { %v5501_v49 = vmul.u32.u64.low %v1160_v39, %v1155_v8  ;;  %v5502_v33 = vmul.u32.u64.high %v1160_v39, %v1155_v8, %v5501_v49  ;;  %v7539_v14 = vand.u32 2147483648, %v5056_v37  ;;  %vm805_vm8 = vcmp.lt.s32.totalorder %v4961_v46, 0 }
 0x10e   :  { %v977_v3 = vsel %vm4356_vm4, 0, %v4355_v16  ;;  %v1072_v20 = vshll.u32 %v5483_v7, 30  ;;  %v4365_v62 = vadd.s32 4294967169, %v1219_v4  ;;  %v739_v44 = vsel %vm738_vm11, %v5060_v36, %v737_v32 }
 0x10f   :  { %v735_v53 = vsel %vm733_vm9, %v7539_v14, %v732_v22  ;;  %v746_v10 = vsel %vm745_vm12, %v5068_v43, %v744_v0  ;;  %v751_v34 = vmul.f32 %v5334_v40, %v5072_v60  ;;  %v758_v37 = vmul.f32 %v5345_v12, %v5111_v17 }
 0x110   :  { %v886_v50 = vmul.f32 %v885_v18, %v883_v23  ;;  %v962_v16 = vadd.s32 %v5180_v48, %v5177_v24  ;;  %v1167_v13 = vmul.u32 %v1160_v39, %v1151_v5  ;;  %v1225_v28 = vadd.s32 1, %v4365_v62 }
 0x111   :  { %v978_v22 = vsub.s32 32, %v977_v3  ;;  %v982_v61 = vsub.s32 4294967266, %v977_v3  ;;  %vm1169_vm9 = vc.u32 %v5499_v42, %v5501_v49  ;;  %v1170_v29 = vadd.s32 1, %v5502_v33 }
 0x112   :  { %v7540_v54 = vand.u32 2147483648, %v5060_v36  ;;  %v7541_v12 = vand.u32 2147483648, %v5068_v43  ;;  %v5535_v24 = vsub.s32 %v5438_v31, %v1072_v20  ;;  %vm1226_vm10 = vcmp.gt.s32.totalorder %v1225_v28, 0 }
 0x113   :  { %v753_v48 = vsel %vm752_vm2, %v5072_v60, %v751_v34  ;;  %v760_v39 = vsel %vm759_vm3, %v5111_v17, %v758_v37  ;;  %v1171_v36 = vsel %vm1169_vm9, %v1170_v29, %v5502_v33  ;;  %v1227_v63 = vsel %vm1226_vm10, %v1225_v28, 0 }
 0x114   :  { %v742_v40 = vsel %vm740_vm15, %v7540_v54, %v739_v44  ;;  %v749_v21 = vsel %vm747_vm0, %v7541_v12, %v746_v10  ;;  %v765_v56 = vmul.f32 %v5353_v35, %v5113_v6  ;;  %v887_v43 = vxor.u32 2147483648, %v886_v50 }
 0x115   :  { %v889_v32 = vsub.s32 4, %v5153_v9  ;;  %v1172_v31 = vadd.s32 %v1171_v36, %v1167_v13  ;;  %v979_v8 = vshll.u32 %v5363_v19, %v977_v3  ;;  %v980_v0 = vshrl.u32 %v962_v16, %v978_v22 }
 0x116   :  { %v983_v18 = vadd.s32 127, %v982_v61  ;;  %v1229_v47 = vand.u32 31, %v1227_v63  ;;  %v5548_v23 = vmul.f32 0.1, %v735_v53  ;;  %v1075_v5 = vsub.s32 0, %v5535_v24 }
 0x117   :  { %v1173_v25 = vadd.s32 536870912, %v1172_v31  ;;  %v7383_v4 = vand.u32 2147483647, %v4984_v30  ;;  %v769_v59 = vand.u32 2147483648, %v5113_v6  ;;  %v5553_v33 = vmul.f32 0.1, %v742_v40 }
 0x118   :  { %7542 = vst [vmem:[#allocation34_spill] sm:$0xff] %v5548_v23  ;;  %v5555_v35 = vmul.f32 0.1, %v749_v21  ;;  %v1230_v14 = vsub.s32 32, %v1229_v47  ;;  %v7545_v20 = vand.u32 2147483648, %v5072_v60  ;;  %v7546_v53 = vand.u32 2147483648, %v5111_v17 }
 0x119   :  { %7543 = vst [vmem:[#allocation35_spill] sm:$0xff] %v5553_v33  ;;  %v5572_v62 = vsel %vm766_vm7, %v5113_v6, %v765_v56  ;;  %v5574_v44 = vshrl.u32 %v1173_v25, 30  ;;  %v7547_v10 = vand.u32 2147483647, %v4961_v46  ;;  %v888_v60 = vsel %vm805_vm8, %v887_v43, %v886_v50 }
 0x11a   :  { %7544 = vst [vmem:[#allocation36_spill] sm:$0xff] %v5555_v35  ;;  %v5561_v19 = vsel %vm754_vm5, %v7545_v20, %v753_v48  ;;  %v5567_v3 = vsel %vm761_vm6, %v7546_v53, %v760_v39  ;;  %v5587_v17 = vsel %vm805_vm8, %v889_v32, %v5153_v9  ;;  %v981_v37 = vor.u32 %v980_v0, %v979_v8 }
 0x11b   :  { %vm5578_vm11 = vcmp.le.f32.partialorder %v7547_v10, 0.7853982  ;;  %v984_v16 = vshll.u32 %v983_v18, 23  ;;  %v4358_v13 = vmin.u32 %v1075_v5, %v5535_v24  ;;  %v1175_v28 = vshll.u32 %v5574_v44, 30 }
 0x11c   :  { %v1222_v22 = vand.u32 8388607, %v7383_v4  ;;  %v1228_v61 = vshrl.u32 %v1227_v63, 5  ;;  %v1232_v29 = vshll.u32 %v7527_v1, %v1229_v47  ;;  %v1233_v54 = vshrl.u32 %v7520_v27, %v1230_v14 }
 0x11d   :  { %v1235_v50 = vshll.u32 %v7520_v27, %v1229_v47  ;;  %v1236_v40 = vshrl.u32 %v7534_v11, %v1230_v14  ;;  %v5597_v9 = vsub.s32 %v1172_v31, %v1175_v28  ;;  %v1238_v12 = vshll.u32 %v7534_v11, %v1229_v47 }
 0x11e   :  { %v1239_v21 = vshrl.u32 %v7535_v55, %v1230_v14  ;;  %v1241_v48 = vshll.u32 %v7535_v55, %v1229_v47  ;;  %vm768_vm12 = vcmp.eq.f32.partialorder %v5113_v6, 0.0  ;;  %v985_v39 = vor.u32 4788187, %v984_v16 }
 0x11f   :  { %v1242_v36 = vshrl.u32 %v7537_v38, %v1230_v14  ;;  %v1244_v63 = vshll.u32 %v7537_v38, %v1229_v47  ;;  %v1321_v56 = vand.u32 2139095040, %v4986_v52  ;;  %v1077_v43 = vclz %v4358_v13 }
 0x120   :  { %v1178_v32 = vsub.s32 0, %v5597_v9  ;;  %v1223_v31 = vor.u32 8388608, %v1222_v22  ;;  %v1245_v8 = vshrl.u32 %v7513_v57, %v1230_v14  ;;  %v988_v0 = vcvt.s32.f32 %v981_v37 }
 0x121   :  { %v1234_v18 = vor.u32 %v1233_v54, %v1232_v29  ;;  %v1237_v5 = vor.u32 %v1236_v40, %v1235_v50  ;;  %v1243_v25 = vor.u32 %v1242_v36, %v1241_v48  ;;  %v1231_v53 = vshrl.u32 %v7527_v1, %v1230_v14 }
 0x122   :  { %v4362_v20 = vmin.u32 %v1178_v32, %v5597_v9  ;;  %v1240_v10 = vor.u32 %v1239_v21, %v1238_v12  ;;  %vm1247_vm13 = vcmp.lt.s32.totalorder %v1228_v61, 1  ;;  %v1246_v16 = vor.u32 %v1245_v8, %v1244_v63 }
 0x123   :  { %vm1249_vm14 = vcmp.lt.s32.totalorder %v1228_v61, 3  ;;  %vm1250_vm15 = vcmp.lt.s32.totalorder %v1228_v61, 4  ;;  %v1322_v47 = vshrl.u32 %v1321_v56, 23  ;;  %v4359_v13 = vadd.s32 4294967294, %v1077_v43 }
 0x124   :  { %vm1248_vm0 = vcmp.lt.s32.totalorder %v1228_v61, 2  ;;  %v1252_v28 = vsel %vm1250_vm15, %v1240_v10, 2102212464  ;;  %v1263_v22 = vshll.u32 %v1223_v31, 8  ;;  %v986_v4 = vand.u32 2147483647, %v985_v39 }
 0x125   :  { %v1180_v37 = vclz %v4362_v20  ;;  %v1255_v29 = vsel %vm1247_vm13, %v1234_v18, %v1237_v5  ;;  %v1256_v54 = vsel %vm1250_vm15, %v1243_v25, 920167782  ;;  %v891_v14 = vsel %vm5578_vm11, %v4961_v46, %v888_v60 }
 0x126   :  { %vm908_vm1 = vcmp.lt.s32.totalorder %v4975_v2, 0  ;;  %v1251_v50 = vsel %vm1247_vm13, %v1231_v53, %v1234_v18  ;;  %v1257_v40 = vsel %vm1249_vm14, %v1240_v10, %v1256_v54  ;;  %v1259_v12 = vsel %vm1247_vm13, %v1237_v5, %v1240_v10 }
 0x127   :  { %v1253_v21 = vsel %vm1249_vm14, %v1237_v5, %v1252_v28  ;;  %v1258_v48 = vsel %vm1248_vm0, %v1255_v29, %v1257_v40  ;;  %v1260_v39 = vsel %vm1250_vm15, %v1246_v16, 1326507024  ;;  %v4369_v36 = vadd.s32 4294967169, %v1322_v47 }
 0x128   :  { %vm4360_vm2 = vcmp.lt.s32.totalorder %v4359_v13, 0  ;;  %v1261_v63 = vsel %vm1249_vm14, %v1243_v25, %v1260_v39  ;;  %v5624_v56 = vmul.u32.u64.low %v1263_v22, %v1258_v48  ;;  %v5625_v60 = vmul.u32.u64.high %v1263_v22, %v1258_v48, %v5624_v56 }
 0x129   :  { %v989_v43 = vmul.f32 %v988_v0, %v986_v4  ;;  %v4363_v32 = vadd.s32 4294967294, %v1180_v37  ;;  %v1262_v31 = vsel %vm1248_vm0, %v1259_v12, %v1261_v63  ;;  %v1328_v8 = vadd.s32 1, %v4369_v36 }
 0x12a   :  { %v5634_v18 = vsel %vm768_vm12, %v769_v59, %v5572_v62  ;;  %v5637_v5 = vmul.f32 0.1, %v5561_v19  ;;  %v5640_v25 = vmul.f32 0.1, %v5567_v3  ;;  %v1254_v20 = vsel %vm1248_vm0, %v1251_v50, %v1253_v21 }
 0x12b   :  { %v5643_v4 = vsel %vm4360_vm2, 0, %v4359_v13  ;;  %v5645_v0 = vmul.u32.u64.low %v1263_v22, %v1262_v31  ;;  %v5646_v53 = vmul.u32.u64.high %v1263_v22, %v1262_v31, %v5645_v0  ;;  %vm1329_vm3 = vcmp.gt.s32.totalorder %v1328_v8, 0 }
 0x12c   :  { %7550 = vst [vmem:[#allocation37_spill] sm:$0xff] %v5637_v5  ;;  %7551 = vst [vmem:[#allocation38_spill] sm:$0xff] %v5640_v25  ;;  %v5651_v6 = vsel %vm5578_vm11, 0, %v5587_v17  ;;  %4614 = vcosq.f32 %v891_v14  ;;  %v1273_v59 = vadd.s32 1, %v5625_v60  ;;  %v1330_v19 = vsel %vm1329_vm3, %v1328_v8, 0  ;;  %v7552_v17 = vld [vmem:[#allocation27_spill] sm:$0xff] }
 0x12d   :  { %v990_v62 = vxor.u32 2147483648, %v989_v43  ;;  %vm4364_vm4 = vcmp.lt.s32.totalorder %v4363_v32, 0  ;;  %v1270_v3 = vmul.u32 %v1263_v22, %v1254_v20  ;;  %v1332_v61 = vand.u32 31, %v1330_v19 }
 0x12e   :  { %v1065_v10 = vadd.s32 %v5370_v41, %v5387_v15  ;;  %v1081_v16 = vsub.s32 32, %v5643_v4  ;;  %v1085_v47 = vsub.s32 4294967266, %v5643_v4  ;;  %v7384_v13 = vand.u32 2147483647, %v4986_v52 }
 0x12f   :  { %4616 = vsinq.f32 %v891_v14  ;;  %v5660_v34 = vand.u32 3, %v5651_v6  ;;  %vm1272_vm5 = vc.u32 %v5646_v53, %v5624_v56  ;;  %v1183_v37 = vsel %vm4364_vm4, 0, %v4363_v32 }
 0x130   :  { %v1274_v41 = vsel %vm1272_vm5, %v1273_v59, %v5625_v60  ;;  %v1333_v15 = vsub.s32 32, %v1332_v61  ;;  %v5669_v29 = vsel %vm908_vm1, %v990_v62, %v989_v43  ;;  %v1082_v54 = vshll.u32 %v5535_v24, %v5643_v4 }
 0x131   :  { %v1168_v14 = vadd.s32 %v5501_v49, %v5499_v42  ;;  %v1275_v50 = vadd.s32 %v1274_v41, %v1270_v3  ;;  %v1083_v40 = vshrl.u32 %v1065_v10, %v1081_v16  ;;  %v1086_v12 = vadd.s32 127, %v1085_v47 }
 0x132   :  { %v1184_v21 = vsub.s32 32, %v1183_v37  ;;  %v1325_v48 = vand.u32 8388607, %v7384_v13  ;;  %v1188_v39 = vsub.s32 4294967266, %v1183_v37  ;;  %v5677_v63 = vshrl.u32 %v1330_v19, 5 }
 0x133   :  { %v1276_v36 = vadd.s32 536870912, %v1275_v50  ;;  %v1335_v60 = vshll.u32 %v7527_v1, %v1332_v61  ;;  %v1336_v43 = vshrl.u32 %v7520_v27, %v1333_v15  ;;  %v1338_v24 = vshll.u32 %v7520_v27, %v1332_v61 }
 0x134   :  { %v1339_v32 = vshrl.u32 %v7534_v11, %v1333_v15  ;;  %v1344_v42 = vshll.u32 %v7535_v55, %v1332_v61  ;;  %v1341_v31 = vshll.u32 %v7534_v11, %v1332_v61  ;;  %v1342_v8 = vshrl.u32 %v7535_v55, %v1333_v15 }
 0x135   :  { %v5684_v49 = vshrl.u32 %v1276_v36, 30  ;;  %v1345_v20 = vshrl.u32 %v7537_v38, %v1333_v15  ;;  %v1087_v4 = vshll.u32 %v1086_v12, 23  ;;  %v1326_v0 = vor.u32 8388608, %v1325_v48 }
 0x136   :  { %v1347_v59 = vshll.u32 %v7537_v38, %v1332_v61  ;;  %v1348_v19 = vshrl.u32 %v7513_v57, %v1333_v15  ;;  %v7553_v62 = vand.u32 2147483647, %v4975_v2  ;;  %v1185_v10 = vshll.u32 %v5597_v9, %v1183_v37 }
 0x137   :  { %v1186_v16 = vshrl.u32 %v1168_v14, %v1184_v21  ;;  %v1189_v47 = vadd.s32 127, %v1188_v39  ;;  %v1278_v41 = vshll.u32 %v5684_v49, 30  ;;  %v1334_v36 = vshrl.u32 %v7527_v1, %v1333_v15  ;;  %v7557_v14 = vld [vmem:[#allocation16_spill] sm:$0xff] }
 0x138   :  { %vm5693_vm6 = vcmp.le.f32.partialorder %v7553_v62, 0.7853982  ;;  %v1337_v12 = vor.u32 %v1336_v43, %v1335_v60  ;;  %v1340_v48 = vor.u32 %v1339_v32, %v1338_v24  ;;  %v1346_v13 = vor.u32 %v1345_v20, %v1344_v42  ;;  %v7559_v43 = vld [vmem:[#allocation12_spill] sm:$0xff] }
 0x139   :  { %v5700_v61 = vpop.eup %4614  ;;  %v5702_v22 = vsub.s32 %v1275_v50, %v1278_v41  ;;  %v1343_v28 = vor.u32 %v1342_v8, %v1341_v31  ;;  %vm1350_vm7 = vcmp.lt.s32.totalorder %v5677_v63, 1  ;;  %vm1353_vm8 = vcmp.lt.s32.totalorder %v5677_v63, 4 }
 0x13a   :  { %7556 = vst [vmem:[#allocation27_spill] sm:$0xff] %v5700_v61  ;;  %v1084_v62 = vor.u32 %v1083_v40, %v1082_v54  ;;  %v1088_v9 = vor.u32 4788187, %v1087_v4  ;;  %v1349_v37 = vor.u32 %v1348_v19, %v1347_v59  ;;  %v1424_v21 = vand.u32 2139095040, %v7557_v14 }
 0x13b   :  { %v1190_v39 = vshll.u32 %v1189_v47, 23  ;;  %v1281_v15 = vsub.s32 0, %v5702_v22  ;;  %vm1352_vm9 = vcmp.lt.s32.totalorder %v5677_v63, 3  ;;  %v1355_v60 = vsel %vm1353_vm8, %v1343_v28, 2102212464 }
 0x13c   :  { %v5711_v50 = vpop.eup %4616  ;;  %vm1011_vm10 = vcmp.lt.s32.totalorder %v7559_v43, 0  ;;  %vm1351_vm11 = vcmp.lt.s32.totalorder %v5677_v63, 2  ;;  %v1358_v54 = vsel %vm1350_vm7, %v1337_v12, %v1340_v48  ;;  %v1359_v40 = vsel %vm1353_vm8, %v1346_v13, 920167782 }
 0x13d   :  { %7558 = vst [vmem:[#allocation39_spill] sm:$0xff] %v5711_v50  ;;  %v1366_v24 = vshll.u32 %v1326_v0, 8  ;;  %vm898_vm12 = vcmp.eq.s32.totalorder %v5660_v34, 0  ;;  %v1187_v32 = vor.u32 %v1186_v16, %v1185_v10  ;;  %v4366_v42 = vmin.u32 %v1281_v15, %v5702_v22 }
 0x13e   :  { %v1354_v31 = vsel %vm1350_vm7, %v1334_v36, %v1337_v12  ;;  %v1362_v8 = vsel %vm1350_vm7, %v1340_v48, %v1343_v28  ;;  %v1356_v20 = vsel %vm1352_vm9, %v1340_v48, %v1355_v60  ;;  %v1360_v4 = vsel %vm1352_vm9, %v1343_v28, %v1359_v40 }
 0x13f   :  { %v1363_v0 = vsel %vm1353_vm8, %v1349_v37, 1326507024  ;;  %v1425_v59 = vshrl.u32 %v1424_v21, 23  ;;  %v1191_v19 = vor.u32 4788187, %v1190_v39  ;;  %v1283_v10 = vclz %v4366_v42 }
 0x140   :  { %v1361_v16 = vsel %vm1351_vm11, %v1358_v54, %v1360_v4  ;;  %v1364_v47 = vsel %vm1352_vm9, %v1346_v13, %v1363_v0  ;;  %vm897_vm13 = vcmp.lt.s32.totalorder %v5660_v34, 2  ;;  %v7560_v41 = vand.u32 2147483647, %v7559_v43 }
 0x141   :  { %v1365_v28 = vsel %vm1351_vm11, %v1362_v8, %v1364_v47  ;;  %v5744_v12 = vmul.u32.u64.low %v1366_v24, %v1361_v16  ;;  %v5745_v48 = vmul.u32.u64.high %v1366_v24, %v1361_v16, %v5744_v12  ;;  %v4373_v37 = vadd.s32 4294967169, %v1425_v59 }
 0x142   :  { %vm5738_vm14 = vcmp.le.f32.partialorder %v7560_v41, 0.7853982  ;;  %v4367_v21 = vadd.s32 4294967294, %v1283_v10  ;;  %v1357_v13 = vsel %vm1351_vm11, %v1354_v31, %v1356_v20  ;;  %vm901_vm15 = vcmp.eq.s32.totalorder %v5660_v34, 2 }
 0x143   :  { %v5750_v39 = vmul.u32.u64.low %v1366_v24, %v1365_v28  ;;  %v5751_v15 = vmul.u32.u64.high %v1366_v24, %v1365_v28, %v5750_v39  ;;  %v7563_v60 = vsub.s32 4, %v7552_v17  ;;  %v994_v40 = vsel %vm5693_vm6, %v4975_v2, %v5669_v29 }
 0x144   :  { %v1431_v42 = vadd.s32 1, %v4373_v37  ;;  %v1089_v8 = vand.u32 2147483647, %v1088_v9  ;;  %v1091_v63 = vcvt.s32.f32 %v1084_v62  ;;  %v1192_v31 = vand.u32 2147483647, %v1191_v19 }
 0x145   :  { %v993_v54 = vsel %vm908_vm1, %v7563_v60, %v7552_v17  ;;  %v1194_v20 = vcvt.s32.f32 %v1187_v32  ;;  %vm4368_vm0 = vcmp.lt.s32.totalorder %v4367_v21, 0  ;;  %v1373_v4 = vmul.u32 %v1366_v24, %v1357_v13 }
 0x146   :  { %v1376_v0 = vadd.s32 1, %v5745_v48  ;;  %vm1432_vm2 = vcmp.gt.s32.totalorder %v1431_v42, 0  ;;  %v7385_v59 = vxor.u32 2147483648, %v5700_v61  ;;  %v5767_v17 = vsel %vm5693_vm6, 0, %v993_v54 }
 0x147   :  { %7564 = vst [vmem:[#allocation40_spill] sm:$0xff] %v5767_v17  ;;  %4618 = vcosq.f32 %v994_v40  ;;  %v7565_v29 = vsub.s32 4, %v5483_v7  ;;  %v7386_v9 = vxor.u32 2147483648, %v5711_v50  ;;  %vm1375_vm1 = vc.u32 %v5751_v15, %v5744_v12 }
 0x148   :  { %v7387_v24 = vand.u32 2147483647, %v7557_v14  ;;  %v1433_v32 = vsel %vm1432_vm2, %v1431_v42, 0  ;;  %v903_v3 = vsel %vm901_vm15, %v7385_v59, %v5711_v50  ;;  %v5783_v19 = vmul.f32 %v1091_v63, %v1089_v8 }
 0x149   :  { %v1096_v62 = vsel %vm1011_vm10, %v7565_v29, %v5483_v7  ;;  %v1286_v10 = vsel %vm4368_vm0, 0, %v4367_v21  ;;  %v1377_v16 = vsel %vm1375_vm1, %v1376_v0, %v5745_v48  ;;  %v900_v7 = vsel %vm898_vm12, %v5700_v61, %v7386_v9 }
 0x14a   :  { %v5791_v47 = vmul.f32 %v1194_v20, %v1192_v31  ;;  %v1378_v41 = vadd.s32 %v1377_v16, %v1373_v4  ;;  %v1435_v28 = vand.u32 31, %v1433_v32  ;;  %v5794_v37 = vmul.f32 0.1, %v5634_v18  ;;  %v7568_v4 = vld [vmem:[#allocation17_spill] sm:$0xff] }
 0x14b   :  { %4620 = vsinq.f32 %v994_v40  ;;  %v5797_v13 = vand.u32 3, %v5767_v17  ;;  %v5801_v48 = vsel %vm5738_vm14, 0, %v1096_v62  ;;  %v1291_v21 = vsub.s32 4294967266, %v1286_v10 }
 0x14c   :  { %7566 = vst [vmem:[#allocation41_spill] sm:$0xff] %v5794_v37  ;;  %7567 = vst [vmem:[#allocation42_spill] sm:$0xff] %v5801_v48  ;;  %v1379_v39 = vadd.s32 536870912, %v1378_v41  ;;  %v1428_v60 = vand.u32 8388607, %v7387_v24  ;;  %v1436_v54 = vsub.s32 32, %v1435_v28  ;;  %v5807_v42 = vsel %vm897_vm13, %v900_v7, %v903_v3 }
 0x14d   :  { %v1093_v18 = vxor.u32 2147483648, %v5783_v19  ;;  %v5811_v40 = vand.u32 3, %v5801_v48  ;;  %v1271_v8 = vadd.s32 %v5624_v56, %v5646_v53  ;;  %v1287_v31 = vsub.s32 32, %v1286_v10 }
 0x14e   :  { %v5816_v20 = vshrl.u32 %v1379_v39, 30  ;;  %v1527_v0 = vand.u32 2139095040, %v7568_v4  ;;  %v1438_v29 = vshll.u32 %v7527_v1, %v1435_v28  ;;  %v1439_v34 = vshrl.u32 %v7520_v27, %v1436_v54 }
 0x14f   :  { %v1441_v62 = vshll.u32 %v7520_v27, %v1435_v28  ;;  %v1442_v3 = vshrl.u32 %v7534_v11, %v1436_v54  ;;  %v1292_v16 = vadd.s32 127, %v1291_v21  ;;  %v1429_v59 = vor.u32 8388608, %v1428_v60 }
 0x150   :  { %v1381_v7 = vshll.u32 %v5816_v20, 30  ;;  %v1434_v56 = vshrl.u32 %v1433_v32, 5  ;;  %v1444_v53 = vshll.u32 %v7534_v11, %v1435_v28  ;;  %v1445_v39 = vshrl.u32 %v7535_v55, %v1436_v54 }
 0x151   :  { %v1447_v9 = vshll.u32 %v7535_v55, %v1435_v28  ;;  %v1448_v24 = vshrl.u32 %v7537_v38, %v1436_v54  ;;  %vm1114_vm3 = vcmp.lt.s32.totalorder %v4982_v58, 0  ;;  %v1288_v63 = vshll.u32 %v5702_v22, %v1286_v10 }
 0x152   :  { %v5830_v37 = vsub.s32 %v1378_v41, %v1381_v7  ;;  %v1450_v21 = vshll.u32 %v7537_v38, %v1435_v28  ;;  %v1528_v25 = vshrl.u32 %v1527_v0, 23  ;;  %v1289_v5 = vshrl.u32 %v1271_v8, %v1287_v31 }
 0x153   :  { %v1440_v60 = vor.u32 %v1439_v34, %v1438_v29  ;;  %v1443_v32 = vor.u32 %v1442_v3, %v1441_v62  ;;  %v1451_v61 = vshrl.u32 %v7513_v57, %v1436_v54  ;;  %v1437_v48 = vshrl.u32 %v7527_v1, %v1436_v54 }
 0x154   :  { %v5834_v50 = vpop.eup %4618  ;;  %v1384_v35 = vsub.s32 0, %v5830_v37  ;;  %v1449_v33 = vor.u32 %v1448_v24, %v1447_v9  ;;  %vm1453_vm4 = vcmp.lt.s32.totalorder %v1434_v56, 1  ;;  %vm1001_vm5 = vcmp.eq.s32.totalorder %v5797_v13, 0 }
 0x155   :  { %7569 = vst [vmem:[#allocation43_spill] sm:$0xff] %v5834_v50  ;;  %vm1004_vm6 = vcmp.eq.s32.totalorder %v5797_v13, 2  ;;  %v7570_v22 = vand.u32 2147483647, %v4982_v58  ;;  %v1293_v41 = vshll.u32 %v1292_v16, 23  ;;  %v1446_v28 = vor.u32 %v1445_v39, %v1444_v53 }
 0x156   :  { %v1452_v8 = vor.u32 %v1451_v61, %v1450_v21  ;;  %vm1456_vm8 = vcmp.lt.s32.totalorder %v1434_v56, 4  ;;  %v4370_v31 = vmin.u32 %v1384_v35, %v5830_v37  ;;  %vm1455_vm9 = vcmp.lt.s32.totalorder %v1434_v56, 3 }
 0x157   :  { %vm5842_vm7 = vcmp.le.f32.partialorder %v7570_v22, 0.7853982  ;;  %v1469_v54 = vshll.u32 %v1429_v59, 8  ;;  %v4377_v9 = vadd.s32 4294967169, %v1528_v25  ;;  %v1290_v24 = vor.u32 %v1289_v5, %v1288_v63 }
 0x158   :  { %vm1454_vm11 = vcmp.lt.s32.totalorder %v1434_v56, 2  ;;  %v1458_v0 = vsel %vm1456_vm8, %v1446_v28, 2102212464  ;;  %v1461_v29 = vsel %vm1453_vm4, %v1440_v60, %v1443_v32  ;;  %v5849_v34 = vpop.eup %4620  ;;  %vm1000_vm12 = vcmp.lt.s32.totalorder %v5797_v13, 2 }
 0x159   :  { %7573 = vst [vmem:[#allocation44_spill] sm:$0xff] %v5849_v34  ;;  %v1386_v62 = vclz %v4370_v31  ;;  %v1457_v3 = vsel %vm1453_vm4, %v1437_v48, %v1440_v60  ;;  %v1459_v61 = vsel %vm1455_vm9, %v1443_v32, %v1458_v0  ;;  %v1462_v35 = vsel %vm1456_vm8, %v1449_v33, 920167782 }
 0x15a   :  { %vm895_vm13 = vweird.f32 %v4961_v46  ;;  %v1294_v25 = vor.u32 4788187, %v1293_v41  ;;  %v1463_v5 = vsel %vm1455_vm9, %v1446_v28, %v1462_v35  ;;  %v1465_v59 = vsel %vm1453_vm4, %v1443_v32, %v1446_v28 }
 0x15b   :  { %v1466_v63 = vsel %vm1456_vm8, %v1452_v8, 1326507024  ;;  %v1094_v16 = vsel %vm1011_vm10, %v1093_v18, %v5783_v19  ;;  %v4371_v7 = vadd.s32 4294967294, %v1386_v62  ;;  %v1464_v48 = vsel %vm1454_vm11, %v1461_v29, %v1463_v5 }
 0x15c   :  { %v1467_v53 = vsel %vm1455_vm9, %v1449_v33, %v1466_v63  ;;  %v1460_v39 = vsel %vm1454_vm11, %v1457_v3, %v1459_v61  ;;  %v5866_v60 = vmul.u32.u64.low %v1469_v54, %v1464_v48  ;;  %v5867_v22 = vmul.u32.u64.high %v1469_v54, %v1464_v48, %v5866_v60 }
 0x15d   :  { %v1468_v21 = vsel %vm1454_vm11, %v1465_v59, %v1467_v53  ;;  %vm4372_vm15 = vcmp.lt.s32.totalorder %v4371_v7, 0  ;;  %v1534_v28 = vadd.s32 1, %v4377_v9  ;;  %v7398_v19 = vxor.u32 2147483648, %v5834_v50 }
 0x15e   :  { %v5870_v32 = vmul.u32.u64.low %v1469_v54, %v1468_v21  ;;  %v5871_v41 = vmul.u32.u64.high %v1469_v54, %v1468_v21, %v5870_v32  ;;  %v7574_v18 = vxor.u32 2147483648, %v5791_v47  ;;  %v1295_v8 = vand.u32 2147483647, %v1294_v25 }
 0x15f   :  { %v1297_v56 = vcvt.s32.f32 %v1290_v24  ;;  %v7399_v31 = vxor.u32 2147483648, %v5849_v34  ;;  %v1198_v0 = vsub.s32 4, %v5574_v44  ;;  %v1476_v29 = vmul.u32 %v1469_v54, %v1460_v39 }
 0x160   :  { %v1197_v33 = vsel %vm1114_vm3, %v7574_v18, %v5791_v47  ;;  %vm1535_vm10 = vcmp.gt.s32.totalorder %v1534_v28, 0  ;;  %v1097_v9 = vsel %vm5738_vm14, %v7559_v43, %v1094_v16  ;;  %vm1217_vm0 = vcmp.lt.s32.totalorder %v4984_v30, 0 }
 0x161   :  { %v1389_v62 = vsel %vm4372_vm15, 0, %v4371_v7  ;;  %v1479_v3 = vadd.s32 1, %v5867_v22  ;;  %v1536_v61 = vsel %vm1535_vm10, %v1534_v28, 0  ;;  %v1003_v47 = vsel %vm1001_vm5, %v5834_v50, %v7399_v31  ;;  %v7575_v28 = vld [vmem:[#allocation18_spill] sm:$0xff] }
 0x162   :  { %v1006_v54 = vsel %vm1004_vm6, %v7398_v19, %v5849_v34  ;;  %v5899_v36 = vsel %vm5842_vm7, %v4982_v58, %v1197_v33  ;;  %vm1478_vm14 = vc.u32 %v5871_v41, %v5866_v60  ;;  %v1298_v24 = vmul.f32 %v1297_v56, %v1295_v8 }
 0x163   :  { %v1480_v35 = vsel %vm1478_vm14, %v1479_v3, %v5867_v22  ;;  %v7400_v25 = vand.u32 2147483647, %v7568_v4  ;;  %v1538_v5 = vand.u32 31, %v1536_v61  ;;  %v5908_v59 = vsel %vm895_vm13, nan, %v5807_v42 }
 0x164   :  { %4622 = vcosq.f32 %v1097_v9  ;;  %v1394_v63 = vsub.s32 4294967266, %v1389_v62  ;;  %v1481_v16 = vadd.s32 %v1480_v35, %v1476_v29  ;;  %v5912_v7 = vsel %vm1000_vm12, %v1003_v47, %v1006_v54 }
 0x165   :  { %4624 = vsinq.f32 %v1097_v9  ;;  %v5917_v48 = vsel %vm1114_vm3, %v1198_v0, %v5574_v44  ;;  %v1539_v53 = vsub.s32 32, %v1538_v5  ;;  %v1374_v42 = vadd.s32 %v5744_v12, %v5751_v15 }
 0x166   :  { %4626 = vcosq.f32 %v5899_v36  ;;  %v1482_v21 = vadd.s32 536870912, %v1481_v16  ;;  %v1299_v22 = vxor.u32 2147483648, %v1298_v24  ;;  %v1390_v32 = vsub.s32 32, %v1389_v62 }
 0x167   :  { %v1531_v13 = vand.u32 8388607, %v7400_v25  ;;  %v1630_v18 = vand.u32 2139095040, %v7575_v28  ;;  %v1395_v33 = vadd.s32 127, %v1394_v63  ;;  %v1537_v44 = vshrl.u32 %v1536_v61, 5 }
 0x168   :  { %v5926_v8 = vshrl.u32 %v1482_v21, 30  ;;  %v1541_v56 = vshll.u32 %v7527_v1, %v1538_v5  ;;  %v1542_v0 = vshrl.u32 %v7520_v27, %v1539_v53  ;;  %v1544_v29 = vshll.u32 %v7520_v27, %v1538_v5 }
 0x169   :  { %v1545_v12 = vshrl.u32 %v7534_v11, %v1539_v53  ;;  %v1547_v15 = vshll.u32 %v7534_v11, %v1538_v5  ;;  %v1548_v3 = vshrl.u32 %v7535_v55, %v1539_v53  ;;  %v1550_v47 = vshll.u32 %v7535_v55, %v1538_v5 }
 0x16a   :  { %v1484_v9 = vshll.u32 %v5926_v8, 30  ;;  %v1551_v54 = vshrl.u32 %v7537_v38, %v1539_v53  ;;  %v1391_v61 = vshll.u32 %v5830_v37, %v1389_v62  ;;  %v1392_v35 = vshrl.u32 %v1374_v42, %v1390_v32 }
 0x16b   :  { %v1553_v63 = vshll.u32 %v7537_v38, %v1538_v5  ;;  %v1631_v21 = vshrl.u32 %v1630_v18, 23  ;;  %v1300_v19 = vsel %vm1217_vm0, %v1299_v22, %v1298_v24  ;;  %v1396_v31 = vshll.u32 %v1395_v33, 23 }
 0x16c   :  { %v5941_v25 = vsub.s32 %v1481_v16, %v1484_v9  ;;  %v1532_v39 = vor.u32 8388608, %v1531_v13  ;;  %v7576_v46 = vand.u32 2147483647, %v4984_v30  ;;  %v1540_v34 = vshrl.u32 %v7527_v1, %v1539_v53 }
 0x16d   :  { %v1543_v37 = vor.u32 %v1542_v0, %v1541_v56  ;;  %v1546_v62 = vor.u32 %v1545_v12, %v1544_v29  ;;  %v1554_v5 = vshrl.u32 %v7513_v57, %v1539_v53  ;;  %v1549_v32 = vor.u32 %v1548_v3, %v1547_v15 }
 0x16e   :  { %vm5945_vm2 = vcmp.le.f32.partialorder %v7576_v46, 0.7853982  ;;  %v1487_v42 = vsub.s32 0, %v5941_v25  ;;  %v1552_v24 = vor.u32 %v1551_v54, %v1550_v47  ;;  %vm1556_vm1 = vcmp.lt.s32.totalorder %v1537_v44, 1 }
 0x16f   :  { %vm1107_vm3 = vcmp.eq.s32.totalorder %v5811_v40, 2  ;;  %v1393_v16 = vor.u32 %v1392_v35, %v1391_v61  ;;  %v1555_v22 = vor.u32 %v1554_v5, %v1553_v63  ;;  %vm1559_vm4 = vcmp.lt.s32.totalorder %v1537_v44, 4 }
 0x170   :  { %v4381_v46 = vadd.s32 4294967169, %v1631_v21  ;;  %vm1104_vm5 = vcmp.eq.s32.totalorder %v5811_v40, 0  ;;  %v1397_v13 = vor.u32 4788187, %v1396_v31  ;;  %v4374_v18 = vmin.u32 %v1487_v42, %v5941_v25 }
 0x171   :  { %vm1558_vm6 = vcmp.lt.s32.totalorder %v1537_v44, 3  ;;  %v1572_v33 = vshll.u32 %v1532_v39, 8  ;;  %v5955_v56 = vpop.eup %4622  ;;  %vm1557_vm8 = vcmp.lt.s32.totalorder %v1537_v44, 2  ;;  %v1560_v53 = vsel %vm1556_vm1, %v1540_v34, %v1543_v37 }
 0x172   :  { %7579 = vst [vmem:[#allocation45_spill] sm:$0xff] %v5955_v56  ;;  %v1561_v0 = vsel %vm1559_vm4, %v1549_v32, 2102212464  ;;  %v1564_v29 = vsel %vm1556_vm1, %v1543_v37, %v1546_v62  ;;  %v5960_v12 = vpop.eup %4624  ;;  %v1489_v15 = vclz %v4374_v18  ;;  %v1565_v31 = vsel %vm1559_vm4, %v1552_v24, 920167782 }
 0x173   :  { %7580 = vst [vmem:[#allocation46_spill] sm:$0xff] %v5960_v12  ;;  %v1562_v9 = vsel %vm1558_vm6, %v1546_v62, %v1561_v0  ;;  %v1568_v3 = vsel %vm1556_vm1, %v1546_v62, %v1549_v32  ;;  %v5965_v47 = vpop.eup %4626  ;;  %v1400_v39 = vcvt.s32.f32 %v1393_v16  ;;  %v1566_v54 = vsel %vm1558_vm6, %v1549_v32, %v1565_v31 }
 0x174   :  { %7581 = vst [vmem:[#allocation47_spill] sm:$0xff] %v5965_v47  ;;  %v1569_v34 = vsel %vm1559_vm4, %v1555_v22, 1326507024  ;;  %v1637_v61 = vadd.s32 1, %v4381_v46  ;;  %v1398_v35 = vand.u32 2147483647, %v1397_v13  ;;  %v1563_v63 = vsel %vm1557_vm8, %v1560_v53, %v1562_v9 }
 0x175   :  { %v1567_v21 = vsel %vm1557_vm8, %v1564_v29, %v1566_v54  ;;  %v1570_v37 = vsel %vm1558_vm6, %v1552_v24, %v1569_v34  ;;  %vm1320_vm9 = vcmp.lt.s32.totalorder %v4986_v52, 0  ;;  %v4375_v32 = vadd.s32 4294967294, %v1489_v15 }
 0x176   :  { %v1571_v5 = vsel %vm1557_vm8, %v1568_v3, %v1570_v37  ;;  %v5974_v62 = vmul.u32.u64.low %v1572_v33, %v1567_v21  ;;  %v5975_v42 = vmul.u32.u64.high %v1572_v33, %v1567_v21, %v5974_v62  ;;  %vm1638_vm11 = vcmp.gt.s32.totalorder %v1637_v61, 0 }
 0x177   :  { %v5978_v16 = vmul.u32.u64.low %v1572_v33, %v1571_v5  ;;  %v5979_v22 = vmul.u32.u64.high %v1572_v33, %v1571_v5, %v5978_v16  ;;  %v1639_v46 = vsel %vm1638_vm11, %v1637_v61, 0  ;;  %v7406_v13 = vxor.u32 2147483648, %v5955_v56 }
 0x178   :  { %v5985_v24 = vsel %vm5842_vm7, 0, %v5917_v48  ;;  %4628 = vsinq.f32 %v5899_v36  ;;  %v1641_v44 = vand.u32 31, %v1639_v46  ;;  %v7583_v18 = vsub.s32 4, %v5684_v49 }
 0x179   :  { %7582 = vst [vmem:[#allocation48_spill] sm:$0xff] %v5985_v24  ;;  %v1303_v0 = vsel %vm5945_vm2, %v4984_v30, %v1300_v19  ;;  %v7584_v29 = vand.u32 2147483647, %v4986_v52  ;;  %v1401_v10 = vmul.f32 %v1400_v39, %v1398_v35  ;;  %v1579_v48 = vmul.u32 %v1572_v33, %v1563_v63 }
 0x17a   :  { %v1302_v53 = vsel %vm1217_vm0, %v7583_v18, %v5684_v49  ;;  %v7407_v36 = vxor.u32 2147483648, %v5960_v12  ;;  %v6004_v9 = vand.u32 3, %v5985_v24  ;;  %v1582_v31 = vadd.s32 1, %v5975_v42 }
 0x17b   :  { %vm5998_vm12 = vcmp.le.f32.partialorder %v7584_v29, 0.7853982  ;;  %v7408_v49 = vand.u32 2147483647, %v7575_v28  ;;  %v6013_v19 = vsel %vm1107_vm3, %v7406_v13, %v5960_v12  ;;  %vm4376_vm7 = vcmp.lt.s32.totalorder %v4375_v32, 0 }
 0x17c   :  { %vm1581_vm15 = vc.u32 %v5979_v22, %v5974_v62  ;;  %v1642_v33 = vsub.s32 32, %v1641_v44  ;;  %v6022_v3 = vsel %vm1104_vm5, %v5955_v56, %v7407_v36  ;;  %v6026_v39 = vsel %vm5945_vm2, 0, %v1302_v53 }
 0x17d   :  { %7587 = vst [vmem:[#allocation49_spill] sm:$0xff] %v6026_v39  ;;  %4630 = vcosq.f32 %v1303_v0  ;;  %v1583_v54 = vsel %vm1581_vm15, %v1582_v31, %v5975_v42  ;;  %v6030_v34 = vand.u32 3, %v6026_v39  ;;  %v1402_v61 = vxor.u32 2147483648, %v1401_v10 }
 0x17e   :  { %4632 = vsinq.f32 %v1303_v0  ;;  %v1584_v35 = vadd.s32 %v1583_v54, %v1579_v48  ;;  %v6032_v63 = vsel %vm4376_vm7, 0, %v4375_v32  ;;  %v1634_v21 = vand.u32 8388607, %v7408_v49 }
 0x17f   :  { %v1644_v37 = vshll.u32 %v7527_v1, %v1641_v44  ;;  %v1653_v50 = vshll.u32 %v7535_v55, %v1641_v44  ;;  %v1645_v16 = vshrl.u32 %v7520_v27, %v1642_v33  ;;  %v1647_v42 = vshll.u32 %v7520_v27, %v1641_v44 }
 0x180   :  { %v1585_v5 = vadd.s32 536870912, %v1584_v35  ;;  %v1648_v18 = vshrl.u32 %v7534_v11, %v1642_v33  ;;  %v6041_v53 = vshrl.u32 %v1639_v46, 5  ;;  %v1650_v0 = vshll.u32 %v7534_v11, %v1641_v44 }
 0x181   :  { %v1651_v32 = vshrl.u32 %v7535_v55, %v1642_v33  ;;  %v1654_v29 = vshrl.u32 %v7537_v38, %v1642_v33  ;;  %vm1207_vm10 = vcmp.eq.s32.totalorder %v6004_v9, 0  ;;  %vm1210_vm0 = vcmp.eq.s32.totalorder %v6004_v9, 2 }
 0x182   :  { %v1403_v31 = vsel %vm1320_vm9, %v1402_v61, %v1401_v10  ;;  %v1477_v54 = vadd.s32 %v5866_v60, %v5871_v41  ;;  %v6053_v46 = vshrl.u32 %v1585_v5, 30  ;;  %v1497_v13 = vsub.s32 4294967266, %v6032_v63 }
 0x183   :  { %v1655_v36 = vor.u32 %v1654_v29, %v1653_v50  ;;  %v1656_v49 = vshll.u32 %v7537_v38, %v1641_v44  ;;  %v1657_v56 = vshrl.u32 %v7513_v57, %v1642_v33  ;;  %v1635_v39 = vor.u32 8388608, %v1634_v21 }
 0x184   :  { %v1587_v12 = vshll.u32 %v6053_v46, 30  ;;  %v1646_v24 = vor.u32 %v1645_v16, %v1644_v37  ;;  %v1649_v48 = vor.u32 %v1648_v18, %v1647_v42  ;;  %v1406_v10 = vsel %vm5998_vm12, %v4986_v52, %v1403_v31 }
 0x185   :  { %v1652_v61 = vor.u32 %v1651_v32, %v1650_v0  ;;  %vm1659_vm14 = vcmp.lt.s32.totalorder %v6041_v53, 1  ;;  %vm1662_vm2 = vcmp.lt.s32.totalorder %v6041_v53, 4  ;;  %v6064_v60 = vpop.eup %4628  ;;  %v1493_v41 = vsub.s32 32, %v6032_v63 }
 0x186   :  { %7588 = vst [vmem:[#allocation50_spill] sm:$0xff] %v6064_v60  ;;  %v6067_v44 = vsub.s32 %v1584_v35, %v1587_v12  ;;  %v1643_v50 = vshrl.u32 %v7527_v1, %v1642_v33  ;;  %vm1661_vm1 = vcmp.lt.s32.totalorder %v6041_v53, 3  ;;  %vm1310_vm3 = vcmp.eq.s32.totalorder %v6030_v34, 0 }
 0x187   :  { %vm1313_vm4 = vcmp.eq.s32.totalorder %v6030_v34, 2  ;;  %v1498_v21 = vadd.s32 127, %v1497_v13  ;;  %v1658_v37 = vor.u32 %v1657_v56, %v1656_v49  ;;  %v1664_v5 = vsel %vm1662_vm2, %v1652_v61, 2102212464 }
 0x188   :  { %v1668_v16 = vsel %vm1662_vm2, %v1655_v36, 920167782  ;;  %v1590_v42 = vsub.s32 0, %v6067_v44  ;;  %vm1660_vm5 = vcmp.lt.s32.totalorder %v6041_v53, 2  ;;  %v1667_v12 = vsel %vm1659_vm14, %v1646_v24, %v1649_v48 }
 0x189   :  { %v1675_v33 = vshll.u32 %v1635_v39, 8  ;;  %v7415_v35 = vxor.u32 2147483648, %v6064_v60  ;;  %4634 = vcosq.f32 %v1406_v10  ;;  %v1494_v56 = vshll.u32 %v5941_v25, %v6032_v63 }
 0x18a   :  { %v1669_v13 = vsel %vm1661_vm1, %v1652_v61, %v1668_v16  ;;  %v6086_v49 = vpop.eup %4630  ;;  %v4378_v18 = vmin.u32 %v1590_v42, %v6067_v44  ;;  %v1663_v0 = vsel %vm1659_vm14, %v1643_v50, %v1646_v24  ;;  %v1665_v32 = vsel %vm1661_vm1, %v1649_v48, %v1664_v5 }
 0x18b   :  { %7589 = vst [vmem:[#allocation51_spill] sm:$0xff] %v6086_v49  ;;  %v1671_v39 = vsel %vm1659_vm14, %v1649_v48, %v1652_v61  ;;  %v6095_v29 = vpop.eup %4632  ;;  %vm1103_vm6 = vcmp.lt.s32.totalorder %v5811_v40, 2  ;;  %vm1206_vm8 = vcmp.lt.s32.totalorder %v6004_v9, 2  ;;  %v1495_v25 = vshrl.u32 %v1477_v54, %v1493_v41 }
 0x18c   :  { %7590 = vst [vmem:[#allocation52_spill] sm:$0xff] %v6095_v29  ;;  %v1499_v63 = vshll.u32 %v1498_v21, 23  ;;  %v1670_v31 = vsel %vm1660_vm5, %v1667_v12, %v1669_v13  ;;  %v1672_v24 = vsel %vm1662_vm2, %v1658_v37, 1326507024  ;;  %v1592_v50 = vclz %v4378_v18  ;;  %v7592_v13 = vld [vmem:[#allocation19_spill] sm:$0xff] }
 0x18d   :  { %v1673_v5 = vsel %vm1661_vm1, %v1655_v36, %v1672_v24  ;;  %v6105_v16 = vmul.u32.u64.low %v1675_v33, %v1670_v31  ;;  %v6106_v48 = vmul.u32.u64.high %v1675_v33, %v1670_v31, %v6105_v16  ;;  %vm998_vm11 = vweird.f32 %v4975_v2 }
 0x18e   :  { %v1209_v54 = vsel %vm1207_vm10, %v5965_v47, %v7415_v35  ;;  %v7591_v61 = vxor.u32 2147483648, %v5965_v47  ;;  %vm1309_vm7 = vcmp.lt.s32.totalorder %v6030_v34, 2  ;;  %v1666_v36 = vsel %vm1660_vm5, %v1663_v0, %v1665_v32 }
 0x18f   :  { %v1674_v21 = vsel %vm1660_vm5, %v1671_v39, %v1673_v5  ;;  %v4379_v37 = vadd.s32 4294967294, %v1592_v50  ;;  %v1733_v18 = vand.u32 2139095040, %v7592_v13  ;;  %v7418_v31 = vxor.u32 2147483648, %v6095_v29 }
 0x190   :  { %v1212_v41 = vsel %vm1210_vm0, %v7591_v61, %v6064_v60  ;;  %v6125_v42 = vmul.u32.u64.low %v1675_v33, %v1674_v21  ;;  %v6126_v12 = vmul.u32.u64.high %v1675_v33, %v1674_v21, %v6125_v42  ;;  %v7421_v24 = vxor.u32 2147483648, %v6086_v49 }
 0x191   :  { %v1496_v35 = vor.u32 %v1495_v25, %v1494_v56  ;;  %v1500_v61 = vor.u32 4788187, %v1499_v63  ;;  %4636 = vsinq.f32 %v1406_v10  ;;  %vm4380_vm15 = vcmp.lt.s32.totalorder %v4379_v37, 0 }
 0x192   :  { %v1685_v47 = vadd.s32 1, %v6106_v48  ;;  %v1734_v0 = vshrl.u32 %v1733_v18, 23  ;;  %vm1101_vm10 = vweird.f32 %v7559_v43  ;;  %vm7429_vm0 = vweird.f32 %v4982_v58 }
 0x193   :  { %v1404_v53 = vsub.s32 4, %v5816_v20  ;;  %v1580_v32 = vadd.s32 %v5974_v62, %v5979_v22  ;;  %v1595_v39 = vsel %vm4380_vm15, 0, %v4379_v37  ;;  %v1682_v50 = vmul.u32 %v1675_v33, %v1666_v36  ;;  %v7593_v37 = vld [vmem:[#allocation20_spill] sm:$0xff] }
 0x194   :  { %v1312_v10 = vsel %vm1310_vm3, %v6086_v49, %v7418_v31  ;;  %v1315_v56 = vsel %vm1313_vm4, %v7421_v24, %v6095_v29  ;;  %v1596_v25 = vsub.s32 32, %v1595_v39  ;;  %v1600_v63 = vsub.s32 4294967266, %v1595_v39 }
 0x195   :  { %v1501_v5 = vand.u32 2147483647, %v1500_v61  ;;  %v1503_v21 = vcvt.s32.f32 %v1496_v35  ;;  %vm1684_vm14 = vc.u32 %v6126_v12, %v6105_v16  ;;  %v4385_v62 = vadd.s32 4294967169, %v1734_v0 }
 0x196   :  { %v1601_v22 = vadd.s32 127, %v1600_v63  ;;  %v1686_v33 = vsel %vm1684_vm14, %v1685_v47, %v6106_v48  ;;  %v7424_v36 = vand.u32 2147483647, %v7592_v13  ;;  %v1836_v42 = vand.u32 2139095040, %v7593_v37  ;;  %v6153_v29 = vpop.eup %4634 }
 0x197   :  { %v1597_v18 = vshll.u32 %v6067_v44, %v1595_v39  ;;  %v1598_v31 = vshrl.u32 %v1580_v32, %v1596_v25  ;;  %v1687_v49 = vadd.s32 %v1686_v33, %v1682_v50  ;;  %v1740_v24 = vadd.s32 1, %v4385_v62  ;;  %7594 = vst [vmem:[#allocation19_spill] sm:$0xff] %v6153_v29 }
 0x198   :  { %v6158_v35 = vsel %vm998_vm11, nan, %v5912_v7  ;;  %v1110_v47 = vsel %vm1103_vm6, %v6022_v3, %v6013_v19  ;;  %v1213_v48 = vsel %vm1206_vm8, %v1209_v54, %v1212_v41  ;;  %vm7428_vm2 = vweird.f32 %v4984_v30 }
 0x199   :  { %v1405_v44 = vsel %vm1320_vm9, %v1404_v53, %v5816_v20  ;;  %v1602_v61 = vshll.u32 %v1601_v22, 23  ;;  %v1688_v0 = vadd.s32 536870912, %v1687_v49  ;;  %vm1741_vm1 = vcmp.gt.s32.totalorder %v1740_v24, 0 }
 0x19a   :  { %v1316_v7 = vsel %vm1309_vm7, %v1312_v10, %v1315_v56  ;;  %v1504_v32 = vmul.f32 %v1503_v21, %v1501_v5  ;;  %v1737_v40 = vand.u32 8388607, %v7424_v36  ;;  %v1742_v19 = vsel %vm1741_vm1, %v1740_v24, 0 }
 0x19b   :  { %v1599_v3 = vor.u32 %v1598_v31, %v1597_v18  ;;  %v6174_v9 = vshrl.u32 %v1688_v0, 30  ;;  %v1744_v54 = vand.u32 31, %v1742_v19  ;;  %v1837_v41 = vshrl.u32 %v1836_v42, 23 }
 0x19c   :  { %v6178_v39 = vsel %vm1101_vm10, nan, %v1110_v47  ;;  %v6182_v20 = vsel %vm7429_vm0, nan, %v1213_v48  ;;  %v6186_v34 = vsel %vm5998_vm12, 0, %v1405_v44  ;;  %vm1423_vm9 = vcmp.lt.s32.totalorder %v7557_v14, 0 }
 0x19d   :  { %7595 = vst [vmem:[#allocation20_spill] sm:$0xff] %v6186_v34  ;;  %v6190_v31 = vand.u32 3, %v6186_v34  ;;  %v1603_v24 = vor.u32 4788187, %v1602_v61  ;;  %v1690_v53 = vshll.u32 %v6174_v9, 30  ;;  %v1745_v50 = vsub.s32 32, %v1744_v54 }
 0x19e   :  { %v6195_v10 = vsel %vm7428_vm2, nan, %v1316_v7  ;;  %v1505_v25 = vxor.u32 2147483648, %v1504_v32  ;;  %v6199_v63 = vpop.eup %4636  ;;  %v1606_v5 = vcvt.s32.f32 %v1599_v3  ;;  %v1738_v62 = vor.u32 8388608, %v1737_v40 }
 0x19f   :  { %7596 = vst [vmem:[#allocation53_spill] sm:$0xff] %v6199_v63  ;;  %v6201_v21 = vsub.s32 %v1687_v49, %v1690_v53  ;;  %v4389_v22 = vadd.s32 4294967169, %v1837_v41  ;;  %v1747_v33 = vshll.u32 %v7527_v1, %v1744_v54  ;;  %v1748_v42 = vshrl.u32 %v7520_v27, %v1745_v50 }
 0x1a0   :  { %v1750_v18 = vshll.u32 %v7520_v27, %v1744_v54  ;;  %v1751_v47 = vshrl.u32 %v7534_v11, %v1745_v50  ;;  %v1604_v48 = vand.u32 2147483647, %v1603_v24  ;;  %v1753_v61 = vshll.u32 %v7534_v11, %v1744_v54 }
 0x1a1   :  { %v1693_v44 = vsub.s32 0, %v6201_v21  ;;  %v1754_v0 = vshrl.u32 %v7535_v55, %v1745_v50  ;;  %vm1416_vm12 = vcmp.eq.s32.totalorder %v6190_v31, 2  ;;  %v1506_v7 = vsel %vm1423_vm9, %v1505_v25, %v1504_v32 }
 0x1a2   :  { %v1743_v40 = vshrl.u32 %v1742_v19, 5  ;;  %v1756_v3 = vshll.u32 %v7535_v55, %v1744_v54  ;;  %vm1413_vm3 = vcmp.eq.s32.totalorder %v6190_v31, 0  ;;  %v1746_v24 = vshrl.u32 %v7527_v1, %v1745_v50 }
 0x1a3   :  { %v4382_v41 = vmin.u32 %v1693_v44, %v6201_v21  ;;  %v6218_v53 = vshll.u32 %v1738_v62, 8  ;;  %v1843_v36 = vadd.s32 1, %v4389_v22  ;;  %v7597_v15 = vand.u32 2147483647, %v7557_v14 }
 0x1a4   :  { %v1749_v56 = vor.u32 %v1748_v42, %v1747_v33  ;;  %v1752_v32 = vor.u32 %v1751_v47, %v1750_v18  ;;  %v1755_v19 = vor.u32 %v1754_v0, %v1753_v61  ;;  %v1757_v25 = vshrl.u32 %v7537_v38, %v1745_v50 }
 0x1a5   :  { %vm6222_vm4 = vcmp.le.f32.partialorder %v7597_v15, 0.7853982  ;;  %v1607_v30 = vmul.f32 %v1606_v5, %v1604_v48  ;;  %v1695_v58 = vclz %v4382_v41  ;;  %v1759_v44 = vshll.u32 %v7537_v38, %v1744_v54 }
 0x1a6   :  { %v1760_v43 = vshrl.u32 %v7513_v57, %v1745_v50  ;;  %vm1412_vm5 = vcmp.lt.s32.totalorder %v6190_v31, 2  ;;  %vm1526_vm6 = vcmp.lt.s32.totalorder %v7568_v4, 0  ;;  %v1758_v62 = vor.u32 %v1757_v25, %v1756_v3 }
 0x1a7   :  { %vm1762_vm8 = vcmp.lt.s32.totalorder %v1743_v40, 1  ;;  %vm1763_vm7 = vcmp.lt.s32.totalorder %v1743_v40, 2  ;;  %vm1764_vm15 = vcmp.lt.s32.totalorder %v1743_v40, 3  ;;  %v4383_v15 = vadd.s32 4294967294, %v1695_v58 }
 0x1a8   :  { %v1761_v22 = vor.u32 %v1760_v43, %v1759_v44  ;;  %vm1765_vm14 = vcmp.lt.s32.totalorder %v1743_v40, 4  ;;  %v1766_v33 = vsel %vm1762_vm8, %v1746_v24, %v1749_v56  ;;  %v1770_v18 = vsel %vm1762_vm8, %v1749_v56, %v1752_v32 }
 0x1a9   :  { %v1767_v42 = vsel %vm1765_vm14, %v1755_v19, 2102212464  ;;  %v1771_v5 = vsel %vm1765_vm14, %v1758_v62, 920167782  ;;  %v1774_v47 = vsel %vm1762_vm8, %v1752_v32, %v1755_v19  ;;  %v7600_v54 = vand.u32 2147483647, %v7568_v4 }
 0x1aa   :  { %vm4384_vm2 = vcmp.lt.s32.totalorder %v4383_v15, 0  ;;  %v1768_v48 = vsel %vm1764_vm15, %v1752_v32, %v1767_v42  ;;  %v1772_v61 = vsel %vm1764_vm15, %v1755_v19, %v1771_v5  ;;  %v1775_v0 = vsel %vm1765_vm14, %v1761_v22, 1326507024 }
 0x1ab   :  { %vm6233_vm1 = vcmp.le.f32.partialorder %v7600_v54, 0.7853982  ;;  %v1698_v58 = vsel %vm4384_vm2, 0, %v4383_v15  ;;  %v1773_v43 = vsel %vm1763_vm7, %v1770_v18, %v1772_v61  ;;  %v1776_v3 = vsel %vm1764_vm15, %v1758_v62, %v1775_v0 }
 0x1ac   :  { %vm1844_vm0 = vcmp.gt.s32.totalorder %v1843_v36, 0  ;;  %v1703_v56 = vsub.s32 4294967266, %v1698_v58  ;;  %v1769_v41 = vsel %vm1763_vm7, %v1766_v33, %v1768_v48  ;;  %v1777_v24 = vsel %vm1763_vm7, %v1774_v47, %v1776_v3 }
 0x1ad   :  { %v7430_v25 = vand.u32 2147483647, %v7593_v37  ;;  %v6245_v44 = vmul.u32.u64.low %v6218_v53, %v1777_v24  ;;  %v6246_v54 = vmul.u32.u64.high %v6218_v53, %v1777_v24, %v6245_v44  ;;  %v7603_v62 = vxor.u32 2147483648, %v6153_v29 }
 0x1ae   :  { %v6249_v32 = vmul.u32.u64.low %v6218_v53, %v1773_v43  ;;  %v6250_v19 = vmul.u32.u64.high %v6218_v53, %v1773_v43, %v6249_v32  ;;  %v7604_v40 = vsub.s32 4, %v5926_v8  ;;  %v1608_v33 = vxor.u32 2147483648, %v1607_v30 }
 0x1af   :  { %v1418_v15 = vsel %vm1416_vm12, %v7603_v62, %v6199_v63  ;;  %v1845_v42 = vsel %vm1844_vm0, %v1843_v36, 0  ;;  %v7605_v18 = vxor.u32 2147483648, %v6199_v63  ;;  %v1683_v47 = vadd.s32 %v6105_v16, %v6126_v12 }
 0x1b0   :  { %v1508_v22 = vsel %vm1423_vm9, %v7604_v40, %v5926_v8  ;;  %v1699_v48 = vsub.s32 32, %v1698_v58  ;;  %v1847_v61 = vand.u32 31, %v1845_v42  ;;  %v1509_v0 = vsel %vm6222_vm4, %v7557_v14, %v1506_v7 }
 0x1b1   :  { %v1415_v5 = vsel %vm1413_vm3, %v6153_v29, %v7605_v18  ;;  %v1704_v43 = vadd.s32 127, %v1703_v56  ;;  %v1785_v8 = vmul.u32 %v6218_v53, %v1769_v41  ;;  %v1840_v36 = vand.u32 8388607, %v7430_v25 }
 0x1b2   :  { %v6278_v3 = vsel %vm6222_vm4, 0, %v1508_v22  ;;  %vm1787_vm0 = vc.u32 %v6246_v54, %v6249_v32  ;;  %v1788_v16 = vadd.s32 1, %v6250_v19  ;;  %v1848_v12 = vsub.s32 32, %v1847_v61 }
 0x1b3   :  { %7606 = vst [vmem:[#allocation54_spill] sm:$0xff] %v6278_v3  ;;  %v1419_v24 = vsel %vm1412_vm5, %v1415_v5, %v1418_v15  ;;  %v6286_v7 = vand.u32 3, %v6278_v3  ;;  %v1609_v53 = vsel %vm1526_vm6, %v1608_v33, %v1607_v30  ;;  %v1610_v56 = vsub.s32 4, %v6053_v46 }
 0x1b4   :  { %4638 = vcosq.f32 %v1509_v0  ;;  %v1700_v49 = vshll.u32 %v6201_v21, %v1698_v58  ;;  %v1701_v41 = vshrl.u32 %v1683_v47, %v1699_v48  ;;  %v1789_v44 = vsel %vm1787_vm0, %v1788_v16, %v6250_v19 }
 0x1b5   :  { %4640 = vsinq.f32 %v1509_v0  ;;  %v1705_v62 = vshll.u32 %v1704_v43, 23  ;;  %v1790_v40 = vadd.s32 %v1789_v44, %v1785_v8  ;;  %v1841_v22 = vor.u32 8388608, %v1840_v36 }
 0x1b6   :  { %v1612_v31 = vsel %vm6233_vm1, %v7568_v4, %v1609_v53  ;;  %v1850_v15 = vshll.u32 %v7527_v1, %v1847_v61  ;;  %v1851_v30 = vshrl.u32 %v7520_v27, %v1848_v12  ;;  %v1853_v33 = vshll.u32 %v7520_v27, %v1847_v61 }
 0x1b7   :  { %v1791_v18 = vadd.s32 536870912, %v1790_v40  ;;  %v1854_v21 = vshrl.u32 %v7534_v11, %v1848_v12  ;;  %v1856_v58 = vshll.u32 %v7534_v11, %v1847_v61  ;;  %v1857_v19 = vshrl.u32 %v7535_v55, %v1848_v12 }
 0x1b8   :  { %vm7485_vm2 = vweird.f32 %v4986_v52  ;;  %v1702_v5 = vor.u32 %v1701_v41, %v1700_v49  ;;  %v1846_v47 = vshrl.u32 %v1845_v42, 5  ;;  %v1859_v48 = vshll.u32 %v7535_v55, %v1847_v61 }
 0x1b9   :  { %v1860_v0 = vshrl.u32 %v7537_v38, %v1848_v12  ;;  %4642 = vcosq.f32 %v1612_v31  ;;  %v1706_v43 = vor.u32 4788187, %v1705_v62  ;;  %v6305_v8 = vshrl.u32 %v1791_v18, 30 }
 0x1ba   :  { %v1862_v36 = vshll.u32 %v7537_v38, %v1847_v61  ;;  %4644 = vsinq.f32 %v1612_v31  ;;  %v1849_v16 = vshrl.u32 %v7527_v1, %v1848_v12  ;;  %v1852_v53 = vor.u32 %v1851_v30, %v1850_v15  ;;  %v7607_v15 = vld [vmem:[#allocation21_spill] sm:$0xff] }
 0x1bb   :  { %v1863_v44 = vshrl.u32 %v7513_v57, %v1848_v12  ;;  %v1793_v25 = vshll.u32 %v6305_v8, 30  ;;  %v1855_v49 = vor.u32 %v1854_v21, %v1853_v33  ;;  %v1858_v42 = vor.u32 %v1857_v19, %v1856_v58 }
 0x1bc   :  { %v1861_v41 = vor.u32 %v1860_v0, %v1859_v48  ;;  %vm1516_vm9 = vcmp.eq.s32.totalorder %v6286_v7, 0  ;;  %v1709_v29 = vcvt.s32.f32 %v1702_v5  ;;  %vm1865_vm12 = vcmp.lt.s32.totalorder %v1846_v47, 1 }
 0x1bd   :  { %v1864_v63 = vor.u32 %v1863_v44, %v1862_v36  ;;  %vm1868_vm3 = vcmp.lt.s32.totalorder %v1846_v47, 4  ;;  %v1707_v62 = vand.u32 2147483647, %v1706_v43  ;;  %v6312_v18 = vsub.s32 %v1790_v40, %v1793_v25 }
 0x1be   :  { %vm1867_vm4 = vcmp.lt.s32.totalorder %v1846_v47, 3  ;;  %v1870_v61 = vsel %vm1868_vm3, %v1858_v42, 2102212464  ;;  %vm1866_vm5 = vcmp.lt.s32.totalorder %v1846_v47, 2  ;;  %v1869_v12 = vsel %vm1865_vm12, %v1849_v16, %v1852_v53 }
 0x1bf   :  { %v1881_v31 = vshll.u32 %v1841_v22, 8  ;;  %v1939_v30 = vand.u32 2139095040, %v7607_v15  ;;  %vm1629_vm8 = vcmp.lt.s32.totalorder %v7575_v28, 0  ;;  %v1796_v33 = vsub.s32 0, %v6312_v18 }
 0x1c0   :  { %v1871_v21 = vsel %vm1867_vm4, %v1855_v49, %v1870_v61  ;;  %v1873_v58 = vsel %vm1865_vm12, %v1852_v53, %v1855_v49  ;;  %v1874_v25 = vsel %vm1868_vm3, %v1861_v41, 920167782  ;;  %vm1515_vm7 = vcmp.lt.s32.totalorder %v6286_v7, 2 }
 0x1c1   :  { %vm1519_vm15 = vcmp.eq.s32.totalorder %v6286_v7, 2  ;;  %v1875_v40 = vsel %vm1867_vm4, %v1858_v42, %v1874_v25  ;;  %v1877_v22 = vsel %vm1865_vm12, %v1855_v49, %v1858_v42  ;;  %v1878_v19 = vsel %vm1868_vm3, %v1864_v63, 1326507024  ;;  %v6327_v5 = vpop.eup %4638 }
 0x1c2   :  { %7608 = vst [vmem:[#allocation21_spill] sm:$0xff] %v6327_v5  ;;  %v6331_v48 = vsel %vm7485_vm2, nan, %v1419_v24  ;;  %v1611_v0 = vsel %vm1526_vm6, %v1610_v56, %v6053_v46  ;;  %v1710_v43 = vmul.f32 %v1709_v29, %v1707_v62  ;;  %v4386_v36 = vmin.u32 %v1796_v33, %v6312_v18  ;;  %v6337_v16 = vpop.eup %4640 }
 0x1c3   :  { %7609 = vst [vmem:[#allocation55_spill] sm:$0xff] %v6337_v16  ;;  %v7610_v53 = vand.u32 2147483647, %v7575_v28  ;;  %v1872_v63 = vsel %vm1866_vm5, %v1869_v12, %v1871_v21  ;;  %v1876_v24 = vsel %vm1866_vm5, %v1873_v58, %v1875_v40  ;;  %v1879_v49 = vsel %vm1867_vm4, %v1861_v41, %v1878_v19 }
 0x1c4   :  { %v1940_v42 = vshrl.u32 %v1939_v30, 23  ;;  %v1798_v61 = vclz %v4386_v36  ;;  %v1880_v46 = vsel %vm1866_vm5, %v1877_v22, %v1879_v49  ;;  %v6355_v62 = vsel %vm6233_vm1, 0, %v1611_v0 }
 0x1c5   :  { %vm6341_vm14 = vcmp.le.f32.partialorder %v7610_v53, 0.7853982  ;;  %v6349_v29 = vmul.u32.u64.low %v1881_v31, %v1876_v24  ;;  %v6350_v56 = vmul.u32.u64.high %v1881_v31, %v1876_v24, %v6349_v29  ;;  %7613 = vst [vmem:[#allocation56_spill] sm:$0xff] %v6355_v62  ;;  %v7436_v21 = vxor.u32 2147483648, %v6337_v16 }
 0x1c6   :  { %v6357_v33 = vmul.u32.u64.low %v1881_v31, %v1880_v46  ;;  %v6358_v25 = vmul.u32.u64.high %v1881_v31, %v1880_v46, %v6357_v33  ;;  %v4393_v12 = vadd.s32 4294967169, %v1940_v42  ;;  %v7435_v41 = vxor.u32 2147483648, %v6327_v5  ;;  %v6365_v58 = vpop.eup %4642 }
 0x1c7   :  { %v6363_v30 = vand.u32 3, %v6355_v62  ;;  %v4387_v47 = vadd.s32 4294967294, %v1798_v61  ;;  %7614 = vst [vmem:[#allocation57_spill] sm:$0xff] %v6365_v58  ;;  %v1711_v40 = vxor.u32 2147483648, %v1710_v43  ;;  %v1713_v22 = vsub.s32 4, %v6174_v9  ;;  %v6368_v0 = vpop.eup %4644 }
 0x1c8   :  { %v1888_v50 = vmul.u32 %v1881_v31, %v1872_v63  ;;  %v1946_v19 = vadd.s32 1, %v4393_v12  ;;  %7615 = vst [vmem:[#allocation58_spill] sm:$0xff] %v6368_v0  ;;  %v1518_v36 = vsel %vm1516_vm9, %v6327_v5, %v7436_v21  ;;  %v1521_v53 = vsel %vm1519_vm15, %v7435_v41, %v6337_v16 }
 0x1c9   :  { %vm4388_vm6 = vcmp.lt.s32.totalorder %v4387_v47, 0  ;;  %v1891_v24 = vadd.s32 1, %v6350_v56  ;;  %v1786_v31 = vadd.s32 %v6249_v32, %v6246_v54  ;;  %vm1890_vm1 = vc.u32 %v6358_v25, %v6349_v29 }
 0x1ca   :  { %v1801_v63 = vsel %vm4388_vm6, 0, %v4387_v47  ;;  %vm1947_vm0 = vcmp.gt.s32.totalorder %v1946_v19, 0  ;;  %vm1619_vm12 = vcmp.eq.s32.totalorder %v6363_v30, 0  ;;  %v1712_v46 = vsel %vm1629_vm8, %v1711_v40, %v1710_v43 }
 0x1cb   :  { %v1802_v49 = vsub.s32 32, %v1801_v63  ;;  %v1806_v42 = vsub.s32 4294967266, %v1801_v63  ;;  %v1892_v61 = vsel %vm1890_vm1, %v1891_v24, %v6350_v56  ;;  %v1714_v33 = vsel %vm1629_vm8, %v1713_v22, %v6174_v9 }
 0x1cc   :  { %v1893_v12 = vadd.s32 %v1892_v61, %v1888_v50  ;;  %v1948_v54 = vsel %vm1947_vm0, %v1946_v19, 0  ;;  %v6394_v32 = vsel %vm1515_vm7, %v1518_v36, %v1521_v53  ;;  %vm1622_vm9 = vcmp.eq.s32.totalorder %v6363_v30, 2 }
 0x1cd   :  { %v1807_v47 = vadd.s32 127, %v1806_v42  ;;  %v7441_v41 = vand.u32 2147483647, %v7607_v15  ;;  %v1803_v56 = vshll.u32 %v6312_v18, %v1801_v63  ;;  %v1804_v24 = vshrl.u32 %v1786_v31, %v1802_v49 }
 0x1ce   :  { %v1894_v21 = vadd.s32 536870912, %v1893_v12  ;;  %v1950_v43 = vand.u32 31, %v1948_v54  ;;  %v7438_v40 = vxor.u32 2147483648, %v6368_v0  ;;  %v7437_v9 = vxor.u32 2147483648, %v6365_v58 }
 0x1cf   :  { %v1715_v7 = vsel %vm6341_vm14, %v7575_v28, %v1712_v46  ;;  %v6406_v22 = vsel %vm6341_vm14, 0, %v1714_v33  ;;  %v1808_v19 = vshll.u32 %v1807_v47, 23  ;;  %v1943_v31 = vand.u32 8388607, %v7441_v41 }
 0x1d0   :  { %7616 = vst [vmem:[#allocation59_spill] sm:$0xff] %v6406_v22  ;;  %v6409_v50 = vand.u32 3, %v6406_v22  ;;  %v6411_v18 = vshrl.u32 %v1894_v21, 30  ;;  %v1951_v36 = vsub.s32 32, %v1950_v43  ;;  %v6418_v53 = vsel %vm1619_vm12, %v6365_v58, %v7438_v40  ;;  %v7617_v21 = vld [vmem:[#allocation22_spill] sm:$0xff] }
 0x1d1   :  { %v6425_v44 = vsel %vm1622_vm9, %v7437_v9, %v6368_v0  ;;  %v2042_v63 = vand.u32 2139095040, %v7617_v21  ;;  %4646 = vcosq.f32 %v1715_v7  ;;  %v1805_v49 = vor.u32 %v1804_v24, %v1803_v56 }
 0x1d2   :  { %v1896_v42 = vshll.u32 %v6411_v18, 30  ;;  %v6431_v61 = vshrl.u32 %v1948_v54, 5  ;;  %v1953_v46 = vshll.u32 %v7527_v1, %v1950_v43  ;;  %v1954_v33 = vshrl.u32 %v7520_v27, %v1951_v36 }
 0x1d3   :  { %v1956_v47 = vshll.u32 %v7520_v27, %v1950_v43  ;;  %v1957_v9 = vshrl.u32 %v7534_v11, %v1951_v36  ;;  %v1809_v40 = vor.u32 4788187, %v1808_v19  ;;  %v1959_v41 = vshll.u32 %v7534_v11, %v1950_v43 }
 0x1d4   :  { %v6437_v58 = vsub.s32 %v1893_v12, %v1896_v42  ;;  %v1960_v0 = vshrl.u32 %v7535_v55, %v1951_v36  ;;  %4648 = vsinq.f32 %v1715_v7  ;;  %v1944_v56 = vor.u32 8388608, %v1943_v31 }
 0x1d5   :  { %v1962_v54 = vshll.u32 %v7535_v55, %v1950_v43  ;;  %v2043_v24 = vshrl.u32 %v2042_v63, 23  ;;  %v1812_v52 = vcvt.s32.f32 %v1805_v49  ;;  %v1963_v16 = vshrl.u32 %v7537_v38, %v1951_v36 }
 0x1d6   :  { %v1899_v5 = vsub.s32 0, %v6437_v58  ;;  %vm1968_vm3 = vcmp.lt.s32.totalorder %v6431_v61, 1  ;;  %v1955_v22 = vor.u32 %v1954_v33, %v1953_v46  ;;  %v1958_v19 = vor.u32 %v1957_v9, %v1956_v47 }
 0x1d7   :  { %v1965_v12 = vshll.u32 %v7537_v38, %v1950_v43  ;;  %v1966_v42 = vshrl.u32 %v7513_v57, %v1951_v36  ;;  %v1810_v62 = vand.u32 2147483647, %v1809_v40  ;;  %v1952_v31 = vshrl.u32 %v7527_v1, %v1951_v36 }
 0x1d8   :  { %v4390_v7 = vmin.u32 %v1899_v5, %v6437_v58  ;;  %v1961_v3 = vor.u32 %v1960_v0, %v1959_v41  ;;  %vm7484_vm4 = vweird.f32 %v7557_v14  ;;  %vm1618_vm5 = vcmp.lt.s32.totalorder %v6363_v30, 2 }
 0x1d9   :  { %v1816_v63 = vsub.s32 4, %v6305_v8  ;;  %v1964_v49 = vor.u32 %v1963_v16, %v1962_v54  ;;  %v1967_v60 = vor.u32 %v1966_v42, %v1965_v12  ;;  %vm1970_vm8 = vcmp.lt.s32.totalorder %v6431_v61, 3 }
 0x1da   :  { %vm1732_vm7 = vcmp.lt.s32.totalorder %v7592_v13, 0  ;;  %v1901_v43 = vclz %v4390_v7  ;;  %vm1969_vm15 = vcmp.lt.s32.totalorder %v6431_v61, 2  ;;  %vm1971_vm14 = vcmp.lt.s32.totalorder %v6431_v61, 4 }
 0x1db   :  { %v1984_v5 = vshll.u32 %v1944_v56, 8  ;;  %v1973_v40 = vsel %vm1971_vm14, %v1961_v3, 2102212464  ;;  %v1976_v41 = vsel %vm1968_vm3, %v1955_v22, %v1958_v19  ;;  %v1977_v0 = vsel %vm1971_vm14, %v1964_v49, 920167782 }
 0x1dc   :  { %v4397_v9 = vadd.s32 4294967169, %v2043_v24  ;;  %v1813_v36 = vmul.f32 %v1812_v52, %v1810_v62  ;;  %v4391_v46 = vadd.s32 4294967294, %v1901_v43  ;;  %v1972_v16 = vsel %vm1968_vm3, %v1952_v31, %v1955_v22 }
 0x1dd   :  { %v1978_v33 = vsel %vm1970_vm8, %v1961_v3, %v1977_v0  ;;  %v7618_v47 = vand.u32 2147483647, %v7592_v13  ;;  %v1974_v56 = vsel %vm1970_vm8, %v1958_v19, %v1973_v40  ;;  %v1980_v52 = vsel %vm1968_vm3, %v1958_v19, %v1961_v3 }
 0x1de   :  { %v1979_v24 = vsel %vm1969_vm15, %v1976_v41, %v1978_v33  ;;  %v1981_v62 = vsel %vm1971_vm14, %v1967_v60, 1326507024  ;;  %vm7483_vm1 = vweird.f32 %v7568_v4  ;;  %vm4392_vm0 = vcmp.lt.s32.totalorder %v4391_v46, 0  ;;  %v6481_v7 = vpop.eup %4646 }
 0x1df   :  { %vm6464_vm6 = vcmp.le.f32.partialorder %v7618_v47, 0.7853982  ;;  %v1982_v22 = vsel %vm1970_vm8, %v1964_v49, %v1981_v62  ;;  %v6477_v12 = vmul.u32.u64.low %v1984_v5, %v1979_v24  ;;  %v6478_v42 = vmul.u32.u64.high %v1984_v5, %v1979_v24, %v6477_v12  ;;  %7621 = vst [vmem:[#allocation22_spill] sm:$0xff] %v6481_v7 }
 0x1e0   :  { %v1904_v31 = vsel %vm4392_vm0, 0, %v4391_v46  ;;  %v1983_v43 = vsel %vm1969_vm15, %v1980_v52, %v1982_v22  ;;  %v7456_v40 = vand.u32 2147483647, %v7617_v21  ;;  %v2049_v3 = vadd.s32 1, %v4397_v9 }
 0x1e1   :  { %v1889_v60 = vadd.s32 %v6349_v29, %v6358_v25  ;;  %v1905_v19 = vsub.s32 32, %v1904_v31  ;;  %v1909_v41 = vsub.s32 4294967266, %v1904_v31  ;;  %v1975_v49 = vsel %vm1969_vm15, %v1972_v16, %v1974_v56  ;;  %v6493_v46 = vpop.eup %4648 }
 0x1e2   :  { %v1814_v0 = vxor.u32 2147483648, %v1813_v36  ;;  %v6490_v33 = vmul.u32.u64.low %v1984_v5, %v1983_v43  ;;  %v6491_v47 = vmul.u32.u64.high %v1984_v5, %v1983_v43, %v6490_v33  ;;  %vm2050_vm12 = vcmp.gt.s32.totalorder %v2049_v3, 0  ;;  %7622 = vst [vmem:[#allocation60_spill] sm:$0xff] %v6493_v46 }
 0x1e3   :  { %v6498_v24 = vsel %vm7484_vm4, nan, %v6394_v32  ;;  %v1910_v9 = vadd.s32 127, %v1909_v41  ;;  %v1994_v29 = vadd.s32 1, %v6478_v42  ;;  %v2051_v25 = vsel %vm2050_vm12, %v2049_v3, 0 }
 0x1e4   :  { %vm1722_vm9 = vcmp.eq.s32.totalorder %v6409_v50, 0  ;;  %v1991_v61 = vmul.u32 %v1984_v5, %v1975_v49  ;;  %v6504_v16 = vand.u32 8388607, %v7456_v40  ;;  %v2053_v56 = vand.u32 31, %v2051_v25 }
 0x1e5   :  { %v1625_v52 = vsel %vm1618_vm5, %v6418_v53, %v6425_v44  ;;  %v1817_v32 = vsel %vm1732_vm7, %v1816_v63, %v6305_v8  ;;  %v1906_v62 = vshll.u32 %v6437_v58, %v1904_v31  ;;  %v1907_v22 = vshrl.u32 %v1889_v60, %v1905_v19 }
 0x1e6   :  { %vm1721_vm3 = vcmp.lt.s32.totalorder %v6409_v50, 2  ;;  %vm1725_vm8 = vcmp.eq.s32.totalorder %v6409_v50, 2  ;;  %v1815_v5 = vsel %vm1732_vm7, %v1814_v0, %v1813_v36  ;;  %v1911_v43 = vshll.u32 %v1910_v9, 23 }
 0x1e7   :  { %vm1993_vm15 = vc.u32 %v6491_v47, %v6477_v12  ;;  %v7455_v30 = vxor.u32 2147483648, %v6493_v46  ;;  %v7454_v53 = vxor.u32 2147483648, %v6481_v7  ;;  %v2054_v44 = vsub.s32 32, %v2053_v56 }
 0x1e8   :  { %v1995_v8 = vsel %vm1993_vm15, %v1994_v29, %v6478_v42  ;;  %v6525_v58 = vsel %vm7483_vm1, nan, %v1625_v52  ;;  %v6529_v63 = vsel %vm6464_vm6, 0, %v1817_v32  ;;  %v2047_v31 = vor.u32 8388608, %v6504_v16 }
 0x1e9   :  { %7623 = vst [vmem:[#allocation61_spill] sm:$0xff] %v6529_v63  ;;  %v1996_v36 = vadd.s32 %v1995_v8, %v1991_v61  ;;  %v1724_v3 = vsel %vm1722_vm9, %v6481_v7, %v7455_v30  ;;  %v1727_v42 = vsel %vm1725_vm8, %v7454_v53, %v6493_v46  ;;  %v1818_v60 = vsel %vm6464_vm6, %v7592_v13, %v1815_v5 }
 0x1ea   :  { %v1908_v19 = vor.u32 %v1907_v22, %v1906_v62  ;;  %v1912_v41 = vor.u32 4788187, %v1911_v43  ;;  %v2056_v0 = vshll.u32 %v7527_v1, %v2053_v56  ;;  %v2059_v33 = vshll.u32 %v7520_v27, %v2053_v56 }
 0x1eb   :  { %v1997_v49 = vadd.s32 536870912, %v1996_v36  ;;  %vm1835_vm5 = vcmp.lt.s32.totalorder %v7593_v37, 0  ;;  %v2057_v9 = vshrl.u32 %v7520_v27, %v2054_v44  ;;  %v2060_v29 = vshrl.u32 %v7534_v11, %v2054_v44 }
 0x1ec   :  { %v2065_v61 = vshll.u32 %v7535_v55, %v2053_v56  ;;  %v2066_v16 = vshrl.u32 %v7537_v38, %v2054_v44  ;;  %v2052_v54 = vshrl.u32 %v2051_v25, 5  ;;  %v2062_v32 = vshll.u32 %v7534_v11, %v2053_v56 }
 0x1ed   :  { %v6550_v52 = vshrl.u32 %v1997_v49, 30  ;;  %v2063_v62 = vshrl.u32 %v7535_v55, %v2054_v44  ;;  %4650 = vcosq.f32 %v1818_v60  ;;  %v1919_v22 = vsub.s32 4, %v6411_v18 }
 0x1ee   :  { %v2068_v5 = vshll.u32 %v7537_v38, %v2053_v56  ;;  %v2069_v43 = vshrl.u32 %v7513_v57, %v2054_v44  ;;  %4652 = vsinq.f32 %v1818_v60  ;;  %v1913_v8 = vand.u32 2147483647, %v1912_v41 }
 0x1ef   :  { %v1915_v53 = vcvt.s32.f32 %v1908_v19  ;;  %v1999_v30 = vshll.u32 %v6550_v52, 30  ;;  %v2055_v49 = vshrl.u32 %v7527_v1, %v2054_v44  ;;  %v2058_v40 = vor.u32 %v2057_v9, %v2056_v0  ;;  %v7627_v0 = vld [vmem:[#allocation23_spill] sm:$0xff] }
 0x1f0   :  { %v2061_v25 = vor.u32 %v2060_v29, %v2059_v33  ;;  %v2067_v4 = vor.u32 %v2066_v16, %v2065_v61  ;;  %vm7480_vm7 = vweird.f32 %v7575_v28  ;;  %v7624_v7 = vand.u32 2147483647, %v7593_v37 }
 0x1f1   :  { %v6566_v56 = vsub.s32 %v1996_v36, %v1999_v30  ;;  %v2064_v60 = vor.u32 %v2063_v62, %v2062_v32  ;;  %vm2071_vm6 = vcmp.lt.s32.totalorder %v2052_v54, 1  ;;  %vm2074_vm0 = vcmp.lt.s32.totalorder %v2052_v54, 4 }
 0x1f2   :  { %vm6562_vm14 = vcmp.le.f32.partialorder %v7624_v7, 0.7853982  ;;  %v1728_v19 = vsel %vm1721_vm3, %v1724_v3, %v1727_v42  ;;  %v6571_v44 = vand.u32 3, %v6529_v63  ;;  %v2070_v41 = vor.u32 %v2069_v43, %v2068_v5 }
 0x1f3   :  { %v2145_v33 = vand.u32 2139095040, %v7627_v0  ;;  %v1916_v9 = vmul.f32 %v1915_v53, %v1913_v8  ;;  %v2002_v7 = vsub.s32 0, %v6566_v56  ;;  %vm2073_vm12 = vcmp.lt.s32.totalorder %v2052_v54, 3 }
 0x1f4   :  { %v2076_v29 = vsel %vm2074_vm0, %v2064_v60, 2102212464  ;;  %vm2072_vm9 = vcmp.lt.s32.totalorder %v2052_v54, 2  ;;  %v2079_v30 = vsel %vm2071_vm6, %v2058_v40, %v2061_v25  ;;  %v2080_v36 = vsel %vm2074_vm0, %v2067_v4, 920167782 }
 0x1f5   :  { %v2087_v61 = vshll.u32 %v2047_v31, 8  ;;  %v1920_v50 = vsel %vm1835_vm5, %v1919_v22, %v6411_v18  ;;  %v4394_v3 = vmin.u32 %v2002_v7, %v6566_v56  ;;  %v2075_v42 = vsel %vm2071_vm6, %v2055_v49, %v2058_v40 }
 0x1f6   :  { %v2083_v53 = vsel %vm2071_vm6, %v2061_v25, %v2064_v60  ;;  %v2077_v16 = vsel %vm2073_vm12, %v2061_v25, %v2076_v29  ;;  %v2081_v32 = vsel %vm2073_vm12, %v2064_v60, %v2080_v36  ;;  %v2084_v62 = vsel %vm2074_vm0, %v2070_v41, 1326507024 }
 0x1f7   :  { %v2146_v5 = vshrl.u32 %v2145_v33, 23  ;;  %vm1828_vm3 = vcmp.eq.s32.totalorder %v6571_v44, 2  ;;  %v1917_v31 = vxor.u32 2147483648, %v1916_v9  ;;  %vm1938_vm8 = vcmp.lt.s32.totalorder %v7607_v15, 0 }
 0x1f8   :  { %v2004_v43 = vclz %v4394_v3  ;;  %v2082_v18 = vsel %vm2072_vm9, %v2079_v30, %v2081_v32  ;;  %v2085_v22 = vsel %vm2073_vm12, %v2067_v4, %v2084_v62  ;;  %v2078_v41 = vsel %vm2072_vm9, %v2075_v42, %v2077_v16 }
 0x1f9   :  { %v2086_v40 = vsel %vm2072_vm9, %v2083_v53, %v2085_v22  ;;  %v6592_v8 = vmul.u32.u64.low %v2087_v61, %v2082_v18  ;;  %v6593_v49 = vmul.u32.u64.high %v2087_v61, %v2082_v18, %v6592_v8  ;;  %v4401_v25 = vadd.s32 4294967169, %v2146_v5 }
 0x1fa   :  { %v4395_v60 = vadd.s32 4294967294, %v2004_v43  ;;  %v6597_v33 = vmul.u32.u64.low %v2087_v61, %v2086_v40  ;;  %v6598_v7 = vmul.u32.u64.high %v2087_v61, %v2086_v40, %v6597_v33  ;;  %v6602_v29 = vsel %vm7480_vm7, nan, %v1728_v19  ;;  %v6615_v42 = vpop.eup %4650 }
 0x1fb   :  { %v6606_v4 = vsel %vm6562_vm14, 0, %v1920_v50  ;;  %v7629_v30 = vand.u32 2147483647, %v7607_v15  ;;  %v7462_v54 = vand.u32 2147483647, %v7627_v0  ;;  %v2152_v3 = vadd.s32 1, %v4401_v25  ;;  %v6622_v16 = vpop.eup %4652 }
 0x1fc   :  { %7628 = vst [vmem:[#allocation23_spill] sm:$0xff] %v6606_v4  ;;  %7632 = vst [vmem:[#allocation62_spill] sm:$0xff] %v6615_v42  ;;  %v1918_v53 = vsel %vm1835_vm5, %v1917_v31, %v1916_v9  ;;  %v1992_v19 = vadd.s32 %v6477_v12, %v6491_v47  ;;  %vm4396_vm6 = vcmp.lt.s32.totalorder %v4395_v60, 0  ;;  %v2022_v50 = vsub.s32 4, %v6550_v52 }
 0x1fd   :  { %vm6610_vm15 = vcmp.le.f32.partialorder %v7629_v30, 0.7853982  ;;  %7633 = vst [vmem:[#allocation63_spill] sm:$0xff] %v6622_v16  ;;  %v2007_v32 = vsel %vm4396_vm6, 0, %v4395_v60  ;;  %v2094_v62 = vmul.u32 %v2087_v61, %v2078_v41  ;;  %v2097_v5 = vadd.s32 1, %v6593_v49  ;;  %v7634_v30 = vld [vmem:[#allocation24_spill] sm:$0xff] }
 0x1fe   :  { %vm2153_vm0 = vcmp.gt.s32.totalorder %v2152_v3, 0  ;;  %v6626_v43 = vand.u32 3, %v6606_v4  ;;  %v2008_v18 = vsub.s32 32, %v2007_v32  ;;  %v2009_v22 = vshll.u32 %v6566_v56, %v2007_v32 }
 0x1ff   :  { %v2012_v9 = vsub.s32 4294967266, %v2007_v32  ;;  %vm2096_vm5 = vc.u32 %v6598_v7, %v6592_v8  ;;  %v2149_v12 = vand.u32 8388607, %v7462_v54  ;;  %v2154_v47 = vsel %vm2153_vm0, %v2152_v3, 0 }
 0x200   :  { %v1921_v61 = vsel %vm6562_vm14, %v7593_v37, %v1918_v53  ;;  %v2010_v40 = vshrl.u32 %v1992_v19, %v2008_v18  ;;  %v2098_v60 = vsel %vm2096_vm5, %v2097_v5, %v6593_v49  ;;  %v2023_v56 = vsel %vm1938_vm8, %v2022_v50, %v6550_v52 }
 0x201   :  { %v2013_v25 = vadd.s32 127, %v2012_v9  ;;  %v2099_v41 = vadd.s32 %v2098_v60, %v2094_v62  ;;  %v2156_v33 = vand.u32 31, %v2154_v47  ;;  %v2248_v32 = vand.u32 2139095040, %v7634_v30 }
 0x202   :  { %v2011_v54 = vor.u32 %v2010_v40, %v2009_v22  ;;  %v7635_v46 = vxor.u32 2147483648, %v6615_v42  ;;  %4654 = vcosq.f32 %v1921_v61  ;;  %v6653_v62 = vsel %vm6610_vm15, 0, %v2023_v56 }
 0x203   :  { %v2014_v3 = vshll.u32 %v2013_v25, 23  ;;  %v2100_v53 = vadd.s32 536870912, %v2099_v41  ;;  %v2157_v52 = vsub.s32 32, %v2156_v33  ;;  %4656 = vsinq.f32 %v1921_v61  ;;  %7636 = vst [vmem:[#allocation24_spill] sm:$0xff] %v6653_v62 }
 0x204   :  { %v6649_v49 = vsel %vm1828_vm3, %v7635_v46, %v6622_v16  ;;  %v2018_v50 = vcvt.s32.f32 %v2011_v54  ;;  %v6656_v5 = vand.u32 3, %v6653_v62  ;;  %v2159_v22 = vshll.u32 %v7527_v1, %v2156_v33 }
 0x205   :  { %v2015_v19 = vor.u32 4788187, %v2014_v3  ;;  %v6658_v18 = vshrl.u32 %v2100_v53, 30  ;;  %v2249_v9 = vshrl.u32 %v2248_v32, 23  ;;  %v2160_v25 = vshrl.u32 %v7520_v27, %v2157_v52 }
 0x206   :  { %v2162_v60 = vshll.u32 %v7520_v27, %v2156_v33  ;;  %v2163_v61 = vshrl.u32 %v7534_v11, %v2157_v52  ;;  %v2150_v3 = vor.u32 8388608, %v2149_v12  ;;  %v2155_v56 = vshrl.u32 %v2154_v47, 5 }
 0x207   :  { %v2016_v40 = vand.u32 2147483647, %v2015_v19  ;;  %v2102_v54 = vshll.u32 %v6658_v18, 30  ;;  %v2165_v46 = vshll.u32 %v7534_v11, %v2156_v33  ;;  %v2166_v53 = vshrl.u32 %v7535_v55, %v2157_v52 }
 0x208   :  { %v2168_v31 = vshll.u32 %v7535_v55, %v2156_v33  ;;  %v2169_v32 = vshrl.u32 %v7537_v38, %v2157_v52  ;;  %v2158_v62 = vshrl.u32 %v7527_v1, %v2157_v52  ;;  %v2171_v4 = vshll.u32 %v7537_v38, %v2156_v33 }
 0x209   :  { %v2019_v28 = vmul.f32 %v2018_v50, %v2016_v40  ;;  %v6669_v19 = vsub.s32 %v2099_v41, %v2102_v54  ;;  %v4405_v14 = vadd.s32 4294967169, %v2249_v9  ;;  %v2161_v2 = vor.u32 %v2160_v25, %v2159_v22 }
 0x20a   :  { %v2164_v12 = vor.u32 %v2163_v61, %v2162_v60  ;;  %v2172_v47 = vshrl.u32 %v7513_v57, %v2157_v52  ;;  %vm1825_vm14 = vcmp.eq.s32.totalorder %v6571_v44, 0  ;;  %v2170_v40 = vor.u32 %v2169_v32, %v2168_v31 }
 0x20b   :  { %v2020_v63 = vxor.u32 2147483648, %v2019_v28  ;;  %v2105_v50 = vsub.s32 0, %v6669_v19  ;;  %vm2174_vm12 = vcmp.lt.s32.totalorder %v2155_v56, 1  ;;  %v6676_v34 = vshll.u32 %v2150_v3, 8 }
 0x20c   :  { %v2167_v54 = vor.u32 %v2166_v53, %v2165_v46  ;;  %v2173_v23 = vor.u32 %v2172_v47, %v2171_v4  ;;  %vm2177_vm9 = vcmp.lt.s32.totalorder %v2155_v56, 4  ;;  %vm2176_vm3 = vcmp.lt.s32.totalorder %v2155_v56, 3 }
 0x20d   :  { %v2021_v41 = vsel %vm1938_vm8, %v2020_v63, %v2019_v28  ;;  %v4398_v52 = vmin.u32 %v2105_v50, %v6669_v19  ;;  %v2255_v22 = vadd.s32 1, %v4405_v14  ;;  %vm2175_vm6 = vcmp.lt.s32.totalorder %v2155_v56, 2 }
 0x20e   :  { %v2024_v33 = vsel %vm6610_vm15, %v7607_v15, %v2021_v41  ;;  %v2178_v31 = vsel %vm2174_vm12, %v2158_v62, %v2161_v2  ;;  %v2179_v9 = vsel %vm2177_vm9, %v2167_v54, 2102212464  ;;  %v2182_v25 = vsel %vm2174_vm12, %v2161_v2, %v2164_v12 }
 0x20f   :  { %vm2041_vm8 = vcmp.lt.s32.totalorder %v7617_v21, 0  ;;  %v2095_v28 = vadd.s32 %v6592_v8, %v6598_v7  ;;  %v2107_v63 = vclz %v4398_v52  ;;  %v2180_v4 = vsel %vm2176_vm3, %v2164_v12, %v2179_v9  ;;  %v6692_v60 = vpop.eup %4654 }
 0x210   :  { %v2183_v36 = vsel %vm2177_vm9, %v2170_v40, 920167782  ;;  %7637 = vst [vmem:[#allocation64_spill] sm:$0xff] %v6692_v60  ;;  %4658 = vcosq.f32 %v2024_v33  ;;  %v2186_v62 = vsel %vm2174_vm12, %v2164_v12, %v2167_v54  ;;  %v2187_v61 = vsel %vm2177_vm9, %v2173_v23, 1326507024  ;;  %v6697_v2 = vpop.eup %4656 }
 0x211   :  { %v2184_v14 = vsel %vm2176_vm3, %v2167_v54, %v2183_v36  ;;  %7638 = vst [vmem:[#allocation65_spill] sm:$0xff] %v6697_v2  ;;  %v4399_v3 = vadd.s32 4294967294, %v2107_v63  ;;  %v2181_v46 = vsel %vm2175_vm6, %v2178_v31, %v2180_v4  ;;  %v2188_v7 = vsel %vm2176_vm3, %v2170_v40, %v2187_v61 }
 0x212   :  { %v2185_v8 = vsel %vm2175_vm6, %v2182_v25, %v2184_v14  ;;  %vm1928_vm15 = vcmp.eq.s32.totalorder %v6626_v43, 0  ;;  %vm1931_vm0 = vcmp.eq.s32.totalorder %v6626_v43, 2  ;;  %v2189_v53 = vsel %vm2175_vm6, %v2186_v62, %v2188_v7 }
 0x213   :  { %v6706_v32 = vmul.u32.u64.low %v6676_v34, %v2185_v8  ;;  %v6707_v12 = vmul.u32.u64.high %v6676_v34, %v2185_v8, %v6706_v32  ;;  %vm2256_vm5 = vcmp.gt.s32.totalorder %v2255_v22, 0  ;;  %vm4400_vm12 = vcmp.lt.s32.totalorder %v4399_v3, 0 }
 0x214   :  { %v6711_v23 = vmul.u32.u64.low %v6676_v34, %v2189_v53  ;;  %v6712_v47 = vmul.u32.u64.high %v6676_v34, %v2189_v53, %v6711_v23  ;;  %v2257_v50 = vsel %vm2256_vm5, %v2255_v22, 0  ;;  %4660 = vsinq.f32 %v2024_v33 }
 0x215   :  { %v2110_v40 = vsel %vm4400_vm12, 0, %v4399_v3  ;;  %v2125_v41 = vsub.s32 4, %v6658_v18  ;;  %v2259_v54 = vand.u32 31, %v2257_v50  ;;  %v7639_v56 = vand.u32 2147483647, %v7617_v21 }
 0x216   :  { %v2111_v31 = vsub.s32 32, %v2110_v40  ;;  %v2112_v9 = vshll.u32 %v6669_v19, %v2110_v40  ;;  %v2115_v25 = vsub.s32 4294967266, %v2110_v40  ;;  %v2197_v63 = vmul.u32 %v6676_v34, %v2181_v46  ;;  %v7644_v19 = vld [vmem:[#allocation25_spill] sm:$0xff] }
 0x217   :  { %vm6717_vm9 = vcmp.le.f32.partialorder %v7639_v56, 0.7853982  ;;  %v7642_v4 = vxor.u32 2147483648, %v6622_v16  ;;  %v2200_v22 = vadd.s32 1, %v6707_v12  ;;  %v7643_v36 = vand.u32 2147483647, %v7634_v30 }
 0x218   :  { %v2260_v62 = vsub.s32 32, %v2259_v54  ;;  %v2113_v61 = vshrl.u32 %v2095_v28, %v2111_v31  ;;  %v2116_v3 = vadd.s32 127, %v2115_v25  ;;  %vm2199_vm3 = vc.u32 %v6712_v47, %v6706_v32 }
 0x219   :  { %v6728_v33 = vsel %vm1825_vm14, %v6615_v42, %v7642_v4  ;;  %v2252_v14 = vand.u32 8388607, %v7643_v36  ;;  %v7476_v46 = vxor.u32 2147483648, %v6697_v2  ;;  %v7479_v8 = vxor.u32 2147483648, %v6692_v60 }
 0x21a   :  { %v2126_v7 = vsel %vm2041_vm8, %v2125_v41, %v6658_v18  ;;  %v2201_v53 = vsel %vm2199_vm3, %v2200_v22, %v6707_v12  ;;  %vm2034_vm14 = vcmp.eq.s32.totalorder %v6656_v5, 2  ;;  %v2114_v23 = vor.u32 %v2113_v61, %v2112_v9 }
 0x21b   :  { %v2117_v28 = vshll.u32 %v2116_v3, 23  ;;  %v2202_v40 = vadd.s32 %v2201_v53, %v2197_v63  ;;  %v2262_v56 = vshll.u32 %v7527_v1, %v2259_v54  ;;  %v2263_v31 = vshrl.u32 %v7520_v27, %v2260_v62 }
 0x21c   :  { %v2265_v25 = vshll.u32 %v7520_v27, %v2259_v54  ;;  %v2266_v4 = vshrl.u32 %v7534_v11, %v2260_v62  ;;  %v2271_v36 = vshll.u32 %v7535_v55, %v2259_v54  ;;  %vm2031_vm6 = vcmp.eq.s32.totalorder %v6656_v5, 0 }
 0x21d   :  { %v2118_v18 = vor.u32 4788187, %v2117_v28  ;;  %v2121_v41 = vcvt.s32.f32 %v2114_v23  ;;  %v2203_v12 = vadd.s32 536870912, %v2202_v40  ;;  %v2272_v22 = vshrl.u32 %v7537_v38, %v2260_v62  ;;  %v6752_v53 = vpop.eup %4658 }
 0x21e   :  { %v2253_v9 = vor.u32 8388608, %v2252_v14  ;;  %v2258_v61 = vshrl.u32 %v2257_v50, 5  ;;  %v2268_v63 = vshll.u32 %v7534_v11, %v2259_v54  ;;  %v2269_v3 = vshrl.u32 %v7535_v55, %v2260_v62 }
 0x21f   :  { %v1930_v34 = vsel %vm1928_vm15, %v6692_v60, %v7476_v46  ;;  %v1933_v23 = vsel %vm1931_vm0, %v7479_v8, %v6697_v2  ;;  %v2119_v14 = vand.u32 2147483647, %v2118_v18  ;;  %v6764_v50 = vshrl.u32 %v2203_v12, 30 }
 0x220   :  { %v6768_v28 = vsel %vm6717_vm9, 0, %v2126_v7  ;;  %v2273_v42 = vor.u32 %v2272_v22, %v2271_v36  ;;  %v2274_v16 = vshll.u32 %v7537_v38, %v2259_v54  ;;  %v2275_v17 = vshrl.u32 %v7513_v57, %v2260_v62 }
 0x221   :  { %vm1824_vm15 = vcmp.lt.s32.totalorder %v6571_v44, 2  ;;  %vm1927_vm5 = vcmp.lt.s32.totalorder %v6626_v43, 2  ;;  %v2122_v46 = vmul.f32 %v2121_v41, %v2119_v14  ;;  %v2205_v60 = vshll.u32 %v6764_v50, 30  ;;  %v6777_v36 = vpop.eup %4660 }
 0x222   :  { %v2264_v8 = vor.u32 %v2263_v31, %v2262_v56  ;;  %v2267_v18 = vor.u32 %v2266_v4, %v2265_v25  ;;  %vm2030_vm0 = vcmp.lt.s32.totalorder %v6656_v5, 2  ;;  %v2261_v12 = vshrl.u32 %v7527_v1, %v2260_v62 }
 0x223   :  { %v2270_v7 = vor.u32 %v2269_v3, %v2268_v63  ;;  %vm2277_vm12 = vcmp.lt.s32.totalorder %v2258_v61, 1  ;;  %vm2280_vm3 = vcmp.lt.s32.totalorder %v2258_v61, 4  ;;  %v2123_v54 = vxor.u32 2147483648, %v2122_v46 }
 0x224   :  { %v6779_v22 = vsub.s32 %v2202_v40, %v2205_v60  ;;  %vm2279_vm7 = vcmp.lt.s32.totalorder %v2258_v61, 3  ;;  %v6781_v2 = vshll.u32 %v2253_v9, 8  ;;  %v7486_v41 = vxor.u32 2147483648, %v6752_v53 }
 0x225   :  { %v2276_v14 = vor.u32 %v2275_v17, %v2274_v16  ;;  %v2282_v56 = vsel %vm2280_vm3, %v2270_v7, 2102212464  ;;  %v2286_v31 = vsel %vm2280_vm3, %v2273_v42, 920167782  ;;  %v2124_v62 = vsel %vm2041_vm8, %v2123_v54, %v2122_v46 }
 0x226   :  { %vm2144_vm1 = vcmp.lt.s32.totalorder %v7627_v0, 0  ;;  %v2208_v25 = vsub.s32 0, %v6779_v22  ;;  %vm2278_vm4 = vcmp.lt.s32.totalorder %v2258_v61, 2  ;;  %v2285_v60 = vsel %vm2277_vm12, %v2264_v8, %v2267_v18 }
 0x227   :  { %v7487_v40 = vxor.u32 2147483648, %v6777_v36  ;;  %v2036_v17 = vsel %vm2034_vm14, %v7486_v41, %v6777_v36  ;;  %v2281_v16 = vsel %vm2277_vm12, %v2261_v12, %v2264_v8  ;;  %v2287_v4 = vsel %vm2279_vm7, %v2270_v7, %v2286_v31 }
 0x228   :  { %vm1822_vm8 = vweird.f32 %v7592_v13  ;;  %v2127_v46 = vsel %vm6717_vm9, %v7617_v21, %v2124_v62  ;;  %v4402_v9 = vmin.u32 %v2208_v25, %v6779_v22  ;;  %v2283_v63 = vsel %vm2279_vm7, %v2267_v18, %v2282_v56 }
 0x229   :  { %v2289_v3 = vsel %vm2277_vm12, %v2267_v18, %v2270_v7  ;;  %vm7489_vm2 = vweird.f32 %v7593_v37  ;;  %v2033_v8 = vsel %vm2031_vm6, %v6752_v53, %v7487_v40  ;;  %v2228_v12 = vsub.s32 4, %v6764_v50 }
 0x22a   :  { %v2288_v54 = vsel %vm2278_vm4, %v2285_v60, %v2287_v4  ;;  %v2290_v52 = vsel %vm2280_vm3, %v2276_v14, 1326507024  ;;  %vm7488_vm9 = vweird.f32 %v7607_v15  ;;  %v2210_v31 = vclz %v4402_v9 }
 0x22b   :  { %v2291_v56 = vsel %vm2279_vm7, %v2273_v42, %v2290_v52  ;;  %v6818_v18 = vmul.u32.u64.low %v6781_v2, %v2288_v54  ;;  %v6819_v7 = vmul.u32.u64.high %v6781_v2, %v2288_v54, %v6818_v18  ;;  %4662 = vcosq.f32 %v2127_v46 }
 0x22c   :  { %v2284_v62 = vsel %vm2278_vm4, %v2281_v16, %v2283_v63  ;;  %v2292_v25 = vsel %vm2278_vm4, %v2289_v3, %v2291_v56  ;;  %v2351_v41 = vand.u32 2139095040, %v7644_v19  ;;  %4664 = vsinq.f32 %v2127_v46 }
 0x22d   :  { %v4403_v60 = vadd.s32 4294967294, %v2210_v31  ;;  %v6825_v14 = vmul.u32.u64.low %v6781_v2, %v2292_v25  ;;  %v6826_v4 = vmul.u32.u64.high %v6781_v2, %v2292_v25, %v6825_v14  ;;  %v1831_v42 = vsel %vm1824_vm15, %v6728_v33, %v6649_v49 }
 0x22e   :  { %v1934_v9 = vsel %vm1927_vm5, %v1930_v34, %v1933_v23  ;;  %v6835_v16 = vand.u32 3, %v6768_v28  ;;  %v2352_v61 = vshrl.u32 %v2351_v41, 23  ;;  %v2037_v46 = vsel %vm2030_vm0, %v2033_v8, %v2036_v17 }
 0x22f   :  { %v2198_v63 = vadd.s32 %v6706_v32, %v6712_v47  ;;  %vm4404_vm4 = vcmp.lt.s32.totalorder %v4403_v60, 0  ;;  %v2303_v3 = vadd.s32 1, %v6819_v7  ;;  %v2229_v44 = vsel %vm2144_vm1, %v2228_v12, %v6764_v50 }
 0x230   :  { %v2213_v54 = vsel %vm4404_vm4, 0, %v4403_v60  ;;  %v2300_v43 = vmul.u32 %v6781_v2, %v2284_v62  ;;  %v4409_v49 = vadd.s32 4294967169, %v2352_v61  ;;  %v7645_v5 = vand.u32 2147483647, %v7644_v19  ;;  %v7649_v61 = vld [vmem:[#allocation26_spill] sm:$0xff] }
 0x231   :  { %v2214_v33 = vsub.s32 32, %v2213_v54  ;;  %v2215_v34 = vshll.u32 %v6779_v22, %v2213_v54  ;;  %v2218_v23 = vsub.s32 4294967266, %v2213_v54  ;;  %v6851_v32 = vsel %vm1822_vm8, nan, %v1831_v42  ;;  %v7651_v54 = vld [vmem:[#allocation28_spill] sm:$0xff] }
 0x232   :  { %v2355_v41 = vand.u32 8388607, %v7645_v5  ;;  %v7646_v47 = vand.u32 2147483647, %v7627_v0  ;;  %vm2302_vm14 = vc.u32 %v6826_v4, %v6818_v18  ;;  %v2358_v2 = vadd.s32 1, %v4409_v49 }
 0x233   :  { %v6862_v50 = vsel %vm7489_vm2, nan, %v1934_v9  ;;  %v2216_v22 = vshrl.u32 %v2198_v63, %v2214_v33  ;;  %v2219_v8 = vadd.s32 127, %v2218_v23  ;;  %v2304_v12 = vsel %vm2302_vm14, %v2303_v3, %v6819_v7  ;;  %v7655_v23 = vld [vmem:[#allocation30_spill] sm:$0xff] }
 0x234   :  { %vm6855_vm7 = vcmp.le.f32.partialorder %v7646_v47, 0.7853982  ;;  %v6867_v52 = vsel %vm7488_vm9, nan, %v2037_v46  ;;  %v2305_v56 = vadd.s32 %v2304_v12, %v2300_v43  ;;  %vm2359_vm6 = vcmp.gt.s32.totalorder %v2358_v2, 0  ;;  %v7653_v43 = vld [vmem:[#allocation29_spill] sm:$0xff] }
 0x235   :  { %v6871_v31 = vsel %vm6855_vm7, 0, %v2229_v44  ;;  %vm2137_vm15 = vcmp.eq.s32.totalorder %v6835_v16, 2  ;;  %v2217_v62 = vor.u32 %v2216_v22, %v2215_v34  ;;  %v2220_v25 = vshll.u32 %v2219_v8, 23 }
 0x236   :  { %v2356_v60 = vor.u32 8388608, %v2355_v41  ;;  %v2360_v14 = vsel %vm2359_vm6, %v2358_v2, 0  ;;  %v6875_v42 = vand.u32 3, %v6871_v31  ;;  %v2306_v7 = vadd.s32 536870912, %v2305_v56  ;;  %v7657_v41 = vld [vmem:[#allocation31_spill] sm:$0xff] }
 0x237   :  { %v2362_v9 = vand.u32 31, %v2360_v14  ;;  %v6879_v46 = vmul.f32 %v5908_v59, %v7649_v61  ;;  %v2221_v63 = vor.u32 4788187, %v2220_v25  ;;  %v2224_v3 = vcvt.s32.f32 %v2217_v62  ;;  %v7661_v25 = vld [vmem:[#allocation33_spill] sm:$0xff] }
 0x238   :  { %v6883_v44 = vmul.f32 %v6158_v35, %v7651_v54  ;;  %v6887_v49 = vmul.f32 %v6178_v39, %v7653_v43  ;;  %v6889_v33 = vshrl.u32 %v2306_v7, 30  ;;  %v6893_v5 = vmul.f32 %v6182_v20, %v7655_v23  ;;  %v6899_v47 = vpop.eup %4662  ;;  %v7659_v39 = vld [vmem:[#allocation32_spill] sm:$0xff] }
 0x239   :  { %7650 = vst [vmem:[#allocation25_spill] sm:$0xff] %v6879_v46  ;;  %v2363_v34 = vsub.s32 32, %v2362_v9  ;;  %v6897_v59 = vmul.f32 %v6195_v10, %v7657_v41  ;;  %v2222_v2 = vand.u32 2147483647, %v2221_v63  ;;  %v6902_v35 = vadd.s32 %v6818_v18, %v6826_v4  ;;  %v6910_v12 = vpop.eup %4664 }
 0x23a   :  { %7652 = vst [vmem:[#allocation26_spill] sm:$0xff] %v6883_v44  ;;  %7654 = vst [vmem:[#allocation28_spill] sm:$0xff] %v6887_v49  ;;  %v6904_v22 = vshll.u32 %v2356_v60, 8  ;;  %v6908_v8 = vmul.f32 %v6331_v48, %v7659_v39  ;;  %v2308_v20 = vshll.u32 %v6889_v33, 30  ;;  %v2365_v62 = vshll.u32 %v7527_v1, %v2362_v9  ;;  %v7714_v49 = vld [vmem:[#allocation59_spill] sm:$0xff] }
 0x23b   :  { %7656 = vst [vmem:[#allocation29_spill] sm:$0xff] %v6893_v5  ;;  %7658 = vst [vmem:[#allocation30_spill] sm:$0xff] %v6897_v59  ;;  %v2368_v10 = vshll.u32 %v7520_v27, %v2362_v9  ;;  %v6917_v7 = vmul.f32 %v6498_v24, %v7661_v25  ;;  %vm2134_vm5 = vcmp.eq.s32.totalorder %v6835_v16, 0  ;;  %v2225_v18 = vmul.f32 %v2224_v3, %v2222_v2 }
 0x23c   :  { %7660 = vst [vmem:[#allocation31_spill] sm:$0xff] %v6908_v8  ;;  %v2366_v4 = vshrl.u32 %v7520_v27, %v2363_v34  ;;  %v2369_v48 = vshrl.u32 %v7534_v11, %v2363_v34  ;;  %v6924_v60 = vmul.f32 %v6525_v58, %v5433_v51  ;;  %v6926_v63 = vsub.s32 %v2305_v56, %v2308_v20 }
 0x23d   :  { %7662 = vst [vmem:[#allocation32_spill] sm:$0xff] %v6917_v7  ;;  %v2371_v40 = vshll.u32 %v7534_v11, %v2362_v9  ;;  %v2372_v8 = vshrl.u32 %v7535_v55, %v2363_v34  ;;  %v6932_v24 = vmul.f32 %v6602_v29, %v5453_v26  ;;  %v7490_v27 = vxor.u32 2147483648, %v6899_v47 }
 0x23e   :  { %7663 = vst [vmem:[#allocation33_spill] sm:$0xff] %v6924_v60  ;;  %v2226_v2 = vxor.u32 2147483648, %v2225_v18  ;;  %v2361_v7 = vshrl.u32 %v2360_v14, 5  ;;  %v2311_v59 = vsub.s32 0, %v6926_v63  ;;  %v2367_v58 = vor.u32 %v2366_v4, %v2365_v62 }
 0x23f   :  { %7664 = vst [vmem:[#allocation66_spill] sm:$0xff] %v6932_v24  ;;  %v2370_v60 = vor.u32 %v2369_v48, %v2368_v10  ;;  %v2374_v56 = vshll.u32 %v7535_v55, %v2362_v9  ;;  %vm2133_vm0 = vcmp.lt.s32.totalorder %v6835_v16, 2  ;;  %v2375_v29 = vshrl.u32 %v7537_v38, %v2363_v34 }
 0x240   :  { %v2227_v11 = vsel %vm2144_vm1, %v2226_v2, %v2225_v18  ;;  %v2377_v20 = vshll.u32 %v7537_v38, %v2362_v9  ;;  %v2378_v3 = vshrl.u32 %v7513_v57, %v2363_v34  ;;  %v2139_v14 = vsel %vm2137_vm15, %v7490_v27, %v6910_v12 }
 0x241   :  { %v2230_v55 = vsel %vm6855_vm7, %v7627_v0, %v2227_v11  ;;  %vm2247_vm12 = vcmp.lt.s32.totalorder %v7634_v30, 0  ;;  %v4406_v62 = vmin.u32 %v2311_v59, %v6926_v63  ;;  %v2373_v10 = vor.u32 %v2372_v8, %v2371_v40 }
 0x242   :  { %4666 = vcosq.f32 %v2230_v55  ;;  %v2364_v38 = vshrl.u32 %v7527_v1, %v2363_v34  ;;  %v2376_v9 = vor.u32 %v2375_v29, %v2374_v56  ;;  %v2379_v57 = vor.u32 %v2378_v3, %v2377_v20 }
 0x243   :  { %4668 = vsinq.f32 %v2230_v55  ;;  %v2313_v18 = vclz %v4406_v62  ;;  %v2331_v4 = vsub.s32 4, %v6889_v33  ;;  %vm2380_vm1 = vcmp.lt.s32.totalorder %v2361_v7, 1 }
 0x244   :  { %v7665_v48 = vand.u32 2147483647, %v7634_v30  ;;  %vm2381_vm4 = vcmp.lt.s32.totalorder %v2361_v7, 2  ;;  %vm2382_vm7 = vcmp.lt.s32.totalorder %v2361_v7, 3  ;;  %vm2383_vm14 = vcmp.lt.s32.totalorder %v2361_v7, 4 }
 0x245   :  { %v2388_v40 = vsel %vm2380_vm1, %v2367_v58, %v2370_v60  ;;  %vm2131_vm6 = vweird.f32 %v7617_v21  ;;  %v4407_v1 = vadd.s32 4294967294, %v2313_v18  ;;  %v2385_v34 = vsel %vm2383_vm14, %v2373_v10, 2102212464 }
 0x246   :  { %vm6958_vm3 = vcmp.le.f32.partialorder %v7665_v48, 0.7853982  ;;  %v2389_v59 = vsel %vm2383_vm14, %v2376_v9, 920167782  ;;  %v2392_v8 = vsel %vm2380_vm1, %v2370_v60, %v2373_v10  ;;  %v2384_v3 = vsel %vm2380_vm1, %v2364_v38, %v2367_v58 }
 0x247   :  { %v2386_v2 = vsel %vm2382_vm7, %v2370_v60, %v2385_v34  ;;  %v2390_v56 = vsel %vm2382_vm7, %v2373_v10, %v2389_v59  ;;  %v2393_v11 = vsel %vm2383_vm14, %v2379_v57, 1326507024  ;;  %v7668_v29 = vxor.u32 2147483648, %v6910_v12 }
 0x248   :  { %vm4408_vm15 = vcmp.lt.s32.totalorder %v4407_v1, 0  ;;  %v2391_v55 = vsel %vm2381_vm4, %v2388_v40, %v2390_v56  ;;  %v2394_v62 = vsel %vm2382_vm7, %v2376_v9, %v2393_v11  ;;  %vm2237_vm9 = vcmp.eq.s32.totalorder %v6875_v42, 0 }
 0x249   :  { %v2136_v20 = vsel %vm2134_vm5, %v6899_v47, %v7668_v29  ;;  %vm2240_vm2 = vcmp.eq.s32.totalorder %v6875_v42, 2  ;;  %v2316_v18 = vsel %vm4408_vm15, 0, %v4407_v1  ;;  %v2395_v58 = vsel %vm2381_vm4, %v2392_v8, %v2394_v62 }
 0x24a   :  { %v6973_v60 = vmul.u32.u64.low %v6904_v22, %v2391_v55  ;;  %v6974_v10 = vmul.u32.u64.high %v6904_v22, %v2391_v55, %v6973_v60  ;;  %v2317_v38 = vsub.s32 32, %v2316_v18  ;;  %v2318_v57 = vshll.u32 %v6926_v63, %v2316_v18 }
 0x24b   :  { %v2321_v48 = vsub.s32 4294967266, %v2316_v18  ;;  %v2387_v34 = vsel %vm2381_vm4, %v2384_v3, %v2386_v2  ;;  %v2332_v9 = vsel %vm2247_vm12, %v2331_v4, %v6889_v33  ;;  %v2560_v1 = vadd.s32 3, %v5651_v6  ;;  %v7670_v2 = vld [vmem:[#allocation40_spill] sm:$0xff] }
 0x24c   :  { %v6982_v40 = vmul.u32.u64.low %v6904_v22, %v2395_v58  ;;  %v6983_v59 = vmul.u32.u64.high %v6904_v22, %v2395_v58, %v6982_v40  ;;  %v2140_v8 = vsel %vm2133_vm0, %v2136_v20, %v2139_v14  ;;  %vm2236_vm5 = vcmp.lt.s32.totalorder %v6875_v42, 2  ;;  %v7671_v14 = vld [vmem:[#allocation34_spill] sm:$0xff]  ;;  %v7673_v20 = vld [vmem:[#allocation35_spill] sm:$0xff] }
 0x24d   :  { %v2319_v63 = vshrl.u32 %v6902_v35, %v2317_v38  ;;  %v2322_v56 = vadd.s32 127, %v2321_v48  ;;  %v6992_v7 = vmul.f32 %v6851_v32, %v5481_v45  ;;  %v2403_v33 = vmul.u32 %v6904_v22, %v2387_v34  ;;  %v7675_v34 = vld [vmem:[#allocation42_spill] sm:$0xff] }
 0x24e   :  { %v2406_v4 = vadd.s32 1, %v6974_v10  ;;  %v2561_v3 = vand.u32 3, %v2560_v1  ;;  %v2664_v11 = vadd.s32 3, %v7670_v2  ;;  %v6999_v16 = vsel %vm6958_vm3, 0, %v2332_v9  ;;  %v7679_v2 = vld [vmem:[#allocation39_spill] sm:$0xff] }
 0x24f   :  { %7669 = vst [vmem:[#allocation67_spill] sm:$0xff] %v6992_v7  ;;  %v2320_v6 = vor.u32 %v2319_v63, %v2318_v57  ;;  %v2323_v29 = vshll.u32 %v2322_v56, 23  ;;  %v7003_v35 = vmul.f32 %v6862_v50, %v7671_v14  ;;  %v2141_v32 = vsel %vm2131_vm6, nan, %v2140_v8  ;;  %v7015_v62 = vpop.eup %4666  ;;  %v7676_v8 = vld [vmem:[#allocation48_spill] sm:$0xff]  ;;  %v7689_v7 = vld [vmem:[#allocation43_spill] sm:$0xff] }
 0x250   :  { %v7008_v22 = vand.u32 3, %v6999_v16  ;;  %vm2405_vm0 = vc.u32 %v6983_v59, %v6973_v60  ;;  %v7013_v55 = vmul.f32 %v6867_v52, %v7673_v20  ;;  %vm2563_vm1 = vcmp.eq.s32.totalorder %v2561_v3, 0  ;;  %v7018_v50 = vpop.eup %4668  ;;  %v7677_v56 = vld [vmem:[#allocation36_spill] sm:$0xff] }
 0x251   :  { %7672 = vst [vmem:[#allocation40_spill] sm:$0xff] %v7003_v35  ;;  %v2324_v18 = vor.u32 4788187, %v2323_v29  ;;  %v2327_v58 = vcvt.s32.f32 %v2320_v6  ;;  %v2407_v38 = vsel %vm2405_vm0, %v2406_v4, %v6974_v10  ;;  %vm7493_vm4 = vweird.f32 %v7627_v0  ;;  %v7681_v6 = vld [vmem:[#allocation27_spill] sm:$0xff] }
 0x252   :  { %7674 = vst [vmem:[#allocation34_spill] sm:$0xff] %v7013_v55  ;;  %v2408_v57 = vadd.s32 %v2407_v38, %v2403_v33  ;;  %vm2566_vm7 = vcmp.eq.s32.totalorder %v2561_v3, 2  ;;  %v2665_v48 = vand.u32 3, %v2664_v11  ;;  %v2768_v9 = vadd.s32 3, %v7675_v34 }
 0x253   :  { %v7491_v40 = vxor.u32 2147483648, %v7018_v50  ;;  %v7492_v52 = vxor.u32 2147483648, %v7015_v62  ;;  %v2325_v1 = vand.u32 2147483647, %v2324_v18  ;;  %vm2350_vm14 = vcmp.lt.s32.totalorder %v7644_v19, 0 }
 0x254   :  { %v2872_v63 = vadd.s32 3, %v7676_v8  ;;  %v2409_v10 = vadd.s32 536870912, %v2408_v57  ;;  %v7027_v4 = vmul.f32 %v2141_v32, %v7677_v56  ;;  %vm2562_vm15 = vcmp.lt.s32.totalorder %v2561_v3, 2 }
 0x255   :  { %v7680_v33 = vxor.u32 2147483648, %v7679_v2  ;;  %v2239_v29 = vsel %vm2237_vm9, %v7015_v62, %v7491_v40  ;;  %v2242_v18 = vsel %vm2240_vm2, %v7492_v52, %v7018_v50  ;;  %v2328_v38 = vmul.f32 %v2327_v58, %v2325_v1  ;;  %v7686_v58 = vld [vmem:[#allocation49_spill] sm:$0xff] }
 0x256   :  { %7678 = vst [vmem:[#allocation35_spill] sm:$0xff] %v7027_v4  ;;  %v7682_v32 = vxor.u32 2147483648, %v7681_v6  ;;  %v7683_v8 = vand.u32 2147483647, %v7644_v19  ;;  %v2410_v27 = vshrl.u32 %v2409_v10, 30  ;;  %vm2670_vm9 = vcmp.eq.s32.totalorder %v2665_v48, 2 }
 0x257   :  { %v2565_v11 = vsel %vm2563_vm1, %v7681_v6, %v7680_v33  ;;  %vm2667_vm1 = vcmp.eq.s32.totalorder %v2665_v48, 0  ;;  %v2769_v40 = vand.u32 3, %v2768_v9  ;;  %v2329_v4 = vxor.u32 2147483648, %v2328_v38  ;;  %v7687_v9 = vld [vmem:[#allocation44_spill] sm:$0xff] }
 0x258   :  { %v2568_v34 = vsel %vm2566_vm7, %v7682_v32, %v7679_v2  ;;  %vm7047_vm0 = vcmp.le.f32.partialorder %v7683_v8, 0.7853982  ;;  %v7052_v55 = vadd.s32 %v6973_v60, %v6983_v59  ;;  %v7054_v52 = vand.u32 3, %v2872_v63 }
 0x259   :  { %v2976_v1 = vadd.s32 3, %v7686_v58  ;;  %v2243_v2 = vsel %vm2236_vm5, %v2239_v29, %v2242_v18  ;;  %v2411_v6 = vshll.u32 %v2410_v27, 30  ;;  %v2434_v32 = vsub.s32 4, %v2410_v27  ;;  %v7694_v18 = vld [vmem:[#allocation45_spill] sm:$0xff] }
 0x25a   :  { %v2569_v8 = vsel %vm2562_vm15, %v2565_v11, %v2568_v34  ;;  %v2330_v10 = vsel %vm2247_vm12, %v2329_v4, %v2328_v38  ;;  %vm2666_vm2 = vcmp.lt.s32.totalorder %v2665_v48, 2  ;;  %v7688_v35 = vxor.u32 2147483648, %v7687_v9 }
 0x25b   :  { %v7690_v59 = vxor.u32 2147483648, %v7689_v7  ;;  %v2333_v42 = vsel %vm6958_vm3, %v7634_v30, %v2330_v10  ;;  %v7071_v29 = vsub.s32 %v2408_v57, %v2411_v6  ;;  %vm2771_vm5 = vcmp.eq.s32.totalorder %v2769_v40, 0  ;;  %v7692_v57 = vld [vmem:[#allocation46_spill] sm:$0xff]  ;;  %v7696_v6 = vld [vmem:[#allocation20_spill] sm:$0xff] }
 0x25c   :  { %v2669_v60 = vsel %vm2667_vm1, %v7689_v7, %v7688_v35  ;;  %vm2774_vm7 = vcmp.eq.s32.totalorder %v2769_v40, 2  ;;  %v2244_v3 = vsel %vm7493_vm4, nan, %v2243_v2  ;;  %4670 = vcosq.f32 %v2333_v42 }
 0x25d   :  { %v2672_v63 = vsel %vm2670_vm9, %v7690_v59, %v7687_v9  ;;  %v7077_v4 = vsel %vm895_vm13, nan, %v2569_v8  ;;  %vm2770_vm12 = vcmp.lt.s32.totalorder %v2769_v40, 2  ;;  %4672 = vsinq.f32 %v2333_v42  ;;  %v7697_v9 = vld [vmem:[#allocation37_spill] sm:$0xff]  ;;  %v7707_v40 = vld [vmem:[#allocation51_spill] sm:$0xff] }
 0x25e   :  { %v2414_v7 = vsub.s32 0, %v7071_v29  ;;  %v2435_v17 = vsel %vm2350_vm14, %v2434_v32, %v2410_v27  ;;  %v2673_v35 = vsel %vm2666_vm2, %v2669_v60, %v2672_v63  ;;  %v7693_v11 = vxor.u32 2147483648, %v7692_v57 }
 0x25f   :  { %v7695_v34 = vxor.u32 2147483648, %v7694_v18  ;;  %v2977_v2 = vand.u32 3, %v2976_v1  ;;  %v3080_v8 = vadd.s32 3, %v7696_v6  ;;  %v7091_v59 = vmul.f32 %v2244_v3, %v7697_v9  ;;  %v7700_v3 = vld [vmem:[#allocation50_spill] sm:$0xff] }
 0x260   :  { %v2773_v38 = vsel %vm2771_vm5, %v7694_v18, %v7693_v11  ;;  %v4410_v10 = vmin.u32 %v2414_v7, %v7071_v29  ;;  %vm2875_vm13 = vcmp.eq.s32.totalorder %v7054_v52, 0  ;;  %vm2878_vm3 = vcmp.eq.s32.totalorder %v7054_v52, 2  ;;  %v7702_v7 = vld [vmem:[#allocation47_spill] sm:$0xff]  ;;  %v7704_v18 = vld [vmem:[#allocation54_spill] sm:$0xff] }
 0x261   :  { %v2776_v58 = vsel %vm2774_vm7, %v7695_v34, %v7692_v57  ;;  %7698 = vst [vmem:[#allocation42_spill] sm:$0xff] %v7091_v59  ;;  %v7097_v27 = vsel %vm7047_vm0, 0, %v2435_v17  ;;  %v7101_v60 = vsel %vm998_vm11, nan, %v2673_v35  ;;  %vm2874_vm15 = vcmp.lt.s32.totalorder %v7054_v52, 2  ;;  %v7737_v9 = vld [vmem:[#allocation22_spill] sm:$0xff] }
 0x262   :  { %vm2979_vm1 = vcmp.eq.s32.totalorder %v2977_v2, 0  ;;  %vm2343_vm9 = vcmp.eq.s32.totalorder %v7008_v22, 2  ;;  %v2416_v1 = vclz %v4410_v10  ;;  %v7106_v63 = vand.u32 3, %v7097_v27  ;;  %v7705_v10 = vld [vmem:[#allocation52_spill] sm:$0xff] }
 0x263   :  { %v2777_v42 = vsel %vm2770_vm12, %v2773_v38, %v2776_v58  ;;  %vm2982_vm2 = vcmp.eq.s32.totalorder %v2977_v2, 2  ;;  %vm2340_vm5 = vcmp.eq.s32.totalorder %v7008_v22, 0  ;;  %v7701_v48 = vxor.u32 2147483648, %v7700_v3  ;;  %v7708_v58 = vld [vmem:[#allocation56_spill] sm:$0xff] }
 0x264   :  { %v7703_v35 = vxor.u32 2147483648, %v7702_v7  ;;  %v3081_v11 = vand.u32 3, %v3080_v8  ;;  %v3184_v34 = vadd.s32 3, %v7704_v18  ;;  %v4411_v6 = vadd.s32 4294967294, %v2416_v1  ;;  %v7710_v8 = vld [vmem:[#allocation53_spill] sm:$0xff] }
 0x265   :  { %v2877_v17 = vsel %vm2875_vm13, %v7702_v7, %v7701_v48  ;;  %vm2978_vm11 = vcmp.lt.s32.totalorder %v2977_v2, 2  ;;  %v7706_v32 = vxor.u32 2147483648, %v7705_v10  ;;  %v3288_v59 = vadd.s32 3, %v7708_v58  ;;  %v7712_v7 = vld [vmem:[#allocation19_spill] sm:$0xff] }
 0x266   :  { %v2880_v57 = vsel %vm2878_vm3, %v7703_v35, %v7700_v3  ;;  %vm2339_vm7 = vcmp.lt.s32.totalorder %v7008_v22, 2  ;;  %v7709_v48 = vxor.u32 2147483648, %v7707_v40  ;;  %vm3083_vm12 = vcmp.eq.s32.totalorder %v3081_v11, 0 }
 0x267   :  { %v2981_v38 = vsel %vm2979_vm1, %v7707_v40, %v7706_v32  ;;  %vm3086_vm13 = vcmp.eq.s32.totalorder %v3081_v11, 2  ;;  %v3185_v3 = vand.u32 3, %v3184_v34  ;;  %vm4412_vm3 = vcmp.lt.s32.totalorder %v4411_v6, 0 }
 0x268   :  { %v2984_v24 = vsel %vm2982_vm2, %v7709_v48, %v7705_v10  ;;  %vm3082_vm4 = vcmp.lt.s32.totalorder %v3081_v11, 2  ;;  %v7711_v1 = vxor.u32 2147483648, %v7710_v8  ;;  %v7713_v18 = vxor.u32 2147483648, %v7712_v7 }
 0x269   :  { %v2419_v58 = vsel %vm4412_vm3, 0, %v4411_v6  ;;  %vm3187_vm1 = vcmp.eq.s32.totalorder %v3185_v3, 0  ;;  %v3289_v5 = vand.u32 3, %v3288_v59  ;;  %v3392_v44 = vadd.s32 3, %v7714_v49  ;;  %v7140_v6 = vpop.eup %4670 }
 0x26a   :  { %v3085_v35 = vsel %vm3083_vm12, %v7712_v7, %v7711_v1  ;;  %v3088_v32 = vsel %vm3086_vm13, %v7713_v18, %v7710_v8  ;;  %v2420_v40 = vsub.s32 32, %v2419_v58  ;;  %v2421_v10 = vshll.u32 %v7071_v29, %v2419_v58  ;;  %v7716_v29 = vld [vmem:[#allocation55_spill] sm:$0xff]  ;;  %v7718_v18 = vld [vmem:[#allocation21_spill] sm:$0xff] }
 0x26b   :  { %v2424_v48 = vsub.s32 4294967266, %v2419_v58  ;;  %v7135_v11 = vsel %vm1101_vm10, nan, %v2777_v42  ;;  %v2881_v1 = vsel %vm2874_vm15, %v2877_v17, %v2880_v57  ;;  %v2985_v46 = vsel %vm2978_vm11, %v2981_v38, %v2984_v24  ;;  %v7148_v58 = vpop.eup %4672 }
 0x26c   :  { %v3089_v7 = vsel %vm3082_vm4, %v3085_v35, %v3088_v32  ;;  %vm3190_vm2 = vcmp.eq.s32.totalorder %v3185_v3, 2  ;;  %vm2337_vm12 = vweird.f32 %v7634_v30  ;;  %v2422_v49 = vshrl.u32 %v7052_v55, %v2420_v40  ;;  %v7720_v32 = vld [vmem:[#allocation13_spill] sm:$0xff] }
 0x26d   :  { %v2425_v59 = vadd.s32 127, %v2424_v48  ;;  %vm3186_vm13 = vcmp.lt.s32.totalorder %v3185_v3, 2  ;;  %v7717_v8 = vxor.u32 2147483648, %v7716_v29  ;;  %v7494_v52 = vxor.u32 2147483648, %v7140_v6  ;;  %v7722_v48 = vld [vmem:[#allocation14_spill] sm:$0xff] }
 0x26e   :  { %v7719_v24 = vxor.u32 2147483648, %v7718_v18  ;;  %vm3291_vm10 = vcmp.eq.s32.totalorder %v3289_v5, 0  ;;  %v3393_v17 = vand.u32 3, %v3392_v44  ;;  %v7495_v57 = vxor.u32 2147483648, %v7148_v58  ;;  %v7724_v44 = vld [vmem:[#allocation15_spill] sm:$0xff] }
 0x26f   :  { %v3189_v42 = vsel %vm3187_vm1, %v7718_v18, %v7717_v8  ;;  %v2423_v55 = vor.u32 %v2422_v49, %v2421_v10  ;;  %v2426_v38 = vshll.u32 %v2425_v59, 23  ;;  %vm3294_vm4 = vcmp.eq.s32.totalorder %v3289_v5, 2 }
 0x270   :  { %v3192_v2 = vsel %vm3190_vm2, %v7719_v24, %v7716_v29  ;;  %v2345_v35 = vsel %vm2343_vm9, %v7494_v52, %v7148_v58  ;;  %vm7721_vm15 = vweird.f32 %v7720_v32  ;;  %vm7723_vm11 = vweird.f32 %v7722_v48  ;;  %v7728_v24 = vld [vmem:[#allocation57_spill] sm:$0xff] }
 0x271   :  { %v7162_v40 = vsel %vm7721_vm15, nan, %v2881_v1  ;;  %v7166_v34 = vsel %vm7723_vm11, nan, %v2985_v46  ;;  %vm7725_vm3 = vweird.f32 %v7724_v44  ;;  %v2342_v10 = vsel %vm2340_vm5, %v7140_v6, %v7495_v57  ;;  %v7726_v1 = vld [vmem:[#allocation58_spill] sm:$0xff]  ;;  %v7730_v52 = vld [vmem:[#allocation61_spill] sm:$0xff] }
 0x272   :  { %v7170_v29 = vsel %vm7725_vm3, nan, %v3089_v7  ;;  %v2427_v49 = vor.u32 4788187, %v2426_v38  ;;  %v2430_v59 = vcvt.s32.f32 %v2423_v55  ;;  %v3193_v8 = vsel %vm3186_vm13, %v3189_v42, %v3192_v2  ;;  %v7731_v55 = vld [vmem:[#allocation16_spill] sm:$0xff] }
 0x273   :  { %vm3290_vm9 = vcmp.lt.s32.totalorder %v3289_v5, 2  ;;  %v7727_v18 = vxor.u32 2147483648, %v7726_v1  ;;  %v7729_v32 = vxor.u32 2147483648, %v7728_v24  ;;  %vm3395_vm1 = vcmp.eq.s32.totalorder %v3393_v17, 0  ;;  %v7733_v5 = vld [vmem:[#allocation23_spill] sm:$0xff]  ;;  %v7734_v2 = vld [vmem:[#allocation24_spill] sm:$0xff] }
 0x274   :  { %v2346_v48 = vsel %vm2339_vm7, %v2342_v10, %v2345_v35  ;;  %v2428_v44 = vand.u32 2147483647, %v2427_v49  ;;  %vm3398_vm2 = vcmp.eq.s32.totalorder %v3393_v17, 2  ;;  %v3496_v38 = vadd.s32 3, %v7730_v52 }
 0x275   :  { %v3293_v46 = vsel %vm3291_vm10, %v7728_v24, %v7727_v18  ;;  %v3296_v7 = vsel %vm3294_vm4, %v7729_v32, %v7726_v1  ;;  %vm7732_vm5 = vweird.f32 %v7731_v55  ;;  %vm3394_vm13 = vcmp.lt.s32.totalorder %v3393_v17, 2  ;;  %v7735_v1 = vld [vmem:[#allocation60_spill] sm:$0xff] }
 0x276   :  { %v7189_v3 = vsel %vm7732_vm5, nan, %v3193_v8  ;;  %v3600_v42 = vadd.s32 3, %v7733_v5  ;;  %v3704_v18 = vadd.s32 3, %v7734_v2  ;;  %v2431_v57 = vmul.f32 %v2430_v59, %v2428_v44  ;;  %v7739_v44 = vld [vmem:[#allocation63_spill] sm:$0xff] }
 0x277   :  { %v3297_v24 = vsel %vm3290_vm9, %v3293_v46, %v3296_v7  ;;  %v7736_v32 = vxor.u32 2147483648, %v7735_v1  ;;  %v3497_v35 = vand.u32 3, %v3496_v38  ;;  %v2347_v10 = vsel %vm2337_vm12, nan, %v2346_v48 }
 0x278   :  { %v7738_v52 = vxor.u32 2147483648, %v7737_v9  ;;  %v3601_v8 = vand.u32 3, %v3600_v42  ;;  %v3808_v55 = vadd.s32 3, %v6768_v28  ;;  %v2432_v5 = vxor.u32 2147483648, %v2431_v57 }
 0x279   :  { %v3397_v22 = vsel %vm3395_vm1, %v7737_v9, %v7736_v32  ;;  %vm3499_vm7 = vcmp.eq.s32.totalorder %v3497_v35, 0  ;;  %vm3502_vm10 = vcmp.eq.s32.totalorder %v3497_v35, 2  ;;  %v3705_v59 = vand.u32 3, %v3704_v18  ;;  %v7741_v9 = vld [vmem:[#allocation62_spill] sm:$0xff] }
 0x27a   :  { %v3400_v49 = vsel %vm3398_vm2, %v7738_v52, %v7735_v1  ;;  %vm3498_vm4 = vcmp.lt.s32.totalorder %v3497_v35, 2  ;;  %vm3603_vm15 = vcmp.eq.s32.totalorder %v3601_v8, 0  ;;  %v3912_v46 = vadd.s32 3, %v6871_v31  ;;  %v7743_v1 = vld [vmem:[#allocation17_spill] sm:$0xff] }
 0x27b   :  { %v4016_v7 = vadd.s32 3, %v6999_v16  ;;  %v2433_v48 = vsel %vm2350_vm14, %v2432_v5, %v2431_v57  ;;  %v7740_v38 = vxor.u32 2147483648, %v7739_v44  ;;  %v7742_v28 = vxor.u32 2147483648, %v7741_v9  ;;  %v7745_v16 = vld [vmem:[#allocation65_spill] sm:$0xff]  ;;  %v7747_v57 = vld [vmem:[#allocation64_spill] sm:$0xff] }
 0x27c   :  { %vm3606_vm11 = vcmp.eq.s32.totalorder %v3601_v8, 2  ;;  %v2436_v18 = vsel %vm7047_vm0, %v7644_v19, %v2433_v48  ;;  %vm7744_vm3 = vweird.f32 %v7743_v1  ;;  %vm3602_vm9 = vcmp.lt.s32.totalorder %v3601_v8, 2 }
 0x27d   :  { %v3501_v2 = vsel %vm3499_vm7, %v7741_v9, %v7740_v38  ;;  %v3504_v42 = vsel %vm3502_vm10, %v7742_v28, %v7739_v44  ;;  %v3298_v31 = vsel %vm7744_vm3, nan, %v3297_v24  ;;  %v7746_v32 = vxor.u32 2147483648, %v7745_v16  ;;  %v7749_v44 = vld [vmem:[#allocation38_spill] sm:$0xff] }
 0x27e   :  { %4674 = vcosq.f32 %v2436_v18  ;;  %v7748_v5 = vxor.u32 2147483648, %v7747_v57  ;;  %vm3707_vm14 = vcmp.eq.s32.totalorder %v3705_v59, 0  ;;  %vm3710_vm1 = vcmp.eq.s32.totalorder %v3705_v59, 2 }
 0x27f   :  { %v3605_v52 = vsel %vm3603_vm15, %v7747_v57, %v7746_v32  ;;  %4676 = vsinq.f32 %v2436_v18  ;;  %v7224_v9 = vmul.f32 %v2347_v10, %v7749_v44  ;;  %v3401_v33 = vsel %vm3394_vm13, %v3397_v22, %v3400_v49 }
 0x280   :  { %v3608_v38 = vsel %vm3606_vm11, %v7748_v5, %v7745_v16  ;;  %v3505_v24 = vsel %vm3498_vm4, %v3501_v2, %v3504_v42  ;;  %vm3706_vm0 = vcmp.lt.s32.totalorder %v3705_v59, 2  ;;  %v3809_v8 = vand.u32 3, %v3808_v55 }
 0x281   :  { %v3913_v48 = vand.u32 3, %v3912_v46  ;;  %v4017_v28 = vand.u32 3, %v4016_v7  ;;  %v3609_v1 = vsel %vm3602_vm9, %v3605_v52, %v3608_v38  ;;  %v7750_v32 = vxor.u32 2147483648, %v6777_v36 }
 0x282   :  { %v7751_v16 = vxor.u32 2147483648, %v6752_v53  ;;  %v4120_v10 = vadd.s32 3, %v7097_v27  ;;  %vm3810_vm2 = vcmp.lt.s32.totalorder %v3809_v8, 2  ;;  %vm3811_vm5 = vcmp.eq.s32.totalorder %v3809_v8, 0 }
 0x283   :  { %v3709_v57 = vsel %vm3707_vm14, %v6752_v53, %v7750_v32  ;;  %vm3814_vm13 = vcmp.eq.s32.totalorder %v3809_v8, 2  ;;  %vm3914_vm7 = vcmp.lt.s32.totalorder %v3913_v48, 2  ;;  %vm2446_vm10 = vcmp.eq.s32.totalorder %v7106_v63, 2 }
 0x284   :  { %v3712_v18 = vsel %vm3710_vm1, %v7751_v16, %v6777_v36  ;;  %v7752_v17 = vxor.u32 2147483648, %v6910_v12  ;;  %v7753_v35 = vxor.u32 2147483648, %v6899_v47  ;;  %vm3915_vm4 = vcmp.eq.s32.totalorder %v3913_v48, 0 }
 0x285   :  { %vm3918_vm15 = vcmp.eq.s32.totalorder %v3913_v48, 2  ;;  %vm2443_vm11 = vcmp.eq.s32.totalorder %v7106_v63, 0  ;;  %v3713_v53 = vsel %vm3706_vm0, %v3709_v57, %v3712_v18  ;;  %v7754_v36 = vxor.u32 2147483648, %v7018_v50 }
 0x286   :  { %v3813_v22 = vsel %vm3811_vm5, %v6899_v47, %v7752_v17  ;;  %v3816_v49 = vsel %vm3814_vm13, %v7753_v35, %v6910_v12  ;;  %v7755_v55 = vxor.u32 2147483648, %v7015_v62  ;;  %vm4018_vm3 = vcmp.lt.s32.totalorder %v4017_v28, 2  ;;  %v7756_v12 = vld [vmem:[#allocation18_spill] sm:$0xff]  ;;  %v7764_v17 = vld [vmem:[#allocation41_spill] sm:$0xff] }
 0x287   :  { %v3917_v27 = vsel %vm3915_vm4, %v7015_v62, %v7754_v36  ;;  %vm2442_vm9 = vcmp.lt.s32.totalorder %v7106_v63, 2  ;;  %v3817_v7 = vsel %vm3810_vm2, %v3813_v22, %v3816_v49  ;;  %vm4019_vm14 = vcmp.eq.s32.totalorder %v4017_v28, 0 }
 0x288   :  { %v3920_v46 = vsel %vm3918_vm15, %v7755_v55, %v7018_v50  ;;  %vm4022_vm1 = vcmp.eq.s32.totalorder %v4017_v28, 2  ;;  %vm2440_vm5 = vweird.f32 %v7644_v19  ;;  %vm7757_vm13 = vweird.f32 %v7756_v12 }
 0x289   :  { %v3921_v47 = vsel %vm3914_vm7, %v3917_v27, %v3920_v46  ;;  %v3402_v59 = vsel %vm7757_vm13, nan, %v3401_v33  ;;  %v7758_v2 = vxor.u32 2147483648, %v7148_v58  ;;  %v7759_v62 = vxor.u32 2147483648, %v7140_v6 }
 0x28a   :  { %v4121_v52 = vand.u32 3, %v4120_v10  ;;  %v3506_v5 = vsel %vm1822_vm8, nan, %v3505_v24  ;;  %vm7760_vm0 = vweird.f32 %v7593_v37  ;;  %vm7761_vm2 = vweird.f32 %v7607_v15 }
 0x28b   :  { %v4021_v42 = vsel %vm4019_vm14, %v7140_v6, %v7758_v2  ;;  %v4024_v50 = vsel %vm4022_vm1, %v7759_v62, %v7148_v58  ;;  %v3610_v38 = vsel %vm7760_vm0, nan, %v3609_v1  ;;  %v3714_v8 = vsel %vm7761_vm2, nan, %v3713_v53  ;;  %v7767_v2 = vld [vmem:[#allocation28_spill] sm:$0xff]  ;;  %v7768_v62 = vld [vmem:[#allocation29_spill] sm:$0xff] }
 0x28c   :  { %v4025_v48 = vsel %vm4018_vm3, %v4021_v42, %v4024_v50  ;;  %v3818_v33 = vsel %vm2131_vm6, nan, %v3817_v7  ;;  %vm7762_vm7 = vweird.f32 %v7627_v0  ;;  %v4131_v6 = vmul.f32 %v7077_v4, %v7649_v61  ;;  %v4675_v61 = vpop.eup %4674 }
 0x28d   :  { %v3922_v28 = vsel %vm7762_vm7, nan, %v3921_v47  ;;  %v4132_v13 = vmul.f32 %v7101_v60, %v7651_v54  ;;  %v4026_v37 = vsel %vm2337_vm12, nan, %v4025_v48  ;;  %v4133_v15 = vmul.f32 %v7135_v11, %v7653_v43  ;;  %v7765_v47 = vld [vmem:[#allocation25_spill] sm:$0xff]  ;;  %v7771_v48 = vld [vmem:[#allocation32_spill] sm:$0xff] }
 0x28e   :  { %v4134_v58 = vmul.f32 %v7162_v40, %v7655_v23  ;;  %v4135_v21 = vmul.f32 %v7166_v34, %v7657_v41  ;;  %vm4122_vm8 = vcmp.lt.s32.totalorder %v4121_v52, 2  ;;  %vm4123_vm6 = vcmp.eq.s32.totalorder %v4121_v52, 0  ;;  %v4677_v23 = vpop.eup %4676 }
 0x28f   :  { %vm4126_vm4 = vcmp.eq.s32.totalorder %v4121_v52, 2  ;;  %v4136_v0 = vmul.f32 %v7170_v29, %v7659_v39  ;;  %v4137_v30 = vmul.f32 %v7189_v3, %v7661_v25  ;;  %v4138_v54 = vmul.f32 %v3298_v31, %v5433_v51  ;;  %v7763_v39 = vld [vmem:[#allocation37_spill] sm:$0xff]  ;;  %v7769_v52 = vld [vmem:[#allocation30_spill] sm:$0xff] }
 0x290   :  { %v4139_v43 = vmul.f32 %v3402_v59, %v5453_v26  ;;  %v4140_v4 = vmul.f32 %v3506_v5, %v5481_v45  ;;  %v2447_v60 = vxor.u32 2147483648, %v4675_v61  ;;  %v4141_v41 = vmul.f32 %v3610_v38, %v7671_v14  ;;  %v7766_v59 = vld [vmem:[#allocation26_spill] sm:$0xff]  ;;  %v7770_v38 = vld [vmem:[#allocation31_spill] sm:$0xff] }
 0x291   :  { %v4142_v11 = vmul.f32 %v3714_v8, %v7673_v20  ;;  %v4143_v40 = vmul.f32 %v3818_v33, %v7677_v56  ;;  %v2444_v34 = vxor.u32 2147483648, %v4677_v23  ;;  %v4144_v29 = vmul.f32 %v3922_v28, %v7763_v39  ;;  %v7772_v28 = vld [vmem:[#allocation33_spill] sm:$0xff] }
 0x292   :  { %v4145_v24 = vmul.f32 %v4026_v37, %v7749_v44  ;;  %v4163_v25 = vrot.slane %v4131_v6, 7  ;;  %v2448_v51 = vsel %vm2446_vm10, %v2447_v60, %v4677_v23  ;;  %v4128_v26 = vsel %vm4126_vm4, %v2447_v60, %v4677_v23 }
 0x293   :  { %v4164_v45 = vrot.slane %v4132_v13, 7  ;;  %v4165_v3 = vrot.slane %v4133_v15, 7  ;;  %v2445_v14 = vsel %vm2443_vm11, %v4675_v61, %v2444_v34  ;;  %v4125_v20 = vsel %vm4123_vm6, %v4675_v61, %v2444_v34  ;;  %v7773_v13 = vld [vmem:[#allocation66_spill] sm:$0xff]  ;;  %v7774_v15 = vld [vmem:[#allocation67_spill] sm:$0xff] }
 0x294   :  { %v4166_v31 = vrot.slane %v4134_v58, 7  ;;  %v4167_v56 = vrot.slane %v4135_v21, 7  ;;  %v2449_v1 = vsel %vm2442_vm9, %v2445_v14, %v2448_v51  ;;  %v4129_v44 = vsel %vm4122_vm8, %v4125_v20, %v4128_v26  ;;  %v7775_v21 = vld [vmem:[#allocation40_spill] sm:$0xff]  ;;  %v7776_v61 = vld [vmem:[#allocation34_spill] sm:$0xff]  ;;  %v7779_v14 = vld [vmem:[#allocation9_spill] sm:$0xff] }
 0x295   :  { %v4168_v32 = vrot.slane %v4136_v0, 7  ;;  %v4169_v57 = vrot.slane %v4137_v30, 7  ;;  %v2450_v16 = vsel %vm2440_vm5, nan, %v2449_v1  ;;  %v4130_v18 = vsel %vm2440_vm5, nan, %v4129_v44 }
 0x296   :  { %v4170_v10 = vrot.slane %v4138_v54, 7  ;;  %vm4195_vm12 = vcmask 1040384   ;;  %v4146_v22 = vmul.f32 %v4130_v18, %v7764_v17  ;;  %v4171_v35 = vrot.slane %v4139_v43, 7  ;;  %v7777_v54 = vld [vmem:[#allocation35_spill] sm:$0xff] }
 0x297   :  { %v4172_v49 = vrot.slane %v4140_v4, 7  ;;  %v4173_v53 = vrot.slane %v4141_v41, 7  ;;  %v4174_v36 = vrot.slane %v4142_v11, 7  ;;  %v4175_v63 = vrot.slane %v4143_v40, 7  ;;  %v7778_v4 = vld [vmem:[#allocation42_spill] sm:$0xff] }
 0x298   :  { %v4176_v27 = vrot.slane %v4144_v29, 7  ;;  %v4177_v55 = vrot.slane %v4145_v24, 7  ;;  %v2466_v46 = vmul.f32 %v2450_v16, %v7764_v17  ;;  %v4178_v7 = vrot.slane %v4146_v22, 7 }
 0x299   :  { %v4196_v12 = vsel %vm4195_vm12, %v7765_v47, %v4163_v25  ;;  %v4197_v19 = vsel %vm4195_vm12, %v7766_v59, %v4164_v45  ;;  %v4198_v42 = vsel %vm4195_vm12, %v7767_v2, %v4165_v3  ;;  %v4199_v50 = vsel %vm4195_vm12, %v7768_v62, %v4166_v31 }
 0x29a   :  { %v4200_v5 = vsel %vm4195_vm12, %v7769_v52, %v4167_v56  ;;  %v4201_v8 = vsel %vm4195_vm12, %v7770_v38, %v4168_v32  ;;  %v4202_v33 = vsel %vm4195_vm12, %v7771_v48, %v4169_v57  ;;  %v4203_v6 = vsel %vm4195_vm12, %v7772_v28, %v4170_v10 }
 0x29b   :  { %v4204_v37 = vsel %vm4195_vm12, %v7773_v13, %v4171_v35  ;;  %v4205_v58 = vsel %vm4195_vm12, %v7774_v15, %v4172_v49  ;;  %v4206_v0 = vsel %vm4195_vm12, %v7775_v21, %v4173_v53  ;;  %v4207_v30 = vsel %vm4195_vm12, %v7776_v61, %v4174_v36  ;;  %v4212_v53 = vld [vmem:[#allocation3] sm:$0xff] }
 0x29c   :  { %v4208_v43 = vsel %vm4195_vm12, %v7777_v54, %v4175_v63  ;;  %v4209_v23 = vsel %vm4195_vm12, %v7778_v4, %v4176_v27  ;;  %v4210_v60 = vsel %vm4195_vm12, %v7224_v9, %v4177_v55  ;;  %v4211_v41 = vsel %vm4195_vm12, %v2466_v46, %v4178_v7  ;;  %v4213_v27 = vld [vmem:[#allocation3 + $0x8] sm:$0xff] }
 0x29d   :  { %v4729_v11 = vmov 1966171168   ;;  %v4230_v34 = vcombine.low %v4196_v12, %v4197_v19  ;;  %v4231_v39 = vcombine.low %v4198_v42, %v4199_v50  ;;  %v4232_v29 = vcombine.low %v4200_v5, %v4201_v8 }
 0x29e   :  { %v4235_v40 = vunpack.c.l.s4 %v4729_v11  ;;  %v4233_v24 = vcombine.low %v4202_v33, %v4203_v6  ;;  %v4279_v51 = vcombine.low %v4204_v37, %v4205_v58  ;;  %v4280_v26 = vcombine.low %v4206_v0, %v4207_v30 }
 0x29f   :  { %v4281_v45 = vcombine.low %v4208_v43, %v4209_v23  ;;  %v4282_v3 = vcombine.low %v4210_v60, %v4211_v41 }
 0x2a0   :  { %v4236_v25 = vunpack.c.0.s8 %v4235_v40 }
 0x2a2   :  { %v4239_v20 = vsub.s32 %v4236_v25, %v7779_v14 }
 0x2a4   :  { %v4240_v31 = vrot.slane %v4230_v34, %v4239_v20  ;;  %v4247_v56 = vrot.slane %v4231_v39, %v4239_v20  ;;  %v4254_v1 = vrot.slane %v4232_v29, %v4239_v20  ;;  %v4261_v44 = vrot.slane %v4233_v24, %v4239_v20 }
 0x2a5   :  { %v4289_v9 = vrot.slane %v4279_v51, %v4239_v20  ;;  %v4296_v32 = vrot.slane %v4280_v26, %v4239_v20  ;;  %v4303_v57 = vrot.slane %v4281_v45, %v4239_v20  ;;  %v4310_v16 = vrot.slane %v4282_v3, %v4239_v20 }
 0x2a6   :  { %v4262_v18 = vcombine.low %v4240_v31, %v4247_v56  ;;  %v4263_v10 = vcombine.low %v4254_v1, %v4261_v44 }
 0x2a7   :  { %v4311_v17 = vcombine.low %v4289_v9, %v4296_v32  ;;  %v4312_v22 = vcombine.low %v4303_v57, %v4310_v16 }
 0x2a8   :  { %v4270_v35 = vrot.slane %v4262_v18, %v4239_v20  ;;  %v4277_v49 = vrot.slane %v4263_v10, %v4239_v20 }
 0x2a9   :  { %v4319_v36 = vrot.slane %v4311_v17, %v4239_v20  ;;  %v4326_v63 = vrot.slane %v4312_v22, %v4239_v20 }
 0x2aa   :  { %v4278_v55 = vcombine.low %v4270_v35, %v4277_v49 }
 0x2ab   :  { %v4327_v46 = vcombine.low %v4319_v36, %v4326_v63 }
 0x2ac   :  { %v4330_v7 = vadd.f32 %v4278_v55, %v4212_v53 }
 0x2ad   :  { %v4331_v47 = vadd.f32 %v4327_v46, %v4213_v27 }
 0x2ae   :  { %4332 = vst [vmem:[#allocation6] sm:$0xff] %v4330_v7 }
 0x2af   :  { %4333 = vst [vmem:[#allocation6 + $0x8] sm:$0xff] %v4331_v47 }
 0x2b0   :  { %4709 = shalt.err (!%p4706_p9)
}
 0x2b1   :  { %4343 = dma.vmem_to_hbm [thread:$0]  %s4341_s1, 256, %s7346_s2, [#allocation5]  }
 0x2b2   :  { %4720 = dma.done.wait [#allocation5], 256  }
 0x2b3   :  { %4721 = vsyncadd [#allocation5], 4294967040 }
 0x2b4   :  { %4347 = vsyncpa [#allocation4], 1 }
 0x2b5   :  { %4348 = vsyncpa [#allocation5], 1 }

</bundles_post_ra>
